<compile_context>
chip_gen: v5e
topology: v5e:2x2
jax: 0.10.0
libtpu: 0.0.40
codegen_flags: <defaults>
</compile_context>

<pallas_src>
import jax
import jax.numpy as jnp
from jax.experimental import pallas as pl
from jax.experimental.pallas import tpu as pltpu

K_IN = 4096   # nn.Linear(4096, 512) input features
N_OUT = 512   # output features


def linear_kernel(x_ref, w_ref, b_ref, o_ref):
    """Grid = (N tiles, K tiles); K (reduction) is the last / innermost axis.

    The output block index is constant in k, so o_ref stays resident in VMEM
    across the whole reduction and acts as the f32 accumulator.
    """
    k = pl.program_id(1)

    @pl.when(k == 0)
    def _():
        # Initialize the resident output tile with the bias (broadcast over rows).
        o_ref[...] = jnp.broadcast_to(b_ref[...], o_ref.shape)

    # bf16 x bf16 matmul on the MXU with f32 accumulation.
    o_ref[...] += jnp.dot(
        x_ref[...],
        w_ref[...],
        preferred_element_type=jnp.float32,
    )


def _linear_pallas(x_bf16, w_bf16, b, *, tn, tk, core_parallel_n):
    """y = x @ w + b with x:(B,K) bf16, w:(K,N) bf16 (at rest), b:(N,) f32 -> (B,N) f32."""
    B, K = x_bf16.shape
    Kw, N = w_bf16.shape
    assert K == Kw and K % tk == 0 and N % tn == 0

    b2d = b.reshape(1, N).astype(jnp.float32)

    if core_parallel_n:
        dim_sem = (pltpu.CORE_PARALLEL, pltpu.ARBITRARY)
    else:
        dim_sem = ("arbitrary", "arbitrary")  # N axis is size 1 on single-TC configs

    cost = pl.CostEstimate(
        flops=2 * B * K * N,
        transcendentals=0,
        bytes_accessed=K * N * 2 + B * K * 2 + B * N * 4 + N * 4,
    )

    # NOTE: at B=2 the x/out blocks pad to 8 sublanes and the kernel is purely
    # memory-bound on W.  If batch grows, tile B (multiple of 8, ideally 128/256)
    # and add it as another "parallel" grid axis.
    return pl.pallas_call(
        linear_kernel,
        out_shape=jax.ShapeDtypeStruct((B, N), jnp.float32),
        grid_spec=pltpu.PrefetchScalarGridSpec(
            num_scalar_prefetch=0,
            grid=(N // tn, K // tk),                          # (N tiles, reduction K)
            in_specs=[
                pl.BlockSpec((B, tk), lambda j, k: (0, k)),   # x slab (bf16, tiny)
                pl.BlockSpec((tk, tn), lambda j, k: (k, j)),  # W slab (bf16, dominant stream)
                pl.BlockSpec((1, tn), lambda j, k: (0, j)),   # bias slice
            ],
            out_specs=pl.BlockSpec((B, tn), lambda j, k: (0, j)),
        ),
        compiler_params=pltpu.CompilerParams(dimension_semantics=dim_sem),
        cost_estimate=cost,
    )(x_bf16, w_bf16, b2d)


def intermediate_forward(x, w_bf16, b):
    """Forward pass of `Intermidiate`: per-generation tiling, W already bf16 at rest."""
    x_bf16 = x.astype(jnp.bfloat16)  # 32 KiB; removes the per-step in-kernel convert

    try:
        kind = jax.devices()[0].device_kind.lower()
    except Exception:  # pragma: no cover - defensive
        kind = ""

    if "v7" in kind:
        # v7x: one full-K step per TensorCore; each TC streams half of W (2 MiB bf16).
        try:
            out = _linear_pallas(x_bf16, w_bf16, b, tn=256, tk=K_IN,
                                 core_parallel_n=True)
            return jax.block_until_ready(out)
        except Exception:
            pass  # fall back to the generic single-TC configuration below

    # v5e / v6e (single TensorCore), or fallback: full-N tiles, 2 reduction steps.
    return _linear_pallas(x_bf16, w_bf16, b, tn=N_OUT, tk=2048,
                          core_parallel_n=False)


if __name__ == "__main__":
    key = jax.random.PRNGKey(0)
    kx, kw, kb = jax.random.split(key, 3)

    batch = 2
    x = jax.random.normal(kx, (batch, K_IN), dtype=jnp.float32)
    # Deterministic synthetic parameters (shapes from nn.Linear(4096, 512)):
    # PyTorch weight is (512, 4096); we keep it pre-transposed as (4096, 512).
    w_f32 = jax.random.normal(kw, (K_IN, N_OUT), dtype=jnp.float32) * 0.02
    b = jax.random.normal(kb, (N_OUT,), dtype=jnp.float32) * 0.02

    # "Init-time" cast: W is stored in bf16 at rest, so no per-call cast / extra
    # HBM traffic inside the forward pass.
    w_bf16 = w_f32.astype(jnp.bfloat16)

    y = intermediate_forward(x, w_bf16, b)
    y = jax.block_until_ready(y)

    # Reference uses the same bf16-rounded operands the kernel consumes,
    # accumulated in f32 — mirrors the MXU bf16 path exactly.
    x_ref32 = x.astype(jnp.bfloat16).astype(jnp.float32)
    w_ref32 = w_bf16.astype(jnp.float32)
    y_ref = x_ref32 @ w_ref32 + b

    assert y.shape == (batch, N_OUT)
    assert y.dtype == jnp.float32
    assert jnp.allclose(y, y_ref, atol=1e-2, rtol=1e-2)

    print("KERNEL_OK")
</pallas_src>

<mosaic_0001>
module attributes {stable_mosaic.version = 11 : i64} {
  func.func @linear_kernel(%arg0: i32, %arg1: i32, %arg2: memref<2x2048xbf16, #tpu.memory_space<vmem>>, %arg3: memref<2048x512xbf16, #tpu.memory_space<vmem>>, %arg4: memref<1x512xf32, #tpu.memory_space<vmem>>, %arg5: memref<2x512xf32, #tpu.memory_space<vmem>>) attributes {dimension_semantics = [#tpu.dimension_semantics<arbitrary>, #tpu.dimension_semantics<arbitrary>], iteration_bounds = array<i64: 1, 2>, scalar_prefetch = 0 : i64, scratch_operands = 0 : i64, tpu.core_type = #tpu.core_type<tc>, window_params = [{transform_indices = @transform_0, window_bounds = array<i64: 2, 2048>}, {transform_indices = @transform_1, window_bounds = array<i64: 2048, 512>}, {transform_indices = @transform_2, window_bounds = array<i64: 1, 512>}, {transform_indices = @transform_3, window_bounds = array<i64: 2, 512>}]} {
    %c0_i32 = arith.constant 0 : i32
    %0 = arith.cmpi eq, %arg1, %c0_i32 : i32
    %1 = arith.extui %0 : i1 to i32
    %c0_i32_0 = arith.constant 0 : i32
    %2 = arith.cmpi ne, %1, %c0_i32_0 : i32
    scf.if %2 {
      %c0_8 = arith.constant 0 : index
      %c0_9 = arith.constant 0 : index
      %9 = vector.load %arg4[%c0_8, %c0_9] : memref<1x512xf32, #tpu.memory_space<vmem>>, vector<1x512xf32>
      %10 = vector.shape_cast %9 : vector<1x512xf32> to vector<1x512xf32>
      %11 = vector.broadcast %10 : vector<1x512xf32> to vector<2x512xf32>
      %c0_10 = arith.constant 0 : index
      %c0_11 = arith.constant 0 : index
      %12 = vector.load %arg5[%c0_10, %c0_11] : memref<2x512xf32, #tpu.memory_space<vmem>>, vector<2x512xf32>
      tpu.vector_store %arg5[%c0_10, %c0_11], %11 {strides = array<i32>} : memref<2x512xf32, #tpu.memory_space<vmem>>, vector<2x512xf32>,
    } else {
    }
    %c0 = arith.constant 0 : index
    %c0_1 = arith.constant 0 : index
    %3 = vector.load %arg5[%c0, %c0_1] : memref<2x512xf32, #tpu.memory_space<vmem>>, vector<2x512xf32>
    %c0_2 = arith.constant 0 : index
    %c0_3 = arith.constant 0 : index
    %4 = vector.load %arg2[%c0_2, %c0_3] : memref<2x2048xbf16, #tpu.memory_space<vmem>>, vector<2x2048xbf16>
    %c0_4 = arith.constant 0 : index
    %c0_5 = arith.constant 0 : index
    %5 = vector.load %arg3[%c0_4, %c0_5] : memref<2048x512xbf16, #tpu.memory_space<vmem>>, vector<2048x512xbf16>
    %cst = arith.constant dense<0.000000e+00> : vector<2x512xf32>
    %6 = tpu.matmul %4, %5, %cst {dimension_numbers = #tpu.dot_dimension_numbers<[1], [0], [0], [1], [0, 0, 1, 1], [], []>} : vector<2x2048xbf16>, vector<2048x512xbf16>, vector<2x512xf32> -> vector<2x512xf32>
    %7 = arith.addf %3, %6 : vector<2x512xf32>
    %c0_6 = arith.constant 0 : index
    %c0_7 = arith.constant 0 : index
    %8 = vector.load %arg5[%c0_6, %c0_7] : memref<2x512xf32, #tpu.memory_space<vmem>>, vector<2x512xf32>
    tpu.vector_store %arg5[%c0_6, %c0_7], %7 {strides = array<i32>} : memref<2x512xf32, #tpu.memory_space<vmem>>, vector<2x512xf32>,
    return
  }
  func.func @transform_0(%arg0: i32, %arg1: i32) -> (i32, i32) {
    %c0_i32 = arith.constant 0 : i32
    %c0_i32_0 = arith.constant 0 : i32
    return %c0_i32, %arg1 : i32, i32
  }
  func.func @transform_1(%arg0: i32, %arg1: i32) -> (i32, i32) {
    %c0_i32 = arith.constant 0 : i32
    return %arg1, %arg0 : i32, i32
  }
  func.func @transform_2(%arg0: i32, %arg1: i32) -> (i32, i32) {
    %c0_i32 = arith.constant 0 : i32
    %c0_i32_0 = arith.constant 0 : i32
    return %c0_i32, %arg0 : i32, i32
  }
  func.func @transform_3(%arg0: i32, %arg1: i32) -> (i32, i32) {
    %c0_i32 = arith.constant 0 : i32
    %c0_i32_0 = arith.constant 0 : i32
    return %c0_i32, %arg0 : i32, i32
  }
}

</mosaic_0001>

<bundles_post_ra>
// kernel: tpu_custom_call.1
= control target key start
LH: loop header
LB: loop body
LE: loop exit
PB: predicated region body
PF: predicated region fallthrough
CT: control target
= control target key end

     0   :  { %8 = vsyncpa [#allocation3], 0  ;;  %s8486_s0 = inlined_call_operand.hbm [shape: bf16[2,4096], index: 0, kind: input, shape index: {}]   ;;  %s8487_s1 = inlined_call_operand.hbm [shape: bf16[4096,512], index: 1, kind: input, shape index: {}]   ;;  %s8488_s2 = inlined_call_operand.hbm [shape: f32[1,512], index: 2, kind: input, shape index: {}]   ;;  %s8489_s3 = inlined_call_operand.hbm [shape: f32[2,512], index: 3, kind: output, shape index: {}]  }
   0x1   :  { %10 = vsyncpa [#allocation3 + $0x1], 0 }
   0x2   :  { %11 = vsyncpa [#allocation6], 0 }
   0x3   :  { %13 = vsyncpa [#allocation6 + $0x1], 0 }
   0x4   :  { %14 = vsyncpa [#allocation4], 0  ;;  %s7247_s12 = smov 0   ;;  %s7249_s13 = smov 0  }
   0x5   :  { %s7251_s14 = smov 0   ;;  %s7253_s15 = smov 0  }
   0x6   :  { %s7255_s16 = smov 0   ;;  %s7257_s17 = smov 0  }
   0x7 LB: > { %s7276_s18 = sadd.s32 4294967295, %s7221_s17   ;;  %p52_p0 = scmp.ne.s32.totalorder %s7205_s13, %s7201_s12  ;;  %s7221_s17 = sphi %s7257_s17, %s20_s17   ;;  %s7217_s16 = sphi %s7255_s16, %s8498_s16   ;;  %s7213_s15 = sphi %s7253_s15, %s8497_s15   ;;  %s7209_s14 = sphi %s7251_s14, %s8496_s14   ;;  %s7205_s13 = sphi %s7249_s13, %s8495_s13   ;;  %s7201_s12 = sphi %s7247_s12, %s8494_s12  }
   0x8   : > { %p53_p1 = scmp.eq.s32.totalorder %s7276_s18, 0  ;;  %p4357_p2 = scmp.ge.s32.totalorder %s7221_s17, 1 }
   0x9   : > { %p143_p3 = scmp.lt.s32.totalorder %s7221_s17, 3  ;;  %s157_s22 = sshll.u32 %s8488_s2, 4  ;;  %s158_s22 = int_to_ptr.hbm [resolvable:$true] %s157_s22 }
   0xa   : > { %p7284_p4 = por %p53_p1, %p52_p0  ;;  %s7223_s24 = smov [#allocation7]  }
   0xb   : > { %p7291_p5 = pnand %p4357_p2, %p143_p3  ;;  %s159_s25 = sshll.u32 %s7223_s24, 4  ;;  %s160_s25 = int_to_ptr.vmem [resolvable:$true] %s159_s25 }
   0xc   : > { %s29_s26 = sadd.s32 1, %s7217_s16  ;;  %s39_s27 = sadd.s32 1, %s7209_s14 }
   0xd   : > { %p6949_p6 = pneg %p7291_p5  ;;  %p30_p8 = scmp.ge.s32.totalorder %s29_s26, 2 }
   0xe   : > { %p46_p9 = scmp.ne.s32.totalorder %s7209_s14, %s7205_s13  ;;  %p47_p10 = scmp.eq.s32.totalorder %s7221_s17, 0 }
   0xf   : > { %p6950_p7 = pnand %p6949_p6, %p53_p1  ;;  %s8500_s26 = smov (%p30_p8, %s29_s26), 0 }
  0x10   : > { %p7306_p11 = por %p47_p10, %p46_p9  ;;  %p6961_p12 = scmp.lt.s32.totalorder %s7221_s17, 2 }
  0x11   : > { %6952 = dma.hbm_to_vmem [thread:$0]  (!%p6950_p7), %s158_s22, 64, %s160_s25, [#allocation6]  }
  0x12   : > { %s36_s29 = ssub.s32 %s7217_s16, %s8500_s26  ;;  %s170_s30 = sand.u32 1, %s7209_s14  }
  0x13   : > { %p37_p13 = scmp.eq.s32.totalorder %s36_s29, 0  ;;  %s4360_s4 = sshll.u32 %s170_s30, 4 }
  0x14   : > { %s4361_s5 = sshll.u32 %s7217_s16, 4  ;;  %s174_s11 = scalar_lea.vmem [#allocation2], %s4360_s4 }
  0x15   : > { %s7316_s6 = scalar_select %p37_p13, %s7209_s14, %s39_s27  }
  0x16   : > { %s178_s9 = scalar_lea.hbm %s8486_s0, %s4361_s5  ;;  %s182_s12 = sshll.u32 %s174_s11, 4  ;;  %s183_s12 = int_to_ptr.vmem [resolvable:$true] %s182_s12 }
  0x17   : > { %s180_s10 = sshll.u32 %s178_s9, 4  ;;  %p7325_p0 = pnand %p6961_p12, %p7306_p11  ;;  %s181_s10 = int_to_ptr.hbm [resolvable:$true] %s180_s10 }
  0x18   : > { %s4362_s21 = sshll.u32 %s170_s30, 12  ;;  %s6424_s22 = sshll.u32 %s7217_s16, 12 }
  0x19   : > { %s193_s24 = scalar_lea.vmem [#allocation5], %s4362_s21  ;;  %s171_s27 = scalar_lea.sflag [#allocation3], %s170_s30 }
  0x1a   : > { %s204_s25 = sshll.u32 %s193_s24, 4  ;;  %s189_s29 = sand.u32 1, %s7221_s17   ;;  %s205_s25 = int_to_ptr.vmem [resolvable:$true] %s204_s25 }
  0x1b   : > { %6956 = dma.hbm_to_vmem [thread:$0]  (!%p7325_p0), %s181_s10, 256, %s183_s12, %s171_s27  }
  0x1c   : > { %s201_s28 = scalar_lea.hbm %s8487_s1, %s6424_s22  ;;  %s190_s8 = scalar_lea.sflag [#allocation6], %s189_s29 }
  0x1d   : > { %s202_s7 = sshll.u32 %s201_s28, 4  ;;  %s7224_s9 = smov 256   ;;  %s203_s7 = int_to_ptr.hbm [resolvable:$true] %s202_s7 }
  0x1e   : > { %s7225_s11 = smov 16   ;;  %216 = sbr.rel (%p7291_p5) target bundleno = 722 (0x2d2), region = 32 }
  0x1f   : > { %6959 = dma.hbm_to_vmem [thread:$0]  (!%p7325_p0), %s203_s7, 65536, %s205_s25, %s190_s8, %s7224_s9, %s7224_s9, %s7225_s11  }
  0x20   : > { %s218_s30 = sand.u32 (!%p7291_p5), 1, %s7205_s13  }
  0x21   : > { %s4367_s10 = sshll.u32 (!%p7291_p5), %s218_s30, 4  ;;  %s219_s12 = scalar_lea.sflag (!%p7291_p5), [#allocation3], %s218_s30 }
  0x22   : > { %s7341_s21 = scalar_lea.vmem (!%p7291_p5), [#allocation2], %s4367_s10 }
  0x23   : > { %7184 = dma.done.wait (%p7284_p4), %s219_s12, 256  }
  0x24   : > { %7186 = vsyncadd (%p7284_p4), %s219_s12, 4294967040  ;;  %s228_s22 = sand.u32 1, %s7276_s18   ;;  %s4368_s20 = sshll.u32 %s218_s30, 12 }
  0x25   : > { %s229_s24 = scalar_lea.sflag [#allocation6], %s228_s22  ;;  %s7348_s25 = scalar_lea.vmem [#allocation5], %s4368_s20 }
  0x26   : > { %7188 = dma.done.wait (%p7284_p4), %s229_s24, 65536  }
  0x27   : > { %7190 = vsyncadd (%p7284_p4), %s229_s24, 4294901760 }
  0x28   : > { %7192 = dma.done.wait (%p53_p1), [#allocation6], 64  }
  0x29   : > { %7194 = vsyncadd (%p53_p1), [#allocation6], 4294967232  ;;  %p4370_p2 = scmp.ne.s32.totalorder %s7213_s15, 0 }
  0x2b   : > { %269 = sbr.rel (%p4370_p2) target bundleno = 56 (0x38), region = 48 }
  0x30   : > { %v270_v0 = vld [vmem:[#allocation7] sm:$0xf]  ;;  %vm279_vm0 = vcmask 1041408   ;;  %vm281_vm1 = vcmask 1045508   ;;  %vm283_vm2 = vcmask 1043456  }
  0x31   : > { %v272_v1 = vperm.slane %v270_v0, 0  ;;  %v273_v2 = vperm.slane %v270_v0, 1  ;;  %v274_v3 = vperm.slane %v270_v0, 2  ;;  %v275_v4 = vperm.slane %v270_v0, 3 }
  0x33   : > { %v276_v5 = vrot.slane %v273_v2, 6  ;;  %v277_v6 = vrot.slane %v274_v3, 4  ;;  %v278_v7 = vrot.slane %v275_v4, 2 }
  0x35   : > { %v280_v8 = vsel %vm279_vm0, %v272_v1, %v276_v5  ;;  %v282_v9 = vsel %vm281_vm1, %v277_v6, %v278_v7 }
  0x36   : > { %v284_v10 = vsel %vm283_vm2, %v280_v8, %v282_v9 }
  0x37   : > { %286 = vst [vmem:[#allocation8] sm:$0xff] %v284_v10 }
  0x38 PF: > { %v4485_v11 = vld [vmem:[%s7348_s25 + $0xe0] sm:$0xf]  ;;  %v6455_v12 = vld [vmem:[%s7348_s25 + $0xec] sm:$0xf0]  ;;  %vm4237_vm3 = vcmask 1041408   ;;  %vm4239_vm4 = vcmask 1045508  }
  0x39   : > { %v4613_v13 = vld [vmem:[%s7348_s25 + $0x1e0] sm:$0xf]  ;;  %v4486_v14 = vor.u32 %v6455_v12, %v4485_v11  ;;  %v6487_v15 = vld [vmem:[%s7348_s25 + $0x1ec] sm:$0xf0]  ;;  %vm4241_vm5 = vcmask 1043456   ;;  %s7226_s15 = smov [#allocation8]  }
  0x3a   : > { %v4741_v16 = vld [vmem:[%s7348_s25 + $0x2e0] sm:$0xf]  ;;  %v6519_v17 = vld [vmem:[%s7348_s25 + $0x2ec] sm:$0xf0]  ;;  %v4614_v18 = vor.u32 %v6487_v15, %v4613_v13  ;;  %s4255_s19 = sshll.u32 %s7226_s15, 4  ;;  %s4257_s29 = sshll.u32 %s8489_s3, 4  ;;  %s4256_s19 = int_to_ptr.vmem [resolvable:$true] %s4255_s19  ;;  %s4258_s29 = int_to_ptr.hbm [resolvable:$true] %s4257_s29 }
  0x3b   : > { %v4742_v19 = vor.u32 %v6519_v17, %v4741_v16  ;;  %v4869_v20 = vld [vmem:[%s7348_s25 + $0x3e0] sm:$0xf]  ;;  %v6551_v21 = vld [vmem:[%s7348_s25 + $0x3ec] sm:$0xf0]  ;;  %3398 = vmatpush.bf16.msra.mxu0 %v4486_v14  ;;  %p6963_p1 = scmp.eq.s32.totalorder %s7276_s18, 1 }
  0x3c   : > { %v4469_v22 = vld [vmem:[%s7348_s25 + $0xc0] sm:$0xf]  ;;  %v4870_v23 = vor.u32 %v6551_v21, %v4869_v20  ;;  %v6451_v24 = vld [vmem:[%s7348_s25 + $0xcc] sm:$0xf0]  ;;  %3411 = vmatpush.bf16.msra.mxu1 %v4614_v18 }
  0x3d   : > { %v4597_v25 = vld [vmem:[%s7348_s25 + $0x1c0] sm:$0xf]  ;;  %v6483_v26 = vld [vmem:[%s7348_s25 + $0x1cc] sm:$0xf0]  ;;  %3424 = vmatpush.bf16.msra.mxu2 %v4742_v19  ;;  %v4470_v27 = vor.u32 %v6451_v24, %v4469_v22 }
  0x3e   : > { %v4598_v28 = vor.u32 %v6483_v26, %v4597_v25  ;;  %v4725_v29 = vld [vmem:[%s7348_s25 + $0x2c0] sm:$0xf]  ;;  %v6515_v30 = vld [vmem:[%s7348_s25 + $0x2cc] sm:$0xf0]  ;;  %3437 = vmatpush.bf16.msra.mxu3 %v4870_v23 }
  0x3f   : > { %v4853_v31 = vld [vmem:[%s7348_s25 + $0x3c0] sm:$0xf]  ;;  %v4726_v32 = vor.u32 %v6515_v30, %v4725_v29  ;;  %v6547_v33 = vld [vmem:[%s7348_s25 + $0x3cc] sm:$0xf0]  ;;  %3399 = vmatpush.bf16.msra.mxu0 %v4470_v27 }
  0x40   : > { %v4453_v34 = vld [vmem:[%s7348_s25 + $0xa0] sm:$0xf]  ;;  %v6447_v35 = vld [vmem:[%s7348_s25 + $0xac] sm:$0xf0]  ;;  %v4854_v36 = vor.u32 %v6547_v33, %v4853_v31  ;;  %3412 = vmatpush.bf16.msra.mxu1 %v4598_v28 }
  0x41   : > { %v4581_v37 = vld [vmem:[%s7348_s25 + $0x1a0] sm:$0xf]  ;;  %v6479_v38 = vld [vmem:[%s7348_s25 + $0x1ac] sm:$0xf0]  ;;  %v4454_v40 = vor.u32 %v6447_v35, %v4453_v34  ;;  %3425 = vmatpush.bf16.msra.mxu2 %v4726_v32 }
  0x42   : > { %v4709_v39 = vld [vmem:[%s7348_s25 + $0x2a0] sm:$0xf]  ;;  %v6511_v41 = vld [vmem:[%s7348_s25 + $0x2ac] sm:$0xf0]  ;;  %v4582_v44 = vor.u32 %v6479_v38, %v4581_v37  ;;  %3438 = vmatpush.bf16.msra.mxu3 %v4854_v36 }
  0x43   : > { %v4837_v42 = vld [vmem:[%s7348_s25 + $0x3a0] sm:$0xf]  ;;  %v6543_v43 = vld [vmem:[%s7348_s25 + $0x3ac] sm:$0xf0]  ;;  %v4710_v45 = vor.u32 %v6511_v41, %v4709_v39  ;;  %3400 = vmatpush.bf16.msra.mxu0 %v4454_v40 }
  0x44   : > { %v4437_v46 = vld [vmem:[%s7348_s25 + $0x80] sm:$0xf]  ;;  %v6443_v47 = vld [vmem:[%s7348_s25 + $0x8c] sm:$0xf0]  ;;  %v4838_v49 = vor.u32 %v6543_v43, %v4837_v42  ;;  %3413 = vmatpush.bf16.msra.mxu1 %v4582_v44 }
  0x45   : > { %v4565_v48 = vld [vmem:[%s7348_s25 + $0x180] sm:$0xf]  ;;  %v6475_v50 = vld [vmem:[%s7348_s25 + $0x18c] sm:$0xf0]  ;;  %v4438_v55 = vor.u32 %v6443_v47, %v4437_v46  ;;  %3426 = vmatpush.bf16.msra.mxu2 %v4710_v45 }
  0x46   : > { %v4693_v51 = vld [vmem:[%s7348_s25 + $0x280] sm:$0xf]  ;;  %v6507_v52 = vld [vmem:[%s7348_s25 + $0x28c] sm:$0xf0]  ;;  %v4566_v56 = vor.u32 %v6475_v50, %v4565_v48  ;;  %3439 = vmatpush.bf16.msra.mxu3 %v4838_v49 }
  0x47   : > { %v4821_v53 = vld [vmem:[%s7348_s25 + $0x380] sm:$0xf]  ;;  %v6539_v54 = vld [vmem:[%s7348_s25 + $0x38c] sm:$0xf0]  ;;  %v4694_v57 = vor.u32 %v6507_v52, %v4693_v51  ;;  %3401 = vmatpush.bf16.msra.mxu0 %v4438_v55 }
  0x48   : > { %v4421_v58 = vld [vmem:[%s7348_s25 + $0x60] sm:$0xf]  ;;  %v6439_v59 = vld [vmem:[%s7348_s25 + $0x6c] sm:$0xf0]  ;;  %v4822_v61 = vor.u32 %v6539_v54, %v4821_v53  ;;  %3414 = vmatpush.bf16.msra.mxu1 %v4566_v56 }
  0x49   : > { %v4549_v60 = vld [vmem:[%s7348_s25 + $0x160] sm:$0xf]  ;;  %v6471_v62 = vld [vmem:[%s7348_s25 + $0x16c] sm:$0xf0]  ;;  %v4422_v3 = vor.u32 %v6439_v59, %v4421_v58  ;;  %3427 = vmatpush.bf16.msra.mxu2 %v4694_v57 }
  0x4a   : > { %v4677_v63 = vld [vmem:[%s7348_s25 + $0x260] sm:$0xf]  ;;  %v6503_v0 = vld [vmem:[%s7348_s25 + $0x26c] sm:$0xf0]  ;;  %v4550_v4 = vor.u32 %v6471_v62, %v4549_v60  ;;  %3440 = vmatpush.bf16.msra.mxu3 %v4822_v61 }
  0x4b   : > { %v4805_v1 = vld [vmem:[%s7348_s25 + $0x360] sm:$0xf]  ;;  %v6535_v2 = vld [vmem:[%s7348_s25 + $0x36c] sm:$0xf0]  ;;  %v4678_v5 = vor.u32 %v6503_v0, %v4677_v63  ;;  %3402 = vmatpush.bf16.msra.mxu0 %v4422_v3 }
  0x4c   : > { %v4405_v6 = vld [vmem:[%s7348_s25 + $0x40] sm:$0xf]  ;;  %v6435_v7 = vld [vmem:[%s7348_s25 + $0x4c] sm:$0xf0]  ;;  %v4806_v9 = vor.u32 %v6535_v2, %v4805_v1  ;;  %3415 = vmatpush.bf16.msra.mxu1 %v4550_v4 }
  0x4d   : > { %v4533_v8 = vld [vmem:[%s7348_s25 + $0x140] sm:$0xf]  ;;  %v6467_v10 = vld [vmem:[%s7348_s25 + $0x14c] sm:$0xf0]  ;;  %v4406_v15 = vor.u32 %v6435_v7, %v4405_v6  ;;  %3428 = vmatpush.bf16.msra.mxu2 %v4678_v5 }
  0x4e   : > { %v4661_v11 = vld [vmem:[%s7348_s25 + $0x240] sm:$0xf]  ;;  %v6499_v12 = vld [vmem:[%s7348_s25 + $0x24c] sm:$0xf0]  ;;  %v4534_v16 = vor.u32 %v6467_v10, %v4533_v8  ;;  %3441 = vmatpush.bf16.msra.mxu3 %v4806_v9 }
  0x4f   : > { %v4789_v13 = vld [vmem:[%s7348_s25 + $0x340] sm:$0xf]  ;;  %v6531_v14 = vld [vmem:[%s7348_s25 + $0x34c] sm:$0xf0]  ;;  %v4662_v17 = vor.u32 %v6499_v12, %v4661_v11  ;;  %3403 = vmatpush.bf16.msra.mxu0 %v4406_v15 }
  0x50   : > { %v4389_v18 = vld [vmem:[%s7348_s25 + $0x20] sm:$0xf]  ;;  %v6431_v19 = vld [vmem:[%s7348_s25 + $0x2c] sm:$0xf0]  ;;  %v4790_v21 = vor.u32 %v6531_v14, %v4789_v13  ;;  %3416 = vmatpush.bf16.msra.mxu1 %v4534_v16 }
  0x51   : > { %v4517_v20 = vld [vmem:[%s7348_s25 + $0x120] sm:$0xf]  ;;  %v6463_v22 = vld [vmem:[%s7348_s25 + $0x12c] sm:$0xf0]  ;;  %v4390_v27 = vor.u32 %v6431_v19, %v4389_v18  ;;  %3429 = vmatpush.bf16.msra.mxu2 %v4662_v17 }
  0x52   : > { %v4645_v23 = vld [vmem:[%s7348_s25 + $0x220] sm:$0xf]  ;;  %v6495_v24 = vld [vmem:[%s7348_s25 + $0x22c] sm:$0xf0]  ;;  %v4518_v30 = vor.u32 %v6463_v22, %v4517_v20  ;;  %3442 = vmatpush.bf16.msra.mxu3 %v4790_v21 }
  0x53   : > { %v4773_v25 = vld [vmem:[%s7348_s25 + $0x320] sm:$0xf]  ;;  %v6527_v26 = vld [vmem:[%s7348_s25 + $0x32c] sm:$0xf0]  ;;  %v4646_v31 = vor.u32 %v6495_v24, %v4645_v23  ;;  %3404 = vmatpush.bf16.msra.mxu0 %v4390_v27 }
  0x54   : > { %v4373_v28 = vld [vmem:[%s7348_s25] sm:$0xf]  ;;  %v6427_v29 = vld [vmem:[%s7348_s25 + $0xc] sm:$0xf0]  ;;  %v4774_v35 = vor.u32 %v6527_v26, %v4773_v25  ;;  %3417 = vmatpush.bf16.msra.mxu1 %v4518_v30 }
  0x55   : > { %v4501_v32 = vld [vmem:[%s7348_s25 + $0x100] sm:$0xf]  ;;  %v6459_v33 = vld [vmem:[%s7348_s25 + $0x10c] sm:$0xf0]  ;;  %v4374_v42 = vor.u32 %v6427_v29, %v4373_v28  ;;  %3430 = vmatpush.bf16.msra.mxu2 %v4646_v31 }
  0x56   : > { %v4629_v34 = vld [vmem:[%s7348_s25 + $0x200] sm:$0xf]  ;;  %v6491_v36 = vld [vmem:[%s7348_s25 + $0x20c] sm:$0xf0]  ;;  %v4502_v46 = vor.u32 %v6459_v33, %v4501_v32  ;;  %3443 = vmatpush.bf16.msra.mxu3 %v4774_v35 }
  0x57   : > { %v4757_v37 = vld [vmem:[%s7348_s25 + $0x300] sm:$0xf]  ;;  %v6523_v38 = vld [vmem:[%s7348_s25 + $0x30c] sm:$0xf0]  ;;  %v4630_v47 = vor.u32 %v6491_v36, %v4629_v34  ;;  %3405 = vmatpush.bf16.msra.mxu0 %v4374_v42 }
  0x58   : > { %v4997_v39 = vld [vmem:[%s7348_s25 + $0x4e0] sm:$0xf]  ;;  %v6583_v40 = vld [vmem:[%s7348_s25 + $0x4ec] sm:$0xf0]  ;;  %v4758_v50 = vor.u32 %v6523_v38, %v4757_v37  ;;  %3418 = vmatpush.bf16.msra.mxu1 %v4502_v46 }
  0x59   : > { %v5125_v41 = vld [vmem:[%s7348_s25 + $0x5e0] sm:$0xf]  ;;  %v6615_v43 = vld [vmem:[%s7348_s25 + $0x5ec] sm:$0xf0]  ;;  %v4998_v51 = vor.u32 %v6583_v40, %v4997_v39  ;;  %3431 = vmatpush.bf16.msra.mxu2 %v4630_v47 }
  0x5a   : > { %v5253_v44 = vld [vmem:[%s7348_s25 + $0x6e0] sm:$0xf]  ;;  %v6647_v45 = vld [vmem:[%s7348_s25 + $0x6ec] sm:$0xf0]  ;;  %v5126_v52 = vor.u32 %v6615_v43, %v5125_v41  ;;  %3444 = vmatpush.bf16.msra.mxu3 %v4758_v50 }
  0x5b   : > { %v5381_v48 = vld [vmem:[%s7348_s25 + $0x7e0] sm:$0xf]  ;;  %v6679_v49 = vld [vmem:[%s7348_s25 + $0x7ec] sm:$0xf0]  ;;  %v5254_v53 = vor.u32 %v6647_v45, %v5253_v44  ;;  %3450 = vmatpush.bf16.msrb.mxu0 %v4998_v51 }
  0x5c   : > { %v4981_v54 = vld [vmem:[%s7348_s25 + $0x4c0] sm:$0xf]  ;;  %v6579_v55 = vld [vmem:[%s7348_s25 + $0x4cc] sm:$0xf0]  ;;  %v5382_v57 = vor.u32 %v6679_v49, %v5381_v48  ;;  %3463 = vmatpush.bf16.msrb.mxu1 %v5126_v52 }
  0x5d   : > { %v5109_v56 = vld [vmem:[%s7348_s25 + $0x5c0] sm:$0xf]  ;;  %v6611_v58 = vld [vmem:[%s7348_s25 + $0x5cc] sm:$0xf0]  ;;  %v4982_v63 = vor.u32 %v6579_v55, %v4981_v54  ;;  %3476 = vmatpush.bf16.msrb.mxu2 %v5254_v53 }
  0x5e   : > { %v5237_v59 = vld [vmem:[%s7348_s25 + $0x6c0] sm:$0xf]  ;;  %v6643_v60 = vld [vmem:[%s7348_s25 + $0x6cc] sm:$0xf0]  ;;  %v5110_v2 = vor.u32 %v6611_v58, %v5109_v56  ;;  %3489 = vmatpush.bf16.msrb.mxu3 %v5382_v57 }
  0x5f   : > { %v5365_v61 = vld [vmem:[%s7348_s25 + $0x7c0] sm:$0xf]  ;;  %v6675_v62 = vld [vmem:[%s7348_s25 + $0x7cc] sm:$0xf0]  ;;  %v5238_v3 = vor.u32 %v6643_v60, %v5237_v59  ;;  %3451 = vmatpush.bf16.msrb.mxu0 %v4982_v63 }
  0x60   : > { %v4965_v0 = vld [vmem:[%s7348_s25 + $0x4a0] sm:$0xf]  ;;  %v6575_v1 = vld [vmem:[%s7348_s25 + $0x4ac] sm:$0xf0]  ;;  %v5366_v7 = vor.u32 %v6675_v62, %v5365_v61  ;;  %3464 = vmatpush.bf16.msrb.mxu1 %v5110_v2 }
  0x61   : > { %v5093_v4 = vld [vmem:[%s7348_s25 + $0x5a0] sm:$0xf]  ;;  %v6607_v5 = vld [vmem:[%s7348_s25 + $0x5ac] sm:$0xf0]  ;;  %v4966_v12 = vor.u32 %v6575_v1, %v4965_v0  ;;  %3477 = vmatpush.bf16.msrb.mxu2 %v5238_v3 }
  0x62   : > { %v288_v6 = vld [vmem:[%s7341_s21] sm:$0xff]  ;;  %v5094_v13 = vor.u32 %v6607_v5, %v5093_v4  ;;  %3490 = vmatpush.bf16.msrb.mxu3 %v5366_v7 }
  0x63   : > { %v5221_v8 = vld [vmem:[%s7348_s25 + $0x6a0] sm:$0xf]  ;;  %v6639_v9 = vld [vmem:[%s7348_s25 + $0x6ac] sm:$0xf0]  ;;  %803 = vst [vmem:[#allocation1] ss:$9 sm:$0xff] %v288_v6  ;;  %3452 = vmatpush.bf16.msrb.mxu0 %v4966_v12 }
  0x64   : > { %v5349_v10 = vld [vmem:[%s7348_s25 + $0x7a0] sm:$0xf]  ;;  %v6671_v11 = vld [vmem:[%s7348_s25 + $0x7ac] sm:$0xf0]  ;;  %v5222_v14 = vor.u32 %v6639_v9, %v5221_v8  ;;  %3465 = vmatpush.bf16.msrb.mxu1 %v5094_v13  ;;  %v289_v8 = vld [vmem:[%s7341_s21 + $0x8] sm:$0xff] }
  0x65   : > { %v4949_v15 = vld [vmem:[%s7348_s25 + $0x480] sm:$0xf]  ;;  %v6571_v16 = vld [vmem:[%s7348_s25 + $0x48c] sm:$0xf0]  ;;  %v5350_v18 = vor.u32 %v6671_v11, %v5349_v10 }
  0x66   : > { %v5077_v17 = vld [vmem:[%s7348_s25 + $0x580] sm:$0xf]  ;;  %v6603_v19 = vld [vmem:[%s7348_s25 + $0x58c] sm:$0xf0]  ;;  %v4950_v25 = vor.u32 %v6571_v16, %v4949_v15  ;;  %3478 = vmatpush.bf16.msrb.mxu2 %v5222_v14 }
  0x67   : > { %v5205_v20 = vld [vmem:[%s7348_s25 + $0x680] sm:$0xf]  ;;  %v6635_v21 = vld [vmem:[%s7348_s25 + $0x68c] sm:$0xf0]  ;;  %v5078_v29 = vor.u32 %v6603_v19, %v5077_v17  ;;  %3491 = vmatpush.bf16.msrb.mxu3 %v5350_v18 }
  0x68   : > { %v5333_v22 = vld [vmem:[%s7348_s25 + $0x780] sm:$0xf]  ;;  %v6667_v23 = vld [vmem:[%s7348_s25 + $0x78c] sm:$0xf0]  ;;  %v5206_v30 = vor.u32 %v6635_v21, %v5205_v20  ;;  %3453 = vmatpush.bf16.msrb.mxu0 %v4950_v25 }
  0x69   : > { %v4933_v24 = vld [vmem:[%s7348_s25 + $0x460] sm:$0xf]  ;;  %v6567_v26 = vld [vmem:[%s7348_s25 + $0x46c] sm:$0xf0]  ;;  %v5334_v34 = vor.u32 %v6667_v23, %v5333_v22  ;;  %3466 = vmatpush.bf16.msrb.mxu1 %v5078_v29 }
  0x6a   : > { %v5061_v27 = vld [vmem:[%s7348_s25 + $0x560] sm:$0xf]  ;;  %v6599_v28 = vld [vmem:[%s7348_s25 + $0x56c] sm:$0xf0]  ;;  %v7462_v32 = vld [vmem:[#allocation1] sm:$0xff]  ;;  %v4934_v40 = vor.u32 %v6567_v26, %v4933_v24  ;;  %3479 = vmatpush.bf16.msrb.mxu2 %v5206_v30 }
  0x6b   : > { %v7460_v31 = vld [vmem:[#allocation1 + $0x12] sm:$0xff]  ;;  %v7464_v33 = vld [vmem:[#allocation1 + $0x1b] sm:$0xff]  ;;  %v5189_v35 = vld [vmem:[%s7348_s25 + $0x660] sm:$0xf]  ;;  %3406 = vmatmul.bf16.vlgmr.msra.gmra.mxu0 %v7462_v32  ;;  %v5062_v41 = vor.u32 %v6599_v28, %v5061_v27  ;;  %3492 = vmatpush.bf16.msrb.mxu3 %v5334_v34 }
  0x6c   : > { %v6631_v36 = vld [vmem:[%s7348_s25 + $0x66c] sm:$0xf0]  ;;  %3432 = vmatmul.bf16.vlgmr.msra.gmra.mxu2 %v7460_v31  ;;  %v7469_v37 = vld [vmem:[#allocation1 + $0x9] sm:$0xff]  ;;  %3445 = vmatmul.bf16.vlgmr.msra.gmra.mxu3 %v7464_v33  ;;  %v7503_v12 = vld [vmem:[#allocation1 + $0x3f] sm:$0xff] }
  0x6d   : > { %v5317_v38 = vld [vmem:[%s7348_s25 + $0x760] sm:$0xf]  ;;  %v6663_v39 = vld [vmem:[%s7348_s25 + $0x76c] sm:$0xf0]  ;;  %3419 = vmatmul.bf16.vlgmr.msra.gmra.mxu1 %v7469_v37  ;;  %v5190_v42 = vor.u32 %v6631_v36, %v5189_v35  ;;  %3454 = vmatpush.bf16.msrb.mxu0 %v4934_v40  ;;  %v7505_v13 = vld [vmem:[#allocation1 + $0x2d] sm:$0xff] }
  0x6e   : > { %v4917_v43 = vld [vmem:[%s7348_s25 + $0x440] sm:$0xf]  ;;  %v6563_v44 = vld [vmem:[%s7348_s25 + $0x44c] sm:$0xf0]  ;;  %v5318_v46 = vor.u32 %v6663_v39, %v5317_v38  ;;  %3467 = vmatpush.bf16.msrb.mxu1 %v5062_v41 }
  0x6f   : > { %v5045_v45 = vld [vmem:[%s7348_s25 + $0x540] sm:$0xf]  ;;  %v6595_v47 = vld [vmem:[%s7348_s25 + $0x54c] sm:$0xf0]  ;;  %v4918_v52 = vor.u32 %v6563_v44, %v4917_v43  ;;  %3480 = vmatpush.bf16.msrb.mxu2 %v5190_v42 }
  0x70   : > { %v5173_v48 = vld [vmem:[%s7348_s25 + $0x640] sm:$0xf]  ;;  %v6627_v49 = vld [vmem:[%s7348_s25 + $0x64c] sm:$0xf0]  ;;  %v5046_v54 = vor.u32 %v6595_v47, %v5045_v45  ;;  %3493 = vmatpush.bf16.msrb.mxu3 %v5318_v46 }
  0x71   : > { %v5301_v50 = vld [vmem:[%s7348_s25 + $0x740] sm:$0xf]  ;;  %v6659_v51 = vld [vmem:[%s7348_s25 + $0x74c] sm:$0xf0]  ;;  %v5174_v55 = vor.u32 %v6627_v49, %v5173_v48  ;;  %3455 = vmatpush.bf16.msrb.mxu0 %v4918_v52 }
  0x72   : > { %v4901_v53 = vld [vmem:[%s7348_s25 + $0x420] sm:$0xf]  ;;  %v6559_v56 = vld [vmem:[%s7348_s25 + $0x42c] sm:$0xf0]  ;;  %v5302_v59 = vor.u32 %v6659_v51, %v5301_v50  ;;  %3468 = vmatpush.bf16.msrb.mxu1 %v5046_v54 }
  0x73   : > { %v5029_v57 = vld [vmem:[%s7348_s25 + $0x520] sm:$0xf]  ;;  %v6591_v58 = vld [vmem:[%s7348_s25 + $0x52c] sm:$0xf0]  ;;  %v4902_v2 = vor.u32 %v6559_v56, %v4901_v53  ;;  %3481 = vmatpush.bf16.msrb.mxu2 %v5174_v55 }
  0x74   : > { %v5157_v60 = vld [vmem:[%s7348_s25 + $0x620] sm:$0xf]  ;;  %v6623_v61 = vld [vmem:[%s7348_s25 + $0x62c] sm:$0xf0]  ;;  %v5030_v9 = vor.u32 %v6591_v58, %v5029_v57  ;;  %3494 = vmatpush.bf16.msrb.mxu3 %v5302_v59 }
  0x75   : > { %v5285_v62 = vld [vmem:[%s7348_s25 + $0x720] sm:$0xf]  ;;  %v6655_v63 = vld [vmem:[%s7348_s25 + $0x72c] sm:$0xf0]  ;;  %v5158_v10 = vor.u32 %v6623_v61, %v5157_v60  ;;  %3456 = vmatpush.bf16.msrb.mxu0 %v4902_v2 }
  0x76   : > { %v4885_v0 = vld [vmem:[%s7348_s25 + $0x400] sm:$0xf]  ;;  %v6555_v1 = vld [vmem:[%s7348_s25 + $0x40c] sm:$0xf0]  ;;  %v5286_v14 = vor.u32 %v6655_v63, %v5285_v62  ;;  %3469 = vmatpush.bf16.msrb.mxu1 %v5030_v9 }
  0x77   : > { %v5013_v3 = vld [vmem:[%s7348_s25 + $0x500] sm:$0xf]  ;;  %v6587_v4 = vld [vmem:[%s7348_s25 + $0x50c] sm:$0xf0]  ;;  %v4886_v20 = vor.u32 %v6555_v1, %v4885_v0  ;;  %3482 = vmatpush.bf16.msrb.mxu2 %v5158_v10 }
  0x78   : > { %v5141_v5 = vld [vmem:[%s7348_s25 + $0x600] sm:$0xf]  ;;  %v6619_v6 = vld [vmem:[%s7348_s25 + $0x60c] sm:$0xf0]  ;;  %v5014_v24 = vor.u32 %v6587_v4, %v5013_v3  ;;  %3495 = vmatpush.bf16.msrb.mxu3 %v5286_v14 }
  0x79   : > { %v7498_v7 = vld [vmem:[#allocation1 + $0x36] sm:$0xff]  ;;  %v7501_v11 = vld [vmem:[#allocation1 + $0x24] sm:$0xff]  ;;  %v5142_v25 = vor.u32 %v6619_v6, %v5141_v5  ;;  %3457 = vmatpush.bf16.msrb.mxu0 %v4886_v20 }
  0x7a   : > { %v5269_v15 = vld [vmem:[%s7348_s25 + $0x700] sm:$0xf]  ;;  %v6651_v16 = vld [vmem:[%s7348_s25 + $0x70c] sm:$0xf0]  ;;  %813 = vst [vmem:[#allocation1] ss:$9 sm:$0xff] %v289_v8  ;;  %3470 = vmatpush.bf16.msrb.mxu1 %v5014_v24 }
  0x7b   : > { %v5509_v17 = vld [vmem:[%s7348_s25 + $0x8e0] sm:$0xf]  ;;  %v6711_v18 = vld [vmem:[%s7348_s25 + $0x8ec] sm:$0xf0]  ;;  %v5270_v28 = vor.u32 %v6651_v16, %v5269_v15  ;;  %3483 = vmatpush.bf16.msrb.mxu2 %v5142_v25 }
  0x7c   : > { %v5637_v19 = vld [vmem:[%s7348_s25 + $0x9e0] sm:$0xf]  ;;  %v6743_v21 = vld [vmem:[%s7348_s25 + $0x9ec] sm:$0xf0]  ;;  %v5510_v29 = vor.u32 %v6711_v18, %v5509_v17  ;;  %3458 = vmatmul.bf16.vlgmr.msrb.gmra.mxu0 %v7501_v11 }
  0x7d   : > { %v5765_v22 = vld [vmem:[%s7348_s25 + $0xae0] sm:$0xf]  ;;  %v6775_v23 = vld [vmem:[%s7348_s25 + $0xaec] sm:$0xf0]  ;;  %v5638_v30 = vor.u32 %v6743_v21, %v5637_v19  ;;  %3496 = vmatpush.bf16.msrb.mxu3 %v5270_v28  ;;  %3471 = vmatmul.bf16.vlgmr.msrb.gmra.mxu1 %v7505_v13 }
  0x7e   : > { %v5893_v26 = vld [vmem:[%s7348_s25 + $0xbe0] sm:$0xf]  ;;  %v6807_v27 = vld [vmem:[%s7348_s25 + $0xbec] sm:$0xf0]  ;;  %v5766_v34 = vor.u32 %v6775_v23, %v5765_v22  ;;  %3502 = vmatpush.bf16.msra.mxu0 %v5510_v29  ;;  %3484 = vmatmul.bf16.vlgmr.msrb.gmra.mxu2 %v7498_v7 }
  0x7f   : > { %v5493_v35 = vld [vmem:[%s7348_s25 + $0x8c0] sm:$0xf]  ;;  %v6707_v36 = vld [vmem:[%s7348_s25 + $0x8cc] sm:$0xf0]  ;;  %v5894_v39 = vor.u32 %v6807_v27, %v5893_v26  ;;  %3515 = vmatpush.bf16.msra.mxu1 %v5638_v30 }
  0x80   : > { %v5621_v38 = vld [vmem:[%s7348_s25 + $0x9c0] sm:$0xf]  ;;  %v6739_v40 = vld [vmem:[%s7348_s25 + $0x9cc] sm:$0xf0]  ;;  %v5494_v45 = vor.u32 %v6707_v36, %v5493_v35  ;;  %3528 = vmatpush.bf16.msra.mxu2 %v5766_v34  ;;  %3497 = vmatmul.bf16.vlgmr.msrb.gmra.mxu3 %v7503_v12 }
  0x81   : > { %v5749_v41 = vld [vmem:[%s7348_s25 + $0xac0] sm:$0xf]  ;;  %v6771_v42 = vld [vmem:[%s7348_s25 + $0xacc] sm:$0xf0]  ;;  %v5622_v46 = vor.u32 %v6739_v40, %v5621_v38  ;;  %3541 = vmatpush.bf16.msra.mxu3 %v5894_v39 }
  0x82   : > { %v5877_v43 = vld [vmem:[%s7348_s25 + $0xbc0] sm:$0xf]  ;;  %v6803_v44 = vld [vmem:[%s7348_s25 + $0xbcc] sm:$0xf0]  ;;  %v5750_v47 = vor.u32 %v6771_v42, %v5749_v41  ;;  %3503 = vmatpush.bf16.msra.mxu0 %v5494_v45 }
  0x83   : > { %v5477_v48 = vld [vmem:[%s7348_s25 + $0x8a0] sm:$0xf]  ;;  %v6703_v49 = vld [vmem:[%s7348_s25 + $0x8ac] sm:$0xf0]  ;;  %v5878_v51 = vor.u32 %v6803_v44, %v5877_v43  ;;  %3516 = vmatpush.bf16.msra.mxu1 %v5622_v46 }
  0x84   : > { %v5605_v50 = vld [vmem:[%s7348_s25 + $0x9a0] sm:$0xf]  ;;  %v6735_v52 = vld [vmem:[%s7348_s25 + $0x9ac] sm:$0xf0]  ;;  %v5478_v57 = vor.u32 %v6703_v49, %v5477_v48  ;;  %3529 = vmatpush.bf16.msra.mxu2 %v5750_v47 }
  0x85   : > { %v5733_v53 = vld [vmem:[%s7348_s25 + $0xaa0] sm:$0xf]  ;;  %v6767_v54 = vld [vmem:[%s7348_s25 + $0xaac] sm:$0xf0]  ;;  %v5606_v58 = vor.u32 %v6735_v52, %v5605_v50  ;;  %3542 = vmatpush.bf16.msra.mxu3 %v5878_v51 }
  0x86   : > { %v5861_v55 = vld [vmem:[%s7348_s25 + $0xba0] sm:$0xf]  ;;  %v6799_v56 = vld [vmem:[%s7348_s25 + $0xbac] sm:$0xf0]  ;;  %v5734_v59 = vor.u32 %v6767_v54, %v5733_v53  ;;  %3504 = vmatpush.bf16.msra.mxu0 %v5478_v57 }
  0x87   : > { %v5461_v60 = vld [vmem:[%s7348_s25 + $0x880] sm:$0xf]  ;;  %v6699_v61 = vld [vmem:[%s7348_s25 + $0x88c] sm:$0xf0]  ;;  %v5862_v63 = vor.u32 %v6799_v56, %v5861_v55  ;;  %3517 = vmatpush.bf16.msra.mxu1 %v5606_v58 }
  0x88   : > { %v5589_v62 = vld [vmem:[%s7348_s25 + $0x980] sm:$0xf]  ;;  %v6731_v0 = vld [vmem:[%s7348_s25 + $0x98c] sm:$0xf0]  ;;  %v5462_v5 = vor.u32 %v6699_v61, %v5461_v60  ;;  %3530 = vmatpush.bf16.msra.mxu2 %v5734_v59 }
  0x89   : > { %v5717_v1 = vld [vmem:[%s7348_s25 + $0xa80] sm:$0xf]  ;;  %v6763_v2 = vld [vmem:[%s7348_s25 + $0xa8c] sm:$0xf0]  ;;  %v5590_v6 = vor.u32 %v6731_v0, %v5589_v62  ;;  %3543 = vmatpush.bf16.msra.mxu3 %v5862_v63 }
  0x8a   : > { %v5845_v3 = vld [vmem:[%s7348_s25 + $0xb80] sm:$0xf]  ;;  %v6795_v4 = vld [vmem:[%s7348_s25 + $0xb8c] sm:$0xf0]  ;;  %v5718_v8 = vor.u32 %v6763_v2, %v5717_v1  ;;  %3505 = vmatpush.bf16.msra.mxu0 %v5462_v5 }
  0x8b   : > { %v5445_v9 = vld [vmem:[%s7348_s25 + $0x860] sm:$0xf]  ;;  %v6695_v10 = vld [vmem:[%s7348_s25 + $0x86c] sm:$0xf0]  ;;  %v5846_v15 = vor.u32 %v6795_v4, %v5845_v3  ;;  %3518 = vmatpush.bf16.msra.mxu1 %v5590_v6 }
  0x8c   : > { %v5573_v14 = vld [vmem:[%s7348_s25 + $0x960] sm:$0xf]  ;;  %v6727_v16 = vld [vmem:[%s7348_s25 + $0x96c] sm:$0xf0]  ;;  %v5446_v21 = vor.u32 %v6695_v10, %v5445_v9  ;;  %3531 = vmatpush.bf16.msra.mxu2 %v5718_v8 }
  0x8d   : > { %v5701_v17 = vld [vmem:[%s7348_s25 + $0xa60] sm:$0xf]  ;;  %v6759_v18 = vld [vmem:[%s7348_s25 + $0xa6c] sm:$0xf0]  ;;  %v5574_v22 = vor.u32 %v6727_v16, %v5573_v14  ;;  %3544 = vmatpush.bf16.msra.mxu3 %v5846_v15 }
  0x8e   : > { %v5829_v19 = vld [vmem:[%s7348_s25 + $0xb60] sm:$0xf]  ;;  %v6791_v20 = vld [vmem:[%s7348_s25 + $0xb6c] sm:$0xf0]  ;;  %v5702_v23 = vor.u32 %v6759_v18, %v5701_v17  ;;  %3506 = vmatpush.bf16.msra.mxu0 %v5446_v21 }
  0x8f   : > { %v5429_v24 = vld [vmem:[%s7348_s25 + $0x840] sm:$0xf]  ;;  %v6691_v25 = vld [vmem:[%s7348_s25 + $0x84c] sm:$0xf0]  ;;  %v5830_v27 = vor.u32 %v6791_v20, %v5829_v19  ;;  %3519 = vmatpush.bf16.msra.mxu1 %v5574_v22 }
  0x90   : > { %v5557_v26 = vld [vmem:[%s7348_s25 + $0x940] sm:$0xf]  ;;  %v6723_v28 = vld [vmem:[%s7348_s25 + $0x94c] sm:$0xf0]  ;;  %v5430_v36 = vor.u32 %v6691_v25, %v5429_v24  ;;  %3532 = vmatpush.bf16.msra.mxu2 %v5702_v23  ;;  %v814_v23 = vld [vmem:[#allocation1] sm:$0xff] }
  0x91   : > { %v5685_v29 = vld [vmem:[%s7348_s25 + $0xa40] sm:$0xf]  ;;  %v6755_v30 = vld [vmem:[%s7348_s25 + $0xa4c] sm:$0xf0]  ;;  %v5558_v38 = vor.u32 %v6723_v28, %v5557_v26  ;;  %3545 = vmatpush.bf16.msra.mxu3 %v5830_v27 }
  0x92   : > { %v5813_v34 = vld [vmem:[%s7348_s25 + $0xb40] sm:$0xf]  ;;  %v6787_v35 = vld [vmem:[%s7348_s25 + $0xb4c] sm:$0xf0]  ;;  %v5686_v39 = vor.u32 %v6755_v30, %v5685_v29  ;;  %3507 = vmatpush.bf16.msra.mxu0 %v5430_v36 }
  0x93   : > { %v5413_v40 = vld [vmem:[%s7348_s25 + $0x820] sm:$0xf]  ;;  %v6687_v41 = vld [vmem:[%s7348_s25 + $0x82c] sm:$0xf0]  ;;  %v5814_v43 = vor.u32 %v6787_v35, %v5813_v34  ;;  %3520 = vmatpush.bf16.msra.mxu1 %v5558_v38 }
  0x94   : > { %v5541_v42 = vld [vmem:[%s7348_s25 + $0x920] sm:$0xf]  ;;  %v6719_v44 = vld [vmem:[%s7348_s25 + $0x92c] sm:$0xf0]  ;;  %v5414_v49 = vor.u32 %v6687_v41, %v5413_v40  ;;  %3533 = vmatpush.bf16.msra.mxu2 %v5686_v39 }
  0x95   : > { %v5669_v45 = vld [vmem:[%s7348_s25 + $0xa20] sm:$0xf]  ;;  %v6751_v46 = vld [vmem:[%s7348_s25 + $0xa2c] sm:$0xf0]  ;;  %v5542_v52 = vor.u32 %v6719_v44, %v5541_v42  ;;  %3546 = vmatpush.bf16.msra.mxu3 %v5814_v43 }
  0x96   : > { %v5797_v47 = vld [vmem:[%s7348_s25 + $0xb20] sm:$0xf]  ;;  %v6783_v48 = vld [vmem:[%s7348_s25 + $0xb2c] sm:$0xf0]  ;;  %v5670_v53 = vor.u32 %v6751_v46, %v5669_v45  ;;  %3508 = vmatpush.bf16.msra.mxu0 %v5414_v49 }
  0x97   : > { %v5397_v50 = vld [vmem:[%s7348_s25 + $0x800] sm:$0xf]  ;;  %v6683_v51 = vld [vmem:[%s7348_s25 + $0x80c] sm:$0xf0]  ;;  %v5798_v57 = vor.u32 %v6783_v48, %v5797_v47  ;;  %3521 = vmatpush.bf16.msra.mxu1 %v5542_v52 }
  0x98   : > { %v5525_v54 = vld [vmem:[%s7348_s25 + $0x900] sm:$0xf]  ;;  %v6715_v55 = vld [vmem:[%s7348_s25 + $0x90c] sm:$0xf0]  ;;  %v5398_v0 = vor.u32 %v6683_v51, %v5397_v50  ;;  %3534 = vmatpush.bf16.msra.mxu2 %v5670_v53 }
  0x99   : > { %v5653_v56 = vld [vmem:[%s7348_s25 + $0xa00] sm:$0xf]  ;;  %v6747_v58 = vld [vmem:[%s7348_s25 + $0xa0c] sm:$0xf0]  ;;  %v5526_v4 = vor.u32 %v6715_v55, %v5525_v54  ;;  %3547 = vmatpush.bf16.msra.mxu3 %v5798_v57 }
  0x9a   : > { %v5781_v59 = vld [vmem:[%s7348_s25 + $0xb00] sm:$0xf]  ;;  %v6779_v60 = vld [vmem:[%s7348_s25 + $0xb0c] sm:$0xf0]  ;;  %v5654_v5 = vor.u32 %v6747_v58, %v5653_v56  ;;  %3509 = vmatpush.bf16.msra.mxu0 %v5398_v0 }
  0x9b   : > { %v6021_v61 = vld [vmem:[%s7348_s25 + $0xce0] sm:$0xf]  ;;  %v6839_v62 = vld [vmem:[%s7348_s25 + $0xcec] sm:$0xf0]  ;;  %v5782_v9 = vor.u32 %v6779_v60, %v5781_v59  ;;  %3522 = vmatpush.bf16.msra.mxu1 %v5526_v4 }
  0x9c   : > { %v6149_v63 = vld [vmem:[%s7348_s25 + $0xde0] sm:$0xf]  ;;  %v6871_v1 = vld [vmem:[%s7348_s25 + $0xdec] sm:$0xf0]  ;;  %v6022_v10 = vor.u32 %v6839_v62, %v6021_v61  ;;  %3535 = vmatpush.bf16.msra.mxu2 %v5654_v5 }
  0x9d   : > { %v6277_v2 = vld [vmem:[%s7348_s25 + $0xee0] sm:$0xf]  ;;  %v6903_v3 = vld [vmem:[%s7348_s25 + $0xeec] sm:$0xf0]  ;;  %v6150_v14 = vor.u32 %v6871_v1, %v6149_v63  ;;  %3548 = vmatpush.bf16.msra.mxu3 %v5782_v9  ;;  %3510 = vmatmul.bf16.vlgmr.msra.gmra.mxu0 %v814_v23 }
  0x9e   : > { %v6405_v6 = vld [vmem:[%s7348_s25 + $0xfe0] sm:$0xf]  ;;  %v6935_v8 = vld [vmem:[%s7348_s25 + $0xfec] sm:$0xf0]  ;;  %v6278_v15 = vor.u32 %v6903_v3, %v6277_v2  ;;  %3554 = vmatpush.bf16.msrb.mxu0 %v6022_v10 }
  0x9f   : > { %v6005_v16 = vld [vmem:[%s7348_s25 + $0xcc0] sm:$0xf]  ;;  %v6835_v17 = vld [vmem:[%s7348_s25 + $0xccc] sm:$0xf0]  ;;  %v6406_v19 = vor.u32 %v6935_v8, %v6405_v6  ;;  %3567 = vmatpush.bf16.msrb.mxu1 %v6150_v14 }
  0xa0   : > { %v6133_v18 = vld [vmem:[%s7348_s25 + $0xdc0] sm:$0xf]  ;;  %v6867_v20 = vld [vmem:[%s7348_s25 + $0xdcc] sm:$0xf0]  ;;  %v6006_v29 = vor.u32 %v6835_v17, %v6005_v16  ;;  %3580 = vmatpush.bf16.msrb.mxu2 %v6278_v15 }
  0xa1   : > { %v6261_v21 = vld [vmem:[%s7348_s25 + $0xec0] sm:$0xf]  ;;  %v6899_v22 = vld [vmem:[%s7348_s25 + $0xecc] sm:$0xf0]  ;;  %v6134_v30 = vor.u32 %v6867_v20, %v6133_v18  ;;  %3593 = vmatpush.bf16.msrb.mxu3 %v6406_v19 }
  0xa2   : > { %v6389_v24 = vld [vmem:[%s7348_s25 + $0xfc0] sm:$0xf]  ;;  %v6931_v25 = vld [vmem:[%s7348_s25 + $0xfcc] sm:$0xf0]  ;;  %v6262_v34 = vor.u32 %v6899_v22, %v6261_v21  ;;  %3555 = vmatpush.bf16.msrb.mxu0 %v6006_v29 }
  0xa3   : > { %v816_v26 = vld [vmem:[#allocation1 + $0x12] sm:$0xff]  ;;  %v815_v27 = vld [vmem:[#allocation1 + $0x9] sm:$0xff]  ;;  %v817_v28 = vld [vmem:[#allocation1 + $0x1b] sm:$0xff]  ;;  %v6390_v39 = vor.u32 %v6931_v25, %v6389_v24  ;;  %3568 = vmatpush.bf16.msrb.mxu1 %v6134_v30 }
  0xa4   : > { %v5989_v35 = vld [vmem:[%s7348_s25 + $0xca0] sm:$0xf]  ;;  %v6831_v36 = vld [vmem:[%s7348_s25 + $0xcac] sm:$0xf0]  ;;  %3536 = vmatmul.bf16.vlgmr.msra.gmra.mxu2 %v816_v26  ;;  %3523 = vmatmul.bf16.vlgmr.msra.gmra.mxu1 %v815_v27 }
  0xa5   : > { %v6117_v38 = vld [vmem:[%s7348_s25 + $0xda0] sm:$0xf]  ;;  %v6863_v40 = vld [vmem:[%s7348_s25 + $0xdac] sm:$0xf0]  ;;  %3549 = vmatmul.bf16.vlgmr.msra.gmra.mxu3 %v817_v28  ;;  %v5990_v45 = vor.u32 %v6831_v36, %v5989_v35  ;;  %3581 = vmatpush.bf16.msrb.mxu2 %v6262_v34 }
  0xa6   : > { %v6245_v41 = vld [vmem:[%s7348_s25 + $0xea0] sm:$0xf]  ;;  %v6895_v42 = vld [vmem:[%s7348_s25 + $0xeac] sm:$0xf0]  ;;  %v6118_v46 = vor.u32 %v6863_v40, %v6117_v38  ;;  %3594 = vmatpush.bf16.msrb.mxu3 %v6390_v39 }
  0xa7   : > { %v6373_v43 = vld [vmem:[%s7348_s25 + $0xfa0] sm:$0xf]  ;;  %v6927_v44 = vld [vmem:[%s7348_s25 + $0xfac] sm:$0xf0]  ;;  %v6246_v47 = vor.u32 %v6895_v42, %v6245_v41  ;;  %3556 = vmatpush.bf16.msrb.mxu0 %v5990_v45 }
  0xa8   : > { %v5973_v48 = vld [vmem:[%s7348_s25 + $0xc80] sm:$0xf]  ;;  %v6827_v49 = vld [vmem:[%s7348_s25 + $0xc8c] sm:$0xf0]  ;;  %v6374_v51 = vor.u32 %v6927_v44, %v6373_v43  ;;  %3569 = vmatpush.bf16.msrb.mxu1 %v6118_v46 }
  0xa9   : > { %v6101_v50 = vld [vmem:[%s7348_s25 + $0xd80] sm:$0xf]  ;;  %v6859_v52 = vld [vmem:[%s7348_s25 + $0xd8c] sm:$0xf0]  ;;  %v5974_v57 = vor.u32 %v6827_v49, %v5973_v48  ;;  %3582 = vmatpush.bf16.msrb.mxu2 %v6246_v47  ;;  %v6453_v49 = vld [vmem:[%s7348_s25 + $0xe4] sm:$0xf] }
  0xaa   : > { %v6229_v53 = vld [vmem:[%s7348_s25 + $0xe80] sm:$0xf]  ;;  %v6891_v54 = vld [vmem:[%s7348_s25 + $0xe8c] sm:$0xf0]  ;;  %v6102_v58 = vor.u32 %v6859_v52, %v6101_v50  ;;  %3595 = vmatpush.bf16.msrb.mxu3 %v6374_v51  ;;  %v4487_v50 = vld [vmem:[%s7348_s25 + $0xf0] sm:$0xf0] }
  0xab   : > { %v6357_v55 = vld [vmem:[%s7348_s25 + $0xf80] sm:$0xf]  ;;  %v6923_v56 = vld [vmem:[%s7348_s25 + $0xf8c] sm:$0xf0]  ;;  %v6230_v59 = vor.u32 %v6891_v54, %v6229_v53  ;;  %3557 = vmatpush.bf16.msrb.mxu0 %v5974_v57  ;;  %v6485_v51 = vld [vmem:[%s7348_s25 + $0x1e4] sm:$0xf] }
  0xac   : > { %v5957_v60 = vld [vmem:[%s7348_s25 + $0xc60] sm:$0xf]  ;;  %v6823_v61 = vld [vmem:[%s7348_s25 + $0xc6c] sm:$0xf0]  ;;  %v6358_v63 = vor.u32 %v6923_v56, %v6357_v55  ;;  %3570 = vmatpush.bf16.msrb.mxu1 %v6102_v58  ;;  %v4615_v53 = vld [vmem:[%s7348_s25 + $0x1f0] sm:$0xf0] }
  0xad   : > { %v6085_v62 = vld [vmem:[%s7348_s25 + $0xd60] sm:$0xf]  ;;  %v6855_v0 = vld [vmem:[%s7348_s25 + $0xd6c] sm:$0xf0]  ;;  %v5958_v5 = vor.u32 %v6823_v61, %v5957_v60  ;;  %3583 = vmatpush.bf16.msrb.mxu2 %v6230_v59  ;;  %v6517_v54 = vld [vmem:[%s7348_s25 + $0x2e4] sm:$0xf]  ;;  %v4490_v61 = vor.u32 %v6453_v49, %v4487_v50 }
  0xae   : > { %v6213_v1 = vld [vmem:[%s7348_s25 + $0xe60] sm:$0xf]  ;;  %v6887_v2 = vld [vmem:[%s7348_s25 + $0xe6c] sm:$0xf0]  ;;  %v6086_v6 = vor.u32 %v6855_v0, %v6085_v62  ;;  %3596 = vmatpush.bf16.msrb.mxu3 %v6358_v63  ;;  %v4743_v55 = vld [vmem:[%s7348_s25 + $0x2f0] sm:$0xf0]  ;;  %v4618_v62 = vor.u32 %v6485_v51, %v4615_v53 }
  0xaf   : > { %v6341_v3 = vld [vmem:[%s7348_s25 + $0xf60] sm:$0xf]  ;;  %v6919_v4 = vld [vmem:[%s7348_s25 + $0xf6c] sm:$0xf0]  ;;  %v6214_v8 = vor.u32 %v6887_v2, %v6213_v1  ;;  %3558 = vmatpush.bf16.msrb.mxu0 %v5958_v5  ;;  %v6549_v58 = vld [vmem:[%s7348_s25 + $0x3e4] sm:$0xf]  ;;  %v4746_v63 = vor.u32 %v6517_v54, %v4743_v55 }
  0xb0   : > { %v5941_v9 = vld [vmem:[%s7348_s25 + $0xc40] sm:$0xf]  ;;  %v6819_v10 = vld [vmem:[%s7348_s25 + $0xc4c] sm:$0xf0]  ;;  %v6342_v15 = vor.u32 %v6919_v4, %v6341_v3  ;;  %3571 = vmatpush.bf16.msrb.mxu1 %v6086_v6  ;;  %v4871_v59 = vld [vmem:[%s7348_s25 + $0x3f0] sm:$0xf0] }
  0xb1   : > { %v6069_v14 = vld [vmem:[%s7348_s25 + $0xd40] sm:$0xf]  ;;  %v6851_v16 = vld [vmem:[%s7348_s25 + $0xd4c] sm:$0xf0]  ;;  %v5942_v21 = vor.u32 %v6819_v10, %v5941_v9  ;;  %3584 = vmatpush.bf16.msrb.mxu2 %v6214_v8  ;;  %v6449_v0 = vld [vmem:[%s7348_s25 + $0xc4] sm:$0xf]  ;;  %v4874_v3 = vor.u32 %v6549_v58, %v4871_v59 }
  0xb2   : > { %v6197_v17 = vld [vmem:[%s7348_s25 + $0xe40] sm:$0xf]  ;;  %v6883_v18 = vld [vmem:[%s7348_s25 + $0xe4c] sm:$0xf0]  ;;  %v6070_v22 = vor.u32 %v6851_v16, %v6069_v14  ;;  %3597 = vmatpush.bf16.msrb.mxu3 %v6342_v15  ;;  %v4471_v1 = vld [vmem:[%s7348_s25 + $0xd0] sm:$0xf0] }
  0xb3   : > { %v6325_v19 = vld [vmem:[%s7348_s25 + $0xf40] sm:$0xf]  ;;  %v6915_v20 = vld [vmem:[%s7348_s25 + $0xf4c] sm:$0xf0]  ;;  %v6198_v23 = vor.u32 %v6883_v18, %v6197_v17  ;;  %3559 = vmatpush.bf16.msrb.mxu0 %v5942_v21  ;;  %v6481_v2 = vld [vmem:[%s7348_s25 + $0x1c4] sm:$0xf]  ;;  %v4474_v17 = vor.u32 %v6449_v0, %v4471_v1 }
  0xb4   : > { %v5925_v24 = vld [vmem:[%s7348_s25 + $0xc20] sm:$0xf]  ;;  %v6815_v25 = vld [vmem:[%s7348_s25 + $0xc2c] sm:$0xf0]  ;;  %v6326_v27 = vor.u32 %v6915_v20, %v6325_v19  ;;  %3572 = vmatpush.bf16.msrb.mxu1 %v6070_v22  ;;  %v4599_v4 = vld [vmem:[%s7348_s25 + $0x1d0] sm:$0xf0] }
  0xb5   : > { %v6053_v26 = vld [vmem:[%s7348_s25 + $0xd20] sm:$0xf]  ;;  %v6847_v28 = vld [vmem:[%s7348_s25 + $0xd2c] sm:$0xf0]  ;;  %v5926_v36 = vor.u32 %v6815_v25, %v5925_v24  ;;  %3585 = vmatpush.bf16.msrb.mxu2 %v6198_v23  ;;  %v6513_v5 = vld [vmem:[%s7348_s25 + $0x2c4] sm:$0xf]  ;;  %v4602_v18 = vor.u32 %v6481_v2, %v4599_v4 }
  0xb6   : > { %v6181_v29 = vld [vmem:[%s7348_s25 + $0xe20] sm:$0xf]  ;;  %v6879_v30 = vld [vmem:[%s7348_s25 + $0xe2c] sm:$0xf0]  ;;  %v6054_v40 = vor.u32 %v6847_v28, %v6053_v26  ;;  %3598 = vmatpush.bf16.msrb.mxu3 %v6326_v27  ;;  %v4727_v6 = vld [vmem:[%s7348_s25 + $0x2d0] sm:$0xf0] }
  0xb7   : > { %v6309_v34 = vld [vmem:[%s7348_s25 + $0xf20] sm:$0xf]  ;;  %v6911_v35 = vld [vmem:[%s7348_s25 + $0xf2c] sm:$0xf0]  ;;  %v6182_v41 = vor.u32 %v6879_v30, %v6181_v29  ;;  %3560 = vmatpush.bf16.msrb.mxu0 %v5926_v36  ;;  %v6545_v9 = vld [vmem:[%s7348_s25 + $0x3c4] sm:$0xf]  ;;  %v4730_v19 = vor.u32 %v6513_v5, %v4727_v6 }
  0xb8   : > { %v5909_v38 = vld [vmem:[%s7348_s25 + $0xc00] sm:$0xf]  ;;  %v6811_v39 = vld [vmem:[%s7348_s25 + $0xc0c] sm:$0xf0]  ;;  %v6310_v45 = vor.u32 %v6911_v35, %v6309_v34  ;;  %3573 = vmatpush.bf16.msrb.mxu1 %v6054_v40  ;;  %v4855_v10 = vld [vmem:[%s7348_s25 + $0x3d0] sm:$0xf0] }
  0xb9   : > { %v6037_v42 = vld [vmem:[%s7348_s25 + $0xd00] sm:$0xf]  ;;  %v6843_v43 = vld [vmem:[%s7348_s25 + $0xd0c] sm:$0xf0]  ;;  %v5910_v52 = vor.u32 %v6811_v39, %v5909_v38  ;;  %3586 = vmatpush.bf16.msrb.mxu2 %v6182_v41  ;;  %v819_v15 = vld [vmem:[#allocation1 + $0x2d] sm:$0xff]  ;;  %v4858_v23 = vor.u32 %v6545_v9, %v4855_v10 }
  0xba   : > { %v6165_v44 = vld [vmem:[%s7348_s25 + $0xe00] sm:$0xf]  ;;  %v6875_v46 = vld [vmem:[%s7348_s25 + $0xe0c] sm:$0xf0]  ;;  %v6038_v56 = vor.u32 %v6843_v43, %v6037_v42  ;;  %3599 = vmatpush.bf16.msrb.mxu3 %v6310_v45  ;;  %v821_v16 = vld [vmem:[#allocation1 + $0x3f] sm:$0xff] }
  0xbb   : > { %v6293_v47 = vld [vmem:[%s7348_s25 + $0xf00] sm:$0xf]  ;;  %v6907_v48 = vld [vmem:[%s7348_s25 + $0xf0c] sm:$0xf0]  ;;  %v6166_v57 = vor.u32 %v6875_v46, %v6165_v44  ;;  %3561 = vmatpush.bf16.msrb.mxu0 %v5910_v52  ;;  %v6445_v20 = vld [vmem:[%s7348_s25 + $0xa4] sm:$0xf] }
  0xbc   : > { %v6294_v60 = vor.u32 %v6907_v48, %v6293_v47  ;;  %3574 = vmatpush.bf16.msrb.mxu1 %v6038_v56  ;;  %v818_v8 = vld [vmem:[#allocation1 + $0x24] sm:$0xff]  ;;  %v820_v14 = vld [vmem:[#allocation1 + $0x36] sm:$0xff]  ;;  %v6477_v22 = vld [vmem:[%s7348_s25 + $0x1a4] sm:$0xf] }
  0xbd   : > { %3587 = vmatpush.bf16.msrb.mxu2 %v6166_v57  ;;  %v4455_v21 = vld [vmem:[%s7348_s25 + $0xb0] sm:$0xf0]  ;;  %v6509_v25 = vld [vmem:[%s7348_s25 + $0x2a4] sm:$0xf] }
  0xbe   : > { %3600 = vmatpush.bf16.msrb.mxu3 %v6294_v60  ;;  %3562 = vmatmul.bf16.vlgmr.msrb.gmra.mxu0 %v818_v8  ;;  %v4583_v24 = vld [vmem:[%s7348_s25 + $0x1b0] sm:$0xf0]  ;;  %v6541_v27 = vld [vmem:[%s7348_s25 + $0x3a4] sm:$0xf]  ;;  %v4458_v29 = vor.u32 %v6445_v20, %v4455_v21 }
  0xbf   : > { %3606 = vmatpush.bf16.msra.mxu0 %v4490_v61  ;;  %v4711_v26 = vld [vmem:[%s7348_s25 + $0x2b0] sm:$0xf0]  ;;  %3575 = vmatmul.bf16.vlgmr.msrb.gmra.mxu1 %v819_v15  ;;  %v4586_v30 = vor.u32 %v6477_v22, %v4583_v24  ;;  %v6441_v35 = vld [vmem:[%s7348_s25 + $0x84] sm:$0xf] }
  0xc0   : > { %3619 = vmatpush.bf16.msra.mxu1 %v4618_v62  ;;  %3588 = vmatmul.bf16.vlgmr.msrb.gmra.mxu2 %v820_v14  ;;  %v4839_v28 = vld [vmem:[%s7348_s25 + $0x3b0] sm:$0xf0]  ;;  %v4714_v34 = vor.u32 %v6509_v25, %v4711_v26  ;;  %v6473_v38 = vld [vmem:[%s7348_s25 + $0x184] sm:$0xf] }
  0xc1   : > { %3632 = vmatpush.bf16.msra.mxu2 %v4746_v63  ;;  %3601 = vmatmul.bf16.vlgmr.msrb.gmra.mxu3 %v821_v16  ;;  %v4439_v36 = vld [vmem:[%s7348_s25 + $0x90] sm:$0xf0]  ;;  %v4842_v39 = vor.u32 %v6541_v27, %v4839_v28  ;;  %v6505_v41 = vld [vmem:[%s7348_s25 + $0x284] sm:$0xf] }
  0xc2   : > { %3645 = vmatpush.bf16.msra.mxu3 %v4874_v3  ;;  %v4567_v40 = vld [vmem:[%s7348_s25 + $0x190] sm:$0xf0]  ;;  %v6537_v43 = vld [vmem:[%s7348_s25 + $0x384] sm:$0xf]  ;;  %v4442_v45 = vor.u32 %v6441_v35, %v4439_v36 }
  0xc3   : > { %3607 = vmatpush.bf16.msra.mxu0 %v4474_v17  ;;  %v4695_v42 = vld [vmem:[%s7348_s25 + $0x290] sm:$0xf0]  ;;  %v4570_v46 = vor.u32 %v6473_v38, %v4567_v40  ;;  %v6437_v48 = vld [vmem:[%s7348_s25 + $0x64] sm:$0xf] }
  0xc4   : > { %3620 = vmatpush.bf16.msra.mxu1 %v4602_v18  ;;  %v4823_v44 = vld [vmem:[%s7348_s25 + $0x390] sm:$0xf0]  ;;  %v4698_v47 = vor.u32 %v6505_v41, %v4695_v42  ;;  %v6469_v50 = vld [vmem:[%s7348_s25 + $0x164] sm:$0xf] }
  0xc5   : > { %3633 = vmatpush.bf16.msra.mxu2 %v4730_v19  ;;  %v4423_v49 = vld [vmem:[%s7348_s25 + $0x70] sm:$0xf0]  ;;  %v4826_v51 = vor.u32 %v6537_v43, %v4823_v44  ;;  %v6501_v53 = vld [vmem:[%s7348_s25 + $0x264] sm:$0xf] }
  0xc6   : > { %3646 = vmatpush.bf16.msra.mxu3 %v4858_v23  ;;  %v4551_v52 = vld [vmem:[%s7348_s25 + $0x170] sm:$0xf0]  ;;  %v6533_v55 = vld [vmem:[%s7348_s25 + $0x364] sm:$0xf]  ;;  %v4426_v57 = vor.u32 %v6437_v48, %v4423_v49 }
  0xc7   : > { %3608 = vmatpush.bf16.msra.mxu0 %v4458_v29  ;;  %v4679_v54 = vld [vmem:[%s7348_s25 + $0x270] sm:$0xf0]  ;;  %v4554_v58 = vor.u32 %v6469_v50, %v4551_v52  ;;  %v6433_v60 = vld [vmem:[%s7348_s25 + $0x44] sm:$0xf] }
  0xc8   : > { %3621 = vmatpush.bf16.msra.mxu1 %v4586_v30  ;;  %v4807_v56 = vld [vmem:[%s7348_s25 + $0x370] sm:$0xf0]  ;;  %v4682_v59 = vor.u32 %v6501_v53, %v4679_v54  ;;  %v6465_v62 = vld [vmem:[%s7348_s25 + $0x144] sm:$0xf] }
  0xc9   : > { %3634 = vmatpush.bf16.msra.mxu2 %v4714_v34  ;;  %v4407_v61 = vld [vmem:[%s7348_s25 + $0x50] sm:$0xf0]  ;;  %v4810_v63 = vor.u32 %v6533_v55, %v4807_v56  ;;  %v6497_v1 = vld [vmem:[%s7348_s25 + $0x244] sm:$0xf] }
  0xca   : > { %3647 = vmatpush.bf16.msra.mxu3 %v4842_v39  ;;  %v4535_v0 = vld [vmem:[%s7348_s25 + $0x150] sm:$0xf0]  ;;  %v6529_v3 = vld [vmem:[%s7348_s25 + $0x344] sm:$0xf]  ;;  %v4410_v5 = vor.u32 %v6433_v60, %v4407_v61 }
  0xcb   : > { %3609 = vmatpush.bf16.msra.mxu0 %v4442_v45  ;;  %v4663_v2 = vld [vmem:[%s7348_s25 + $0x250] sm:$0xf0]  ;;  %v4538_v6 = vor.u32 %v6465_v62, %v4535_v0  ;;  %v6429_v9 = vld [vmem:[%s7348_s25 + $0x24] sm:$0xf] }
  0xcc   : > { %3622 = vmatpush.bf16.msra.mxu1 %v4570_v46  ;;  %v4791_v4 = vld [vmem:[%s7348_s25 + $0x350] sm:$0xf0]  ;;  %v4666_v8 = vor.u32 %v6497_v1, %v4663_v2  ;;  %v6461_v14 = vld [vmem:[%s7348_s25 + $0x124] sm:$0xf] }
  0xcd   : > { %3635 = vmatpush.bf16.msra.mxu2 %v4698_v47  ;;  %v4391_v10 = vld [vmem:[%s7348_s25 + $0x30] sm:$0xf0]  ;;  %v4794_v15 = vor.u32 %v6529_v3, %v4791_v4  ;;  %v6493_v17 = vld [vmem:[%s7348_s25 + $0x224] sm:$0xf] }
  0xce   : > { %3648 = vmatpush.bf16.msra.mxu3 %v4826_v51  ;;  %v4519_v16 = vld [vmem:[%s7348_s25 + $0x130] sm:$0xf0]  ;;  %v6525_v19 = vld [vmem:[%s7348_s25 + $0x324] sm:$0xf]  ;;  %v4394_v21 = vor.u32 %v6429_v9, %v4391_v10 }
  0xcf   : > { %3610 = vmatpush.bf16.msra.mxu0 %v4426_v57  ;;  %v4647_v18 = vld [vmem:[%s7348_s25 + $0x230] sm:$0xf0]  ;;  %v6425_v22 = vld [vmem:[%s7348_s25 + $0x4] sm:$0xf]  ;;  %v4522_v24 = vor.u32 %v6461_v14, %v4519_v16 }
  0xd0   : > { %3623 = vmatpush.bf16.msra.mxu1 %v4554_v58  ;;  %v4775_v20 = vld [vmem:[%s7348_s25 + $0x330] sm:$0xf0]  ;;  %v4650_v25 = vor.u32 %v6493_v17, %v4647_v18  ;;  %v6457_v26 = vld [vmem:[%s7348_s25 + $0x104] sm:$0xf] }
  0xd1   : > { %3636 = vmatpush.bf16.msra.mxu2 %v4682_v59  ;;  %v4375_v23 = vld [vmem:[%s7348_s25 + $0x10] sm:$0xf0]  ;;  %v6489_v28 = vld [vmem:[%s7348_s25 + $0x204] sm:$0xf]  ;;  %v4778_v29 = vor.u32 %v6525_v19, %v4775_v20 }
  0xd2   : > { %3649 = vmatpush.bf16.msra.mxu3 %v4810_v63  ;;  %v4503_v27 = vld [vmem:[%s7348_s25 + $0x110] sm:$0xf0]  ;;  %v6521_v34 = vld [vmem:[%s7348_s25 + $0x304] sm:$0xf]  ;;  %v4378_v40 = vor.u32 %v6425_v22, %v4375_v23 }
  0xd3   : > { %3611 = vmatpush.bf16.msra.mxu0 %v4410_v5  ;;  %v4631_v30 = vld [vmem:[%s7348_s25 + $0x210] sm:$0xf0]  ;;  %v6581_v36 = vld [vmem:[%s7348_s25 + $0x4e4] sm:$0xf]  ;;  %v4506_v44 = vor.u32 %v6457_v26, %v4503_v27 }
  0xd4   : > { %3624 = vmatpush.bf16.msra.mxu1 %v4538_v6  ;;  %v4759_v35 = vld [vmem:[%s7348_s25 + $0x310] sm:$0xf0]  ;;  %v6613_v39 = vld [vmem:[%s7348_s25 + $0x5e4] sm:$0xf]  ;;  %v4634_v45 = vor.u32 %v6489_v28, %v4631_v30 }
  0xd5   : > { %3637 = vmatpush.bf16.msra.mxu2 %v4666_v8  ;;  %v4999_v38 = vld [vmem:[%s7348_s25 + $0x4f0] sm:$0xf0]  ;;  %v6645_v42 = vld [vmem:[%s7348_s25 + $0x6e4] sm:$0xf]  ;;  %v4762_v48 = vor.u32 %v6521_v34, %v4759_v35 }
  0xd6   : > { %3650 = vmatpush.bf16.msra.mxu3 %v4794_v15  ;;  %v5127_v41 = vld [vmem:[%s7348_s25 + $0x5f0] sm:$0xf0]  ;;  %v6677_v46 = vld [vmem:[%s7348_s25 + $0x7e4] sm:$0xf]  ;;  %v5002_v49 = vor.u32 %v6581_v36, %v4999_v38 }
  0xd7   : > { %3612 = vmatpush.bf16.msra.mxu0 %v4394_v21  ;;  %v5255_v43 = vld [vmem:[%s7348_s25 + $0x6f0] sm:$0xf0]  ;;  %v5130_v50 = vor.u32 %v6613_v39, %v5127_v41  ;;  %v6577_v52 = vld [vmem:[%s7348_s25 + $0x4c4] sm:$0xf] }
  0xd8   : > { %3625 = vmatpush.bf16.msra.mxu1 %v4522_v24  ;;  %v5383_v47 = vld [vmem:[%s7348_s25 + $0x7f0] sm:$0xf0]  ;;  %v5258_v51 = vor.u32 %v6645_v42, %v5255_v43  ;;  %v6609_v54 = vld [vmem:[%s7348_s25 + $0x5c4] sm:$0xf] }
  0xd9   : > { %3638 = vmatpush.bf16.msra.mxu2 %v4650_v25  ;;  %v4983_v53 = vld [vmem:[%s7348_s25 + $0x4d0] sm:$0xf0]  ;;  %v5386_v55 = vor.u32 %v6677_v46, %v5383_v47  ;;  %v6641_v57 = vld [vmem:[%s7348_s25 + $0x6c4] sm:$0xf] }
  0xda   : > { %3651 = vmatpush.bf16.msra.mxu3 %v4778_v29  ;;  %v5111_v56 = vld [vmem:[%s7348_s25 + $0x5d0] sm:$0xf0]  ;;  %v6673_v59 = vld [vmem:[%s7348_s25 + $0x7c4] sm:$0xf]  ;;  %v4986_v61 = vor.u32 %v6577_v52, %v4983_v53 }
  0xdb   : > { %3613 = vmatpush.bf16.msra.mxu0 %v4378_v40  ;;  %v5239_v58 = vld [vmem:[%s7348_s25 + $0x6d0] sm:$0xf0]  ;;  %v5114_v62 = vor.u32 %v6609_v54, %v5111_v56  ;;  %v6573_v0 = vld [vmem:[%s7348_s25 + $0x4a4] sm:$0xf] }
  0xdc   : > { %3626 = vmatpush.bf16.msra.mxu1 %v4506_v44  ;;  %v5367_v60 = vld [vmem:[%s7348_s25 + $0x7d0] sm:$0xf0]  ;;  %v5242_v63 = vor.u32 %v6641_v57, %v5239_v58  ;;  %v6605_v2 = vld [vmem:[%s7348_s25 + $0x5a4] sm:$0xf] }
  0xdd   : > { %3639 = vmatpush.bf16.msra.mxu2 %v4634_v45  ;;  %v4967_v1 = vld [vmem:[%s7348_s25 + $0x4b0] sm:$0xf0]  ;;  %v5370_v3 = vor.u32 %v6673_v59, %v5367_v60  ;;  %v6637_v5 = vld [vmem:[%s7348_s25 + $0x6a4] sm:$0xf] }
  0xde   : > { %3652 = vmatpush.bf16.msra.mxu3 %v4762_v48  ;;  %v5095_v4 = vld [vmem:[%s7348_s25 + $0x5b0] sm:$0xf0]  ;;  %v6669_v8 = vld [vmem:[%s7348_s25 + $0x7a4] sm:$0xf]  ;;  %3614 = vmatmul.bf16.vlgmr.msra.gmra.mxu0 %v7462_v32  ;;  %v4970_v10 = vor.u32 %v6573_v0, %v4967_v1 }
  0xdf   : > { %3658 = vmatpush.bf16.msrb.mxu0 %v5002_v49  ;;  %v5223_v6 = vld [vmem:[%s7348_s25 + $0x6b0] sm:$0xf0]  ;;  %3627 = vmatmul.bf16.vlgmr.msra.gmra.mxu1 %v7469_v37  ;;  %v5098_v14 = vor.u32 %v6605_v2, %v5095_v4  ;;  %v6569_v16 = vld [vmem:[%s7348_s25 + $0x484] sm:$0xf] }
  0xe0   : > { %3671 = vmatpush.bf16.msrb.mxu1 %v5130_v50  ;;  %3640 = vmatmul.bf16.vlgmr.msra.gmra.mxu2 %v7460_v31  ;;  %v5351_v9 = vld [vmem:[%s7348_s25 + $0x7b0] sm:$0xf0]  ;;  %v5226_v15 = vor.u32 %v6637_v5, %v5223_v6  ;;  %v6601_v18 = vld [vmem:[%s7348_s25 + $0x584] sm:$0xf] }
  0xe1   : > { %3684 = vmatpush.bf16.msrb.mxu2 %v5258_v51  ;;  %3653 = vmatmul.bf16.vlgmr.msra.gmra.mxu3 %v7464_v33  ;;  %v4951_v17 = vld [vmem:[%s7348_s25 + $0x490] sm:$0xf0]  ;;  %v5354_v19 = vor.u32 %v6669_v8, %v5351_v9  ;;  %v6633_v21 = vld [vmem:[%s7348_s25 + $0x684] sm:$0xf] }
  0xe2   : > { %3697 = vmatpush.bf16.msrb.mxu3 %v5386_v55  ;;  %v5079_v20 = vld [vmem:[%s7348_s25 + $0x590] sm:$0xf0]  ;;  %v6665_v23 = vld [vmem:[%s7348_s25 + $0x784] sm:$0xf]  ;;  %v4954_v25 = vor.u32 %v6569_v16, %v4951_v17 }
  0xe3   : > { %3659 = vmatpush.bf16.msrb.mxu0 %v4986_v61  ;;  %v5207_v22 = vld [vmem:[%s7348_s25 + $0x690] sm:$0xf0]  ;;  %v5082_v26 = vor.u32 %v6601_v18, %v5079_v20  ;;  %v6565_v28 = vld [vmem:[%s7348_s25 + $0x464] sm:$0xf] }
  0xe4   : > { %3672 = vmatpush.bf16.msrb.mxu1 %v5114_v62  ;;  %v5335_v24 = vld [vmem:[%s7348_s25 + $0x790] sm:$0xf0]  ;;  %v5210_v27 = vor.u32 %v6633_v21, %v5207_v22  ;;  %v6597_v30 = vld [vmem:[%s7348_s25 + $0x564] sm:$0xf] }
  0xe5   : > { %3685 = vmatpush.bf16.msrb.mxu2 %v5242_v63  ;;  %v4935_v29 = vld [vmem:[%s7348_s25 + $0x470] sm:$0xf0]  ;;  %v5338_v34 = vor.u32 %v6665_v23, %v5335_v24  ;;  %v6629_v36 = vld [vmem:[%s7348_s25 + $0x664] sm:$0xf] }
  0xe6   : > { %3698 = vmatpush.bf16.msrb.mxu3 %v5370_v3  ;;  %v5063_v35 = vld [vmem:[%s7348_s25 + $0x570] sm:$0xf0]  ;;  %v6661_v39 = vld [vmem:[%s7348_s25 + $0x764] sm:$0xf]  ;;  %v4938_v41 = vor.u32 %v6565_v28, %v4935_v29 }
  0xe7   : > { %3660 = vmatpush.bf16.msrb.mxu0 %v4970_v10  ;;  %v5191_v38 = vld [vmem:[%s7348_s25 + $0x670] sm:$0xf0]  ;;  %v5066_v42 = vor.u32 %v6597_v30, %v5063_v35  ;;  %v6561_v44 = vld [vmem:[%s7348_s25 + $0x444] sm:$0xf] }
  0xe8   : > { %3673 = vmatpush.bf16.msrb.mxu1 %v5098_v14  ;;  %v5319_v40 = vld [vmem:[%s7348_s25 + $0x770] sm:$0xf0]  ;;  %v5194_v43 = vor.u32 %v6629_v36, %v5191_v38  ;;  %v6593_v46 = vld [vmem:[%s7348_s25 + $0x544] sm:$0xf]  ;;  %v3407_v54 = vpop.f32.mrf.mxu0 }
  0xe9   : > { %3686 = vmatpush.bf16.msrb.mxu2 %v5226_v15  ;;  %v4919_v45 = vld [vmem:[%s7348_s25 + $0x450] sm:$0xf0]  ;;  %v5322_v47 = vor.u32 %v6661_v39, %v5319_v40  ;;  %v6625_v49 = vld [vmem:[%s7348_s25 + $0x644] sm:$0xf] }
  0xea   : > { %3699 = vmatpush.bf16.msrb.mxu3 %v5354_v19  ;;  %v5047_v48 = vld [vmem:[%s7348_s25 + $0x550] sm:$0xf0]  ;;  %v6657_v51 = vld [vmem:[%s7348_s25 + $0x744] sm:$0xf]  ;;  %v4922_v53 = vor.u32 %v6561_v44, %v4919_v45  ;;  %v3420_v60 = vpop.f32.mrf.mxu1 }
  0xeb   : > { %3661 = vmatpush.bf16.msrb.mxu0 %v4954_v25  ;;  %v5175_v50 = vld [vmem:[%s7348_s25 + $0x650] sm:$0xf0]  ;;  %v5050_v55 = vor.u32 %v6593_v46, %v5047_v48  ;;  %v6557_v57 = vld [vmem:[%s7348_s25 + $0x424] sm:$0xf]  ;;  %v3421_v1 = vadd.f32 %v3420_v60, %v3407_v54 }
  0xec   : > { %3674 = vmatpush.bf16.msrb.mxu1 %v5082_v26  ;;  %v5303_v52 = vld [vmem:[%s7348_s25 + $0x750] sm:$0xf0]  ;;  %v5178_v56 = vor.u32 %v6625_v49, %v5175_v50  ;;  %v6589_v59 = vld [vmem:[%s7348_s25 + $0x524] sm:$0xf] }
  0xed   : > { %3687 = vmatpush.bf16.msrb.mxu2 %v5210_v27  ;;  %v4903_v58 = vld [vmem:[%s7348_s25 + $0x430] sm:$0xf0]  ;;  %v5306_v61 = vor.u32 %v6657_v51, %v5303_v52  ;;  %v6621_v63 = vld [vmem:[%s7348_s25 + $0x624] sm:$0xf] }
  0xee   : > { %3700 = vmatpush.bf16.msrb.mxu3 %v5338_v34  ;;  %v5031_v62 = vld [vmem:[%s7348_s25 + $0x530] sm:$0xf0]  ;;  %v6653_v2 = vld [vmem:[%s7348_s25 + $0x724] sm:$0xf]  ;;  %v4906_v4 = vor.u32 %v6557_v57, %v4903_v58 }
  0xef   : > { %3662 = vmatpush.bf16.msrb.mxu0 %v4938_v41  ;;  %v5159_v0 = vld [vmem:[%s7348_s25 + $0x630] sm:$0xf0]  ;;  %v6553_v5 = vld [vmem:[%s7348_s25 + $0x404] sm:$0xf]  ;;  %v5034_v8 = vor.u32 %v6589_v59, %v5031_v62  ;;  %v3433_v16 = vpop.f32.mrf.mxu2  ;;  %v3446_v22 = vpop.f32.mrf.mxu3 }
  0xf0   : > { %3675 = vmatpush.bf16.msrb.mxu1 %v5066_v42  ;;  %v5287_v3 = vld [vmem:[%s7348_s25 + $0x730] sm:$0xf0]  ;;  %v5162_v9 = vor.u32 %v6621_v63, %v5159_v0  ;;  %v6585_v10 = vld [vmem:[%s7348_s25 + $0x504] sm:$0xf]  ;;  %v3434_v21 = vadd.f32 %v3433_v16, %v3421_v1  ;;  %v3409_v34 = vpop.f32.mrf.mxu0 }
  0xf1   : > { %3688 = vmatpush.bf16.msrb.mxu2 %v5194_v43  ;;  %v4887_v6 = vld [vmem:[%s7348_s25 + $0x410] sm:$0xf0]  ;;  %v6617_v15 = vld [vmem:[%s7348_s25 + $0x604] sm:$0xf]  ;;  %v5290_v17 = vor.u32 %v6653_v2, %v5287_v3 }
  0xf2   : > { %3701 = vmatpush.bf16.msrb.mxu3 %v5322_v47  ;;  %v5015_v14 = vld [vmem:[%s7348_s25 + $0x510] sm:$0xf0]  ;;  %v6649_v19 = vld [vmem:[%s7348_s25 + $0x704] sm:$0xf]  ;;  %v4890_v26 = vor.u32 %v6553_v5, %v4887_v6  ;;  %v7779_v30 = vadd.f32 %v3446_v22, %v3434_v21  ;;  %v3422_v40 = vpop.f32.mrf.mxu1 }
  0xf3   : > { %3663 = vmatpush.bf16.msrb.mxu0 %v4922_v53  ;;  %v5143_v18 = vld [vmem:[%s7348_s25 + $0x610] sm:$0xf0]  ;;  %v6709_v23 = vld [vmem:[%s7348_s25 + $0x8e4] sm:$0xf]  ;;  %v5018_v35 = vor.u32 %v6585_v10, %v5015_v14 }
  0xf4   : > { %3676 = vmatpush.bf16.msrb.mxu1 %v5050_v55  ;;  %v5271_v20 = vld [vmem:[%s7348_s25 + $0x710] sm:$0xf0]  ;;  %v6741_v25 = vld [vmem:[%s7348_s25 + $0x9e4] sm:$0xf]  ;;  %v5146_v36 = vor.u32 %v6617_v15, %v5143_v18 }
  0xf5   : > { %3689 = vmatpush.bf16.msrb.mxu2 %v5178_v56  ;;  %v5511_v24 = vld [vmem:[%s7348_s25 + $0x8f0] sm:$0xf0]  ;;  %v6773_v28 = vld [vmem:[%s7348_s25 + $0xae4] sm:$0xf]  ;;  %v5274_v41 = vor.u32 %v6649_v19, %v5271_v20 }
  0xf6   : > { %3702 = vmatpush.bf16.msrb.mxu3 %v5306_v61  ;;  %v5639_v27 = vld [vmem:[%s7348_s25 + $0x9f0] sm:$0xf0]  ;;  %v6805_v38 = vld [vmem:[%s7348_s25 + $0xbe4] sm:$0xf]  ;;  %v5514_v42 = vor.u32 %v6709_v23, %v5511_v24 }
  0xf7   : > { %3664 = vmatpush.bf16.msrb.mxu0 %v4906_v4  ;;  %v5767_v29 = vld [vmem:[%s7348_s25 + $0xaf0] sm:$0xf0]  ;;  %v5642_v43 = vor.u32 %v6741_v25, %v5639_v27  ;;  %v6705_v45 = vld [vmem:[%s7348_s25 + $0x8c4] sm:$0xf]  ;;  %v3435_v54 = vpop.f32.mrf.mxu2  ;;  %v3448_v56 = vpop.f32.mrf.mxu3 }
  0xf8   : > { %3677 = vmatpush.bf16.msrb.mxu1 %v5034_v8  ;;  %v5895_v39 = vld [vmem:[%s7348_s25 + $0xbf0] sm:$0xf0]  ;;  %v5770_v44 = vor.u32 %v6773_v28, %v5767_v29  ;;  %v6737_v47 = vld [vmem:[%s7348_s25 + $0x9c4] sm:$0xf] }
  0xf9   : > { %3690 = vmatpush.bf16.msrb.mxu2 %v5162_v9  ;;  %v5495_v46 = vld [vmem:[%s7348_s25 + $0x8d0] sm:$0xf0]  ;;  %v5898_v48 = vor.u32 %v6805_v38, %v5895_v39  ;;  %v6769_v50 = vld [vmem:[%s7348_s25 + $0xac4] sm:$0xf]  ;;  %v3459_v21 = vpop.f32.mrf.mxu0 }
  0xfa   : > { %3703 = vmatpush.bf16.msrb.mxu3 %v5290_v17  ;;  %v5623_v49 = vld [vmem:[%s7348_s25 + $0x9d0] sm:$0xf0]  ;;  %v6801_v52 = vld [vmem:[%s7348_s25 + $0xbc4] sm:$0xf]  ;;  %v5498_v55 = vor.u32 %v6705_v45, %v5495_v46  ;;  %v3460_v27 = vadd.f32 %v3459_v21, %v7779_v30  ;;  %v3472_v28 = vpop.f32.mrf.mxu1 }
  0xfb   : > { %3665 = vmatpush.bf16.msrb.mxu0 %v4890_v26  ;;  %v5751_v51 = vld [vmem:[%s7348_s25 + $0xad0] sm:$0xf0]  ;;  %v5626_v57 = vor.u32 %v6737_v47, %v5623_v49  ;;  %v6701_v59 = vld [vmem:[%s7348_s25 + $0x8a4] sm:$0xf] }
  0xfc   : > { %3678 = vmatpush.bf16.msrb.mxu1 %v5018_v35  ;;  %v5879_v53 = vld [vmem:[%s7348_s25 + $0xbd0] sm:$0xf0]  ;;  %v5754_v58 = vor.u32 %v6769_v50, %v5751_v51  ;;  %v6733_v61 = vld [vmem:[%s7348_s25 + $0x9a4] sm:$0xf]  ;;  %v3473_v40 = vadd.f32 %v3472_v28, %v3460_v27 }
  0xfd   : > { %3691 = vmatpush.bf16.msrb.mxu2 %v5146_v36  ;;  %v5479_v60 = vld [vmem:[%s7348_s25 + $0x8b0] sm:$0xf0]  ;;  %v5882_v62 = vor.u32 %v6801_v52, %v5879_v53  ;;  %v6765_v0 = vld [vmem:[%s7348_s25 + $0xaa4] sm:$0xf] }
  0xfe   : > { %3704 = vmatpush.bf16.msrb.mxu3 %v5274_v41  ;;  %v5607_v63 = vld [vmem:[%s7348_s25 + $0x9b0] sm:$0xf0]  ;;  %3666 = vmatmul.bf16.vlgmr.msrb.gmra.mxu0 %v7501_v11  ;;  %v6797_v2 = vld [vmem:[%s7348_s25 + $0xba4] sm:$0xf]  ;;  %v5482_v4 = vor.u32 %v6701_v59, %v5479_v60 }
  0xff   : > { %3710 = vmatpush.bf16.msra.mxu0 %v5514_v42  ;;  %v5735_v1 = vld [vmem:[%s7348_s25 + $0xab0] sm:$0xf0]  ;;  %3679 = vmatmul.bf16.vlgmr.msrb.gmra.mxu1 %v7505_v13  ;;  %v5610_v5 = vor.u32 %v6733_v61, %v5607_v63  ;;  %v6697_v8 = vld [vmem:[%s7348_s25 + $0x884] sm:$0xf] }
 0x100   : > { %3723 = vmatpush.bf16.msra.mxu1 %v5642_v43  ;;  %3692 = vmatmul.bf16.vlgmr.msrb.gmra.mxu2 %v7498_v7  ;;  %v5863_v3 = vld [vmem:[%s7348_s25 + $0xbb0] sm:$0xf0]  ;;  %v5738_v6 = vor.u32 %v6765_v0, %v5735_v1  ;;  %v6729_v10 = vld [vmem:[%s7348_s25 + $0x984] sm:$0xf] }
 0x101   : > { %3736 = vmatpush.bf16.msra.mxu2 %v5770_v44  ;;  %3705 = vmatmul.bf16.vlgmr.msrb.gmra.mxu3 %v7503_v12  ;;  %v5463_v9 = vld [vmem:[%s7348_s25 + $0x890] sm:$0xf0]  ;;  %v5866_v14 = vor.u32 %v6797_v2, %v5863_v3  ;;  %v6761_v16 = vld [vmem:[%s7348_s25 + $0xa84] sm:$0xf]  ;;  %v3485_v46 = vpop.f32.mrf.mxu2 }
 0x102   : > { %3749 = vmatpush.bf16.msra.mxu3 %v5898_v48  ;;  %v5591_v15 = vld [vmem:[%s7348_s25 + $0x990] sm:$0xf0]  ;;  %v6793_v18 = vld [vmem:[%s7348_s25 + $0xb84] sm:$0xf]  ;;  %v5466_v20 = vor.u32 %v6697_v8, %v5463_v9  ;;  %v3486_v51 = vadd.f32 %v3485_v46, %v3473_v40  ;;  %v3474_v63 = vpop.f32.mrf.mxu1 }
 0x103   : > { %3711 = vmatpush.bf16.msra.mxu0 %v5498_v55  ;;  %v5719_v17 = vld [vmem:[%s7348_s25 + $0xa90] sm:$0xf0]  ;;  %v5594_v22 = vor.u32 %v6729_v10, %v5591_v15  ;;  %v6693_v24 = vld [vmem:[%s7348_s25 + $0x864] sm:$0xf]  ;;  %v3498_v52 = vpop.f32.mrf.mxu3 }
 0x104   : > { %3724 = vmatpush.bf16.msra.mxu1 %v5626_v57  ;;  %v5847_v19 = vld [vmem:[%s7348_s25 + $0xb90] sm:$0xf0]  ;;  %v5722_v23 = vor.u32 %v6761_v16, %v5719_v17  ;;  %v6725_v26 = vld [vmem:[%s7348_s25 + $0x964] sm:$0xf]  ;;  %v7828_v56 = vadd.f32 %v3498_v52, %v3486_v51  ;;  %v3461_v57 = vpop.f32.mrf.mxu0 }
 0x105   : > { %3737 = vmatpush.bf16.msra.mxu2 %v5754_v58  ;;  %v5447_v25 = vld [vmem:[%s7348_s25 + $0x870] sm:$0xf0]  ;;  %v5850_v29 = vor.u32 %v6793_v18, %v5847_v19  ;;  %v6757_v35 = vld [vmem:[%s7348_s25 + $0xa64] sm:$0xf] }
 0x106   : > { %3750 = vmatpush.bf16.msra.mxu3 %v5882_v62  ;;  %v5575_v34 = vld [vmem:[%s7348_s25 + $0x970] sm:$0xf0]  ;;  %v6789_v38 = vld [vmem:[%s7348_s25 + $0xb64] sm:$0xf]  ;;  %v5450_v41 = vor.u32 %v6693_v24, %v5447_v25 }
 0x107   : > { %3712 = vmatpush.bf16.msra.mxu0 %v5482_v4  ;;  %v5703_v36 = vld [vmem:[%s7348_s25 + $0xa70] sm:$0xf0]  ;;  %v5578_v30 = vor.u32 %v6725_v26, %v5575_v34  ;;  %v6689_v43 = vld [vmem:[%s7348_s25 + $0x844] sm:$0xf] }
 0x108   : > { %3725 = vmatpush.bf16.msra.mxu1 %v5610_v5  ;;  %v5831_v39 = vld [vmem:[%s7348_s25 + $0xb70] sm:$0xf0]  ;;  %v5706_v42 = vor.u32 %v6757_v35, %v5703_v36  ;;  %v6721_v45 = vld [vmem:[%s7348_s25 + $0x944] sm:$0xf] }
 0x109   : > { %3738 = vmatpush.bf16.msra.mxu2 %v5738_v6  ;;  %v5431_v44 = vld [vmem:[%s7348_s25 + $0x850] sm:$0xf0]  ;;  %v5834_v47 = vor.u32 %v6789_v38, %v5831_v39  ;;  %v6753_v49 = vld [vmem:[%s7348_s25 + $0xa44] sm:$0xf]  ;;  %v3487_v18 = vpop.f32.mrf.mxu2 }
 0x10a   : > { %3751 = vmatpush.bf16.msra.mxu3 %v5866_v14  ;;  %v5559_v48 = vld [vmem:[%s7348_s25 + $0x950] sm:$0xf0]  ;;  %v6785_v53 = vld [vmem:[%s7348_s25 + $0xb44] sm:$0xf]  ;;  %v5434_v55 = vor.u32 %v6689_v43, %v5431_v44 }
 0x10b   : > { %3713 = vmatpush.bf16.msra.mxu0 %v5466_v20  ;;  %v5687_v50 = vld [vmem:[%s7348_s25 + $0xa50] sm:$0xf0]  ;;  %v5562_v58 = vor.u32 %v6721_v45, %v5559_v48  ;;  %v6685_v60 = vld [vmem:[%s7348_s25 + $0x824] sm:$0xf] }
 0x10c   : > { %3726 = vmatpush.bf16.msra.mxu1 %v5594_v22  ;;  %v5815_v54 = vld [vmem:[%s7348_s25 + $0xb50] sm:$0xf0]  ;;  %v5690_v59 = vor.u32 %v6753_v49, %v5687_v50  ;;  %v6717_v62 = vld [vmem:[%s7348_s25 + $0x924] sm:$0xf] }
 0x10d   : > { %3739 = vmatpush.bf16.msra.mxu2 %v5722_v23  ;;  %v5415_v61 = vld [vmem:[%s7348_s25 + $0x830] sm:$0xf0]  ;;  %v5818_v0 = vor.u32 %v6785_v53, %v5815_v54  ;;  %v6749_v2 = vld [vmem:[%s7348_s25 + $0xa24] sm:$0xf]  ;;  %v3500_v23 = vpop.f32.mrf.mxu3 }
 0x10e   : > { %3752 = vmatpush.bf16.msra.mxu3 %v5850_v29  ;;  %v5543_v1 = vld [vmem:[%s7348_s25 + $0x930] sm:$0xf0]  ;;  %v6781_v4 = vld [vmem:[%s7348_s25 + $0xb24] sm:$0xf]  ;;  %v5418_v6 = vor.u32 %v6685_v60, %v5415_v61 }
 0x10f   : > { %3714 = vmatpush.bf16.msra.mxu0 %v5450_v41  ;;  %v5671_v3 = vld [vmem:[%s7348_s25 + $0xa30] sm:$0xf0]  ;;  %v6681_v8 = vld [vmem:[%s7348_s25 + $0x804] sm:$0xf]  ;;  %v5546_v10 = vor.u32 %v6717_v62, %v5543_v1 }
 0x110   : > { %3727 = vmatpush.bf16.msra.mxu1 %v5578_v30  ;;  %v5799_v5 = vld [vmem:[%s7348_s25 + $0xb30] sm:$0xf0]  ;;  %v5674_v14 = vor.u32 %v6749_v2, %v5671_v3  ;;  %v6713_v15 = vld [vmem:[%s7348_s25 + $0x904] sm:$0xf] }
 0x111   : > { %3740 = vmatpush.bf16.msra.mxu2 %v5706_v42  ;;  %v5399_v9 = vld [vmem:[%s7348_s25 + $0x810] sm:$0xf0]  ;;  %v6745_v17 = vld [vmem:[%s7348_s25 + $0xa04] sm:$0xf]  ;;  %v5802_v19 = vor.u32 %v6781_v4, %v5799_v5 }
 0x112   : > { %3753 = vmatpush.bf16.msra.mxu3 %v5834_v47  ;;  %v5527_v16 = vld [vmem:[%s7348_s25 + $0x910] sm:$0xf0]  ;;  %v6777_v21 = vld [vmem:[%s7348_s25 + $0xb04] sm:$0xf]  ;;  %v5402_v27 = vor.u32 %v6681_v8, %v5399_v9 }
 0x113   : > { %3715 = vmatpush.bf16.msra.mxu0 %v5434_v55  ;;  %v5655_v20 = vld [vmem:[%s7348_s25 + $0xa10] sm:$0xf0]  ;;  %v6837_v24 = vld [vmem:[%s7348_s25 + $0xce4] sm:$0xf]  ;;  %v5530_v35 = vor.u32 %v6713_v15, %v5527_v16 }
 0x114   : > { %3728 = vmatpush.bf16.msra.mxu1 %v5562_v58  ;;  %v5783_v22 = vld [vmem:[%s7348_s25 + $0xb10] sm:$0xf0]  ;;  %v6869_v26 = vld [vmem:[%s7348_s25 + $0xde4] sm:$0xf]  ;;  %v5658_v36 = vor.u32 %v6745_v17, %v5655_v20 }
 0x115   : > { %3741 = vmatpush.bf16.msra.mxu2 %v5690_v59  ;;  %v6023_v25 = vld [vmem:[%s7348_s25 + $0xcf0] sm:$0xf0]  ;;  %v6901_v29 = vld [vmem:[%s7348_s25 + $0xee4] sm:$0xf]  ;;  %v5786_v40 = vor.u32 %v6777_v21, %v5783_v22  ;;  %v7017_v59 = vld [vmem:[#allocation1] sm:$0xff] }
 0x116   : > { %3754 = vmatpush.bf16.msra.mxu3 %v5818_v0  ;;  %v6151_v28 = vld [vmem:[%s7348_s25 + $0xdf0] sm:$0xf0]  ;;  %v6933_v38 = vld [vmem:[%s7348_s25 + $0xfe4] sm:$0xf]  ;;  %v6026_v41 = vor.u32 %v6837_v24, %v6023_v25  ;;  %v7018_v0 = vld [vmem:[#allocation1 + $0x12] sm:$0xff] }
 0x117   : > { %3716 = vmatpush.bf16.msra.mxu0 %v5418_v6  ;;  %v6279_v34 = vld [vmem:[%s7348_s25 + $0xef0] sm:$0xf0]  ;;  %v6154_v30 = vor.u32 %v6869_v26, %v6151_v28  ;;  %v6833_v43 = vld [vmem:[%s7348_s25 + $0xcc4] sm:$0xf] }
 0x118   : > { %3729 = vmatpush.bf16.msra.mxu1 %v5546_v10  ;;  %v6407_v39 = vld [vmem:[%s7348_s25 + $0xff0] sm:$0xf0]  ;;  %v6282_v42 = vor.u32 %v6901_v29, %v6279_v34  ;;  %v6865_v45 = vld [vmem:[%s7348_s25 + $0xdc4] sm:$0xf] }
 0x119   : > { %3742 = vmatpush.bf16.msra.mxu2 %v5674_v14  ;;  %v6007_v44 = vld [vmem:[%s7348_s25 + $0xcd0] sm:$0xf0]  ;;  %v6410_v46 = vor.u32 %v6933_v38, %v6407_v39  ;;  %v6897_v48 = vld [vmem:[%s7348_s25 + $0xec4] sm:$0xf] }
 0x11a   : > { %3755 = vmatpush.bf16.msra.mxu3 %v5802_v19  ;;  %v6135_v47 = vld [vmem:[%s7348_s25 + $0xdd0] sm:$0xf0]  ;;  %v6929_v50 = vld [vmem:[%s7348_s25 + $0xfc4] sm:$0xf]  ;;  %v6010_v52 = vor.u32 %v6833_v43, %v6007_v44  ;;  %v3511_v19 = vpop.f32.mrf.mxu0 }
 0x11b   : > { %3717 = vmatpush.bf16.msra.mxu0 %v5402_v27  ;;  %v6263_v49 = vld [vmem:[%s7348_s25 + $0xed0] sm:$0xf0]  ;;  %v6138_v53 = vor.u32 %v6865_v45, %v6135_v47  ;;  %v6829_v55 = vld [vmem:[%s7348_s25 + $0xca4] sm:$0xf]  ;;  %v3512_v22 = vadd.f32 %v3511_v19, %v7828_v56 }
 0x11c   : > { %3730 = vmatpush.bf16.msra.mxu1 %v5530_v35  ;;  %v6391_v51 = vld [vmem:[%s7348_s25 + $0xfd0] sm:$0xf0]  ;;  %v6266_v54 = vor.u32 %v6897_v48, %v6263_v49  ;;  %v6861_v58 = vld [vmem:[%s7348_s25 + $0xda4] sm:$0xf] }
 0x11d   : > { %3743 = vmatpush.bf16.msra.mxu2 %v5658_v36  ;;  %v5991_v57 = vld [vmem:[%s7348_s25 + $0xcb0] sm:$0xf0]  ;;  %v6394_v60 = vor.u32 %v6929_v50, %v6391_v51  ;;  %v6893_v62 = vld [vmem:[%s7348_s25 + $0xea4] sm:$0xf] }
 0x11e   : > { %3756 = vmatpush.bf16.msra.mxu3 %v5786_v40  ;;  %3718 = vmatmul.bf16.vlgmr.msra.gmra.mxu0 %v7017_v59  ;;  %v6119_v61 = vld [vmem:[%s7348_s25 + $0xdb0] sm:$0xf0]  ;;  %v7019_v1 = vld [vmem:[#allocation1 + $0x9] sm:$0xff]  ;;  %v5994_v5 = vor.u32 %v6829_v55, %v5991_v57 }
 0x11f   : > { %3762 = vmatpush.bf16.msrb.mxu0 %v6026_v41  ;;  %v6247_v63 = vld [vmem:[%s7348_s25 + $0xeb0] sm:$0xf0]  ;;  %3731 = vmatmul.bf16.vlgmr.msra.gmra.mxu1 %v7019_v1  ;;  %v6925_v2 = vld [vmem:[%s7348_s25 + $0xfa4] sm:$0xf]  ;;  %v6122_v6 = vor.u32 %v6861_v58, %v6119_v61 }
 0x120   : > { %3775 = vmatpush.bf16.msrb.mxu1 %v6154_v30  ;;  %3744 = vmatmul.bf16.vlgmr.msra.gmra.mxu2 %v7018_v0  ;;  %v6375_v3 = vld [vmem:[%s7348_s25 + $0xfb0] sm:$0xf0]  ;;  %v6250_v8 = vor.u32 %v6893_v62, %v6247_v63  ;;  %v6825_v9 = vld [vmem:[%s7348_s25 + $0xc84] sm:$0xf] }
 0x121   : > { %3788 = vmatpush.bf16.msrb.mxu2 %v6282_v42  ;;  %v7020_v4 = vld [vmem:[#allocation1 + $0x1b] sm:$0xff]  ;;  %v6857_v14 = vld [vmem:[%s7348_s25 + $0xd84] sm:$0xf]  ;;  %v6378_v15 = vor.u32 %v6925_v2, %v6375_v3  ;;  %v3524_v24 = vpop.f32.mrf.mxu1 }
 0x122   : > { %3801 = vmatpush.bf16.msrb.mxu3 %v6410_v46  ;;  %v5975_v10 = vld [vmem:[%s7348_s25 + $0xc90] sm:$0xf0]  ;;  %v6889_v17 = vld [vmem:[%s7348_s25 + $0xe84] sm:$0xf]  ;;  %v3525_v35 = vadd.f32 %v3524_v24, %v3512_v22  ;;  %v3513_v55 = vpop.f32.mrf.mxu0  ;;  %v4493_v24 = vld [vmem:[%s7348_s25 + $0xe8] sm:$0xf] }
 0x123   : > { %3757 = vmatmul.bf16.vlgmr.msra.gmra.mxu3 %v7020_v4  ;;  %3763 = vmatpush.bf16.msrb.mxu0 %v6010_v52  ;;  %v6103_v16 = vld [vmem:[%s7348_s25 + $0xd90] sm:$0xf0]  ;;  %v6921_v20 = vld [vmem:[%s7348_s25 + $0xf84] sm:$0xf]  ;;  %v5978_v23 = vor.u32 %v6825_v9, %v5975_v10  ;;  %v4461_v55 = vld [vmem:[%s7348_s25 + $0xa8] sm:$0xf] }
 0x124   : > { %3776 = vmatpush.bf16.msrb.mxu1 %v6138_v53  ;;  %v6231_v18 = vld [vmem:[%s7348_s25 + $0xe90] sm:$0xf0]  ;;  %v6106_v25 = vor.u32 %v6857_v14, %v6103_v16  ;;  %v6821_v27 = vld [vmem:[%s7348_s25 + $0xc64] sm:$0xf] }
 0x125   : > { %3789 = vmatpush.bf16.msrb.mxu2 %v6266_v54  ;;  %v6359_v21 = vld [vmem:[%s7348_s25 + $0xf90] sm:$0xf0]  ;;  %v6234_v26 = vor.u32 %v6889_v17, %v6231_v18  ;;  %v6853_v29 = vld [vmem:[%s7348_s25 + $0xd64] sm:$0xf] }
 0x126   : > { %3802 = vmatpush.bf16.msrb.mxu3 %v6394_v60  ;;  %v5959_v28 = vld [vmem:[%s7348_s25 + $0xc70] sm:$0xf0]  ;;  %v6362_v34 = vor.u32 %v6921_v20, %v6359_v21  ;;  %v6885_v38 = vld [vmem:[%s7348_s25 + $0xe64] sm:$0xf] }
 0x127   : > { %3764 = vmatpush.bf16.msrb.mxu0 %v5994_v5  ;;  %v6087_v36 = vld [vmem:[%s7348_s25 + $0xd70] sm:$0xf0]  ;;  %v6917_v39 = vld [vmem:[%s7348_s25 + $0xf64] sm:$0xf]  ;;  %v5962_v41 = vor.u32 %v6821_v27, %v5959_v28  ;;  %v3537_v47 = vpop.f32.mrf.mxu2 }
 0x128   : > { %3777 = vmatpush.bf16.msrb.mxu1 %v6122_v6  ;;  %v6215_v56 = vld [vmem:[%s7348_s25 + $0xe70] sm:$0xf0]  ;;  %v6090_v30 = vor.u32 %v6853_v29, %v6087_v36  ;;  %v6817_v43 = vld [vmem:[%s7348_s25 + $0xc44] sm:$0xf]  ;;  %v3538_v51 = vadd.f32 %v3537_v47, %v3525_v35  ;;  %v3550_v52 = vpop.f32.mrf.mxu3  ;;  %v6488_v29 = vld [vmem:[%s7348_s25 + $0x1f4] sm:$0xf0] }
 0x129   : > { %3790 = vmatpush.bf16.msrb.mxu2 %v6250_v8  ;;  %v6343_v40 = vld [vmem:[%s7348_s25 + $0xf70] sm:$0xf0]  ;;  %v6218_v42 = vor.u32 %v6885_v38, %v6215_v56  ;;  %v6849_v45 = vld [vmem:[%s7348_s25 + $0xd44] sm:$0xf]  ;;  %v3526_v58 = vpop.f32.mrf.mxu1  ;;  %v6520_v35 = vld [vmem:[%s7348_s25 + $0x2f4] sm:$0xf0] }
 0x12a   : > { %3803 = vmatpush.bf16.msrb.mxu3 %v6378_v15  ;;  %v5943_v44 = vld [vmem:[%s7348_s25 + $0xc50] sm:$0xf0]  ;;  %v6346_v46 = vor.u32 %v6917_v39, %v6343_v40  ;;  %v6881_v49 = vld [vmem:[%s7348_s25 + $0xe44] sm:$0xf]  ;;  %v7895_v59 = vadd.f32 %v3550_v52, %v3538_v51  ;;  %v4877_v56 = vld [vmem:[%s7348_s25 + $0x3e8] sm:$0xf] }
 0x12b   : > { %3765 = vmatpush.bf16.msrb.mxu0 %v5978_v23  ;;  %v6071_v48 = vld [vmem:[%s7348_s25 + $0xd50] sm:$0xf0]  ;;  %v6913_v53 = vld [vmem:[%s7348_s25 + $0xf44] sm:$0xf]  ;;  %v5946_v57 = vor.u32 %v6817_v43, %v5943_v44  ;;  %v6552_v39 = vld [vmem:[%s7348_s25 + $0x3f4] sm:$0xf0] }
 0x12c   : > { %3778 = vmatpush.bf16.msrb.mxu1 %v6106_v25  ;;  %v6199_v50 = vld [vmem:[%s7348_s25 + $0xe50] sm:$0xf0]  ;;  %v6074_v60 = vor.u32 %v6849_v45, %v6071_v48  ;;  %v6813_v62 = vld [vmem:[%s7348_s25 + $0xc24] sm:$0xf]  ;;  %v6456_v25 = vld [vmem:[%s7348_s25 + $0xf4] sm:$0xf0] }
 0x12d   : > { %3791 = vmatpush.bf16.msrb.mxu2 %v6234_v26  ;;  %v6327_v54 = vld [vmem:[%s7348_s25 + $0xf50] sm:$0xf0]  ;;  %v6202_v61 = vor.u32 %v6881_v49, %v6199_v50  ;;  %v6845_v0 = vld [vmem:[%s7348_s25 + $0xd24] sm:$0xf]  ;;  %v4621_v26 = vld [vmem:[%s7348_s25 + $0x1e8] sm:$0xf] }
 0x12e   : > { %3804 = vmatpush.bf16.msrb.mxu3 %v6362_v34  ;;  %v5927_v63 = vld [vmem:[%s7348_s25 + $0xc30] sm:$0xf0]  ;;  %v6330_v1 = vor.u32 %v6913_v53, %v6327_v54  ;;  %v6877_v3 = vld [vmem:[%s7348_s25 + $0xe24] sm:$0xf]  ;;  %v4749_v34 = vld [vmem:[%s7348_s25 + $0x2e8] sm:$0xf] }
 0x12f   : > { %3766 = vmatpush.bf16.msrb.mxu0 %v5962_v41  ;;  %v6055_v2 = vld [vmem:[%s7348_s25 + $0xd30] sm:$0xf0]  ;;  %v6909_v5 = vld [vmem:[%s7348_s25 + $0xf24] sm:$0xf]  ;;  %v5930_v8 = vor.u32 %v6813_v62, %v5927_v63  ;;  %v3539_v23 = vpop.f32.mrf.mxu2  ;;  %v4494_v41 = vor.u32 %v6456_v25, %v4493_v24  ;;  %v4477_v43 = vld [vmem:[%s7348_s25 + $0xc8] sm:$0xf] }
 0x130   : > { %3779 = vmatpush.bf16.msrb.mxu1 %v6090_v30  ;;  %v6183_v4 = vld [vmem:[%s7348_s25 + $0xe30] sm:$0xf0]  ;;  %v6809_v9 = vld [vmem:[%s7348_s25 + $0xc04] sm:$0xf]  ;;  %v6058_v14 = vor.u32 %v6845_v0, %v6055_v2  ;;  %v3552_v27 = vpop.f32.mrf.mxu3  ;;  %v4622_v30 = vor.u32 %v6488_v29, %v4621_v26  ;;  %v6452_v44 = vld [vmem:[%s7348_s25 + $0xd4] sm:$0xf0] }
 0x131   : > { %3792 = vmatpush.bf16.msrb.mxu2 %v6218_v42  ;;  %v6311_v6 = vld [vmem:[%s7348_s25 + $0xf30] sm:$0xf0]  ;;  %v6186_v15 = vor.u32 %v6877_v3, %v6183_v4  ;;  %v6841_v16 = vld [vmem:[%s7348_s25 + $0xd04] sm:$0xf]  ;;  %v4750_v42 = vor.u32 %v6520_v35, %v4749_v34  ;;  %v4605_v45 = vld [vmem:[%s7348_s25 + $0x1c8] sm:$0xf]  ;;  %v4478_v52 = vor.u32 %v6452_v44, %v4477_v43 }
 0x132   : > { %3805 = vmatpush.bf16.msrb.mxu3 %v6346_v46  ;;  %v5911_v10 = vld [vmem:[%s7348_s25 + $0xc10] sm:$0xf0]  ;;  %v6873_v18 = vld [vmem:[%s7348_s25 + $0xe04] sm:$0xf]  ;;  %v6314_v19 = vor.u32 %v6909_v5, %v6311_v6  ;;  %v4878_v46 = vor.u32 %v6552_v39, %v4877_v56  ;;  %v6484_v47 = vld [vmem:[%s7348_s25 + $0x1d4] sm:$0xf0] }
 0x133   : > { %3767 = vmatpush.bf16.msrb.mxu0 %v5946_v57  ;;  %v6039_v17 = vld [vmem:[%s7348_s25 + $0xd10] sm:$0xf0]  ;;  %v6905_v21 = vld [vmem:[%s7348_s25 + $0xf04] sm:$0xf]  ;;  %v5914_v28 = vor.u32 %v6809_v9, %v5911_v10  ;;  %v4733_v48 = vld [vmem:[%s7348_s25 + $0x2c8] sm:$0xf]  ;;  %v4606_v53 = vor.u32 %v6484_v47, %v4605_v45 }
 0x134   : > { %3780 = vmatpush.bf16.msrb.mxu1 %v6074_v60  ;;  %v6167_v20 = vld [vmem:[%s7348_s25 + $0xe10] sm:$0xf0]  ;;  %v6042_v36 = vor.u32 %v6841_v16, %v6039_v17  ;;  %v6516_v49 = vld [vmem:[%s7348_s25 + $0x2d4] sm:$0xf0]  ;;  %v4861_v50 = vld [vmem:[%s7348_s25 + $0x3c8] sm:$0xf] }
 0x135   : > { %3793 = vmatpush.bf16.msrb.mxu2 %v6202_v61  ;;  %v6295_v22 = vld [vmem:[%s7348_s25 + $0xf10] sm:$0xf0]  ;;  %v6170_v38 = vor.u32 %v6873_v18, %v6167_v20  ;;  %v6548_v51 = vld [vmem:[%s7348_s25 + $0x3d4] sm:$0xf0]  ;;  %v4734_v54 = vor.u32 %v6516_v49, %v4733_v48  ;;  %v4589_v58 = vld [vmem:[%s7348_s25 + $0x1a8] sm:$0xf] }
 0x136   : > { %3806 = vmatpush.bf16.msrb.mxu3 %v6330_v1  ;;  %v6298_v40 = vor.u32 %v6905_v21, %v6295_v22  ;;  %v6448_v57 = vld [vmem:[%s7348_s25 + $0xb4] sm:$0xf0]  ;;  %v7021_v60 = vld [vmem:[#allocation1 + $0x24] sm:$0xff]  ;;  %v4862_v61 = vor.u32 %v6548_v51, %v4861_v50  ;;  %v4717_v63 = vld [vmem:[%s7348_s25 + $0x2a8] sm:$0xf] }
 0x137   : > { %3768 = vmatpush.bf16.msrb.mxu0 %v5930_v8  ;;  %v6480_v62 = vld [vmem:[%s7348_s25 + $0x1b4] sm:$0xf0]  ;;  %v7022_v1 = vld [vmem:[#allocation1 + $0x36] sm:$0xff]  ;;  %v7023_v2 = vld [vmem:[#allocation1 + $0x2d] sm:$0xff]  ;;  %v4462_v6 = vor.u32 %v6448_v57, %v4461_v55 }
 0x138   : > { %3781 = vmatpush.bf16.msrb.mxu1 %v6058_v14  ;;  %v6512_v0 = vld [vmem:[%s7348_s25 + $0x2b4] sm:$0xf0]  ;;  %v4845_v3 = vld [vmem:[%s7348_s25 + $0x3a8] sm:$0xf]  ;;  %v4590_v8 = vor.u32 %v6480_v62, %v4589_v58 }
 0x139   : > { %3794 = vmatpush.bf16.msrb.mxu2 %v6186_v15  ;;  %v6544_v4 = vld [vmem:[%s7348_s25 + $0x3b4] sm:$0xf0]  ;;  %v4718_v9 = vor.u32 %v6512_v0, %v4717_v63  ;;  %v4445_v10 = vld [vmem:[%s7348_s25 + $0x88] sm:$0xf] }
 0x13a   : > { %3807 = vmatpush.bf16.msrb.mxu3 %v6314_v19  ;;  %v7024_v5 = vld [vmem:[#allocation1 + $0x3f] sm:$0xff]  ;;  %v4573_v15 = vld [vmem:[%s7348_s25 + $0x188] sm:$0xf]  ;;  %v4846_v16 = vor.u32 %v6544_v4, %v4845_v3 }
 0x13b   : > { %3769 = vmatpush.bf16.msrb.mxu0 %v5914_v28  ;;  %v6444_v14 = vld [vmem:[%s7348_s25 + $0x94] sm:$0xf0]  ;;  %v4701_v18 = vld [vmem:[%s7348_s25 + $0x288] sm:$0xf]  ;;  %v3563_v20 = vpop.f32.mrf.mxu0 }
 0x13c   : > { %3782 = vmatpush.bf16.msrb.mxu1 %v6042_v36  ;;  %v6476_v17 = vld [vmem:[%s7348_s25 + $0x194] sm:$0xf0]  ;;  %v4829_v21 = vld [vmem:[%s7348_s25 + $0x388] sm:$0xf]  ;;  %v3564_v23 = vadd.f32 %v3563_v20, %v7895_v59  ;;  %v4446_v24 = vor.u32 %v6444_v14, %v4445_v10  ;;  %v3576_v25 = vpop.f32.mrf.mxu1 }
 0x13d   : > { %3795 = vmatpush.bf16.msrb.mxu2 %v6170_v38  ;;  %v6508_v19 = vld [vmem:[%s7348_s25 + $0x294] sm:$0xf0]  ;;  %v4574_v26 = vor.u32 %v6476_v17, %v4573_v15  ;;  %v4429_v28 = vld [vmem:[%s7348_s25 + $0x68] sm:$0xf] }
 0x13e   : > { %3808 = vmatpush.bf16.msrb.mxu3 %v6298_v40  ;;  %3770 = vmatmul.bf16.vlgmr.msrb.gmra.mxu0 %v7021_v60  ;;  %v6540_v22 = vld [vmem:[%s7348_s25 + $0x394] sm:$0xf0]  ;;  %v4702_v27 = vor.u32 %v6508_v19, %v4701_v18  ;;  %v4557_v34 = vld [vmem:[%s7348_s25 + $0x168] sm:$0xf]  ;;  %v3577_v36 = vadd.f32 %v3576_v25, %v3564_v23 }
 0x13f   : > { %3814 = vmatpush.bf16.msra.mxu0 %v4494_v41  ;;  %3783 = vmatmul.bf16.vlgmr.msrb.gmra.mxu1 %v7023_v2  ;;  %v6440_v29 = vld [vmem:[%s7348_s25 + $0x74] sm:$0xf0]  ;;  %v4830_v35 = vor.u32 %v6540_v22, %v4829_v21  ;;  %v4685_v56 = vld [vmem:[%s7348_s25 + $0x268] sm:$0xf] }
 0x140   : > { %3827 = vmatpush.bf16.msra.mxu1 %v4622_v30  ;;  %3796 = vmatmul.bf16.vlgmr.msrb.gmra.mxu2 %v7022_v1  ;;  %v6472_v38 = vld [vmem:[%s7348_s25 + $0x174] sm:$0xf0]  ;;  %v4813_v39 = vld [vmem:[%s7348_s25 + $0x368] sm:$0xf]  ;;  %v4430_v41 = vor.u32 %v6440_v29, %v4429_v28 }
 0x141   : > { %3840 = vmatpush.bf16.msra.mxu2 %v4750_v42  ;;  %3809 = vmatmul.bf16.vlgmr.msrb.gmra.mxu3 %v7024_v5  ;;  %v6504_v59 = vld [vmem:[%s7348_s25 + $0x274] sm:$0xf0]  ;;  %v4558_v30 = vor.u32 %v6472_v38, %v4557_v34  ;;  %v4413_v43 = vld [vmem:[%s7348_s25 + $0x48] sm:$0xf] }
 0x142   : > { %3853 = vmatpush.bf16.msra.mxu3 %v4878_v46  ;;  %v6536_v40 = vld [vmem:[%s7348_s25 + $0x374] sm:$0xf0]  ;;  %v4686_v42 = vor.u32 %v6504_v59, %v4685_v56  ;;  %v4541_v45 = vld [vmem:[%s7348_s25 + $0x148] sm:$0xf] }
 0x143   : > { %3815 = vmatpush.bf16.msra.mxu0 %v4478_v52  ;;  %v6436_v44 = vld [vmem:[%s7348_s25 + $0x54] sm:$0xf0]  ;;  %v4814_v46 = vor.u32 %v6536_v40, %v4813_v39  ;;  %v3589_v47 = vpop.f32.mrf.mxu2  ;;  %v4669_v49 = vld [vmem:[%s7348_s25 + $0x248] sm:$0xf]  ;;  %v3565_v55 = vpop.f32.mrf.mxu0 }
 0x144   : > { %3828 = vmatpush.bf16.msra.mxu1 %v4606_v53  ;;  %v6468_v48 = vld [vmem:[%s7348_s25 + $0x154] sm:$0xf0]  ;;  %v3590_v51 = vadd.f32 %v3589_v47, %v3577_v36  ;;  %v3602_v52 = vpop.f32.mrf.mxu3  ;;  %v4797_v53 = vld [vmem:[%s7348_s25 + $0x348] sm:$0xf]  ;;  %v4414_v57 = vor.u32 %v6436_v44, %v4413_v43  ;;  %v3578_v58 = vpop.f32.mrf.mxu1 }
 0x145   : > { %3841 = vmatpush.bf16.msra.mxu2 %v4734_v54  ;;  %v6500_v50 = vld [vmem:[%s7348_s25 + $0x254] sm:$0xf0]  ;;  %v4397_v63 = vld [vmem:[%s7348_s25 + $0x28] sm:$0xf] }
 0x146   : > { %3854 = vmatpush.bf16.msra.mxu3 %v4862_v61  ;;  %v6532_v54 = vld [vmem:[%s7348_s25 + $0x354] sm:$0xf0]  ;;  %v7962_v60 = vadd.f32 %v3602_v52, %v3590_v51  ;;  %v4542_v61 = vor.u32 %v6468_v48, %v4541_v45  ;;  %v4670_v62 = vor.u32 %v6500_v50, %v4669_v49  ;;  %v4525_v1 = vld [vmem:[%s7348_s25 + $0x128] sm:$0xf] }
 0x147   : > { %3816 = vmatpush.bf16.msra.mxu0 %v4462_v6  ;;  %v6432_v0 = vld [vmem:[%s7348_s25 + $0x34] sm:$0xf0]  ;;  %v4798_v2 = vor.u32 %v6532_v54, %v4797_v53  ;;  %v4653_v4 = vld [vmem:[%s7348_s25 + $0x228] sm:$0xf] }
 0x148   : > { %3829 = vmatpush.bf16.msra.mxu1 %v4590_v8  ;;  %v6464_v3 = vld [vmem:[%s7348_s25 + $0x134] sm:$0xf0]  ;;  %v4781_v6 = vld [vmem:[%s7348_s25 + $0x328] sm:$0xf] }
 0x149   : > { %3842 = vmatpush.bf16.msra.mxu2 %v4718_v9  ;;  %v6496_v5 = vld [vmem:[%s7348_s25 + $0x234] sm:$0xf0]  ;;  %v4398_v9 = vor.u32 %v6432_v0, %v4397_v63  ;;  %v4381_v10 = vld [vmem:[%s7348_s25 + $0x8] sm:$0xf]  ;;  %v4526_v15 = vor.u32 %v6464_v3, %v4525_v1 }
 0x14a   : > { %3855 = vmatpush.bf16.msra.mxu3 %v4846_v16  ;;  %v6528_v8 = vld [vmem:[%s7348_s25 + $0x334] sm:$0xf0]  ;;  %v4654_v16 = vor.u32 %v6496_v5, %v4653_v4  ;;  %v4509_v17 = vld [vmem:[%s7348_s25 + $0x108] sm:$0xf] }
 0x14b   : > { %3817 = vmatpush.bf16.msra.mxu0 %v4446_v24  ;;  %v6428_v14 = vld [vmem:[%s7348_s25 + $0x14] sm:$0xf0]  ;;  %v4637_v19 = vld [vmem:[%s7348_s25 + $0x208] sm:$0xf]  ;;  %v4782_v20 = vor.u32 %v6528_v8, %v4781_v6  ;;  %v3591_v24 = vpop.f32.mrf.mxu2 }
 0x14c   : > { %3830 = vmatpush.bf16.msra.mxu1 %v4574_v26  ;;  %v6460_v18 = vld [vmem:[%s7348_s25 + $0x114] sm:$0xf0]  ;;  %v4765_v22 = vld [vmem:[%s7348_s25 + $0x308] sm:$0xf]  ;;  %v3604_v28 = vpop.f32.mrf.mxu3  ;;  %v4382_v29 = vor.u32 %v6428_v14, %v4381_v10 }
 0x14d   : > { %3843 = vmatpush.bf16.msra.mxu2 %v4702_v27  ;;  %v6492_v21 = vld [vmem:[%s7348_s25 + $0x214] sm:$0xf0]  ;;  %v5005_v25 = vld [vmem:[%s7348_s25 + $0x4e8] sm:$0xf]  ;;  %v4510_v38 = vor.u32 %v6460_v18, %v4509_v17 }
 0x14e   : > { %3856 = vmatpush.bf16.msra.mxu3 %v4830_v35  ;;  %v6524_v23 = vld [vmem:[%s7348_s25 + $0x314] sm:$0xf0]  ;;  %v5133_v27 = vld [vmem:[%s7348_s25 + $0x5e8] sm:$0xf]  ;;  %v4638_v56 = vor.u32 %v6492_v21, %v4637_v19 }
 0x14f   : > { %3818 = vmatpush.bf16.msra.mxu0 %v4430_v41  ;;  %v6584_v26 = vld [vmem:[%s7348_s25 + $0x4f4] sm:$0xf0]  ;;  %v5261_v35 = vld [vmem:[%s7348_s25 + $0x6e8] sm:$0xf]  ;;  %v4766_v40 = vor.u32 %v6524_v23, %v4765_v22 }
 0x150   : > { %3831 = vmatpush.bf16.msra.mxu1 %v4558_v30  ;;  %v6616_v34 = vld [vmem:[%s7348_s25 + $0x5f4] sm:$0xf0]  ;;  %v5389_v59 = vld [vmem:[%s7348_s25 + $0x7e8] sm:$0xf]  ;;  %v5006_v41 = vor.u32 %v6584_v26, %v5005_v25 }
 0x151   : > { %3844 = vmatpush.bf16.msra.mxu2 %v4686_v42  ;;  %v6648_v36 = vld [vmem:[%s7348_s25 + $0x6f4] sm:$0xf0]  ;;  %v5134_v30 = vor.u32 %v6616_v34, %v5133_v27  ;;  %v4989_v43 = vld [vmem:[%s7348_s25 + $0x4c8] sm:$0xf] }
 0x152   : > { %3857 = vmatpush.bf16.msra.mxu3 %v4814_v46  ;;  %v6680_v39 = vld [vmem:[%s7348_s25 + $0x7f4] sm:$0xf0]  ;;  %v5262_v42 = vor.u32 %v6648_v36, %v5261_v35  ;;  %v5117_v45 = vld [vmem:[%s7348_s25 + $0x5c8] sm:$0xf] }
 0x153   : > { %3819 = vmatpush.bf16.msra.mxu0 %v4414_v57  ;;  %v6580_v44 = vld [vmem:[%s7348_s25 + $0x4d4] sm:$0xf0]  ;;  %v5390_v46 = vor.u32 %v6680_v39, %v5389_v59  ;;  %v5245_v48 = vld [vmem:[%s7348_s25 + $0x6c8] sm:$0xf] }
 0x154   : > { %3832 = vmatpush.bf16.msra.mxu1 %v4542_v61  ;;  %v6612_v47 = vld [vmem:[%s7348_s25 + $0x5d4] sm:$0xf0]  ;;  %v5373_v50 = vld [vmem:[%s7348_s25 + $0x7c8] sm:$0xf]  ;;  %v4990_v52 = vor.u32 %v6580_v44, %v4989_v43 }
 0x155   : > { %3845 = vmatpush.bf16.msra.mxu2 %v4670_v62  ;;  %v6644_v49 = vld [vmem:[%s7348_s25 + $0x6d4] sm:$0xf0]  ;;  %v5118_v53 = vor.u32 %v6612_v47, %v5117_v45  ;;  %v4973_v55 = vld [vmem:[%s7348_s25 + $0x4a8] sm:$0xf] }
 0x156   : > { %3858 = vmatpush.bf16.msra.mxu3 %v4798_v2  ;;  %v6676_v51 = vld [vmem:[%s7348_s25 + $0x7d4] sm:$0xf0]  ;;  %v5246_v54 = vor.u32 %v6644_v49, %v5245_v48  ;;  %v5101_v58 = vld [vmem:[%s7348_s25 + $0x5a8] sm:$0xf] }
 0x157   : > { %3820 = vmatpush.bf16.msra.mxu0 %v4398_v9  ;;  %v6576_v57 = vld [vmem:[%s7348_s25 + $0x4b4] sm:$0xf0]  ;;  %v5374_v61 = vor.u32 %v6676_v51, %v5373_v50  ;;  %v5229_v63 = vld [vmem:[%s7348_s25 + $0x6a8] sm:$0xf] }
 0x158   : > { %3833 = vmatpush.bf16.msra.mxu1 %v4526_v15  ;;  %v6608_v62 = vld [vmem:[%s7348_s25 + $0x5b4] sm:$0xf0]  ;;  %v5357_v1 = vld [vmem:[%s7348_s25 + $0x7a8] sm:$0xf]  ;;  %v4974_v3 = vor.u32 %v6576_v57, %v4973_v55 }
 0x159   : > { %3846 = vmatpush.bf16.msra.mxu2 %v4654_v16  ;;  %v6640_v0 = vld [vmem:[%s7348_s25 + $0x6b4] sm:$0xf0]  ;;  %v5102_v4 = vor.u32 %v6608_v62, %v5101_v58  ;;  %v4957_v6 = vld [vmem:[%s7348_s25 + $0x488] sm:$0xf] }
 0x15a   : > { %3859 = vmatpush.bf16.msra.mxu3 %v4782_v20  ;;  %v6672_v2 = vld [vmem:[%s7348_s25 + $0x7b4] sm:$0xf0]  ;;  %v5230_v5 = vor.u32 %v6640_v0, %v5229_v63  ;;  %v5085_v9 = vld [vmem:[%s7348_s25 + $0x588] sm:$0xf] }
 0x15b   : > { %3821 = vmatpush.bf16.msra.mxu0 %v4382_v29  ;;  %v6572_v8 = vld [vmem:[%s7348_s25 + $0x494] sm:$0xf0]  ;;  %v5358_v10 = vor.u32 %v6672_v2, %v5357_v1  ;;  %v5213_v15 = vld [vmem:[%s7348_s25 + $0x688] sm:$0xf]  ;;  %v3615_v20 = vpop.f32.mrf.mxu0 }
 0x15c   : > { %3834 = vmatpush.bf16.msra.mxu1 %v4510_v38  ;;  %v6604_v14 = vld [vmem:[%s7348_s25 + $0x594] sm:$0xf0]  ;;  %v5341_v17 = vld [vmem:[%s7348_s25 + $0x788] sm:$0xf]  ;;  %v4958_v19 = vor.u32 %v6572_v8, %v4957_v6  ;;  %v3628_v26 = vpop.f32.mrf.mxu1 }
 0x15d   : > { %3847 = vmatpush.bf16.msra.mxu2 %v4638_v56  ;;  %v6636_v16 = vld [vmem:[%s7348_s25 + $0x694] sm:$0xf0]  ;;  %v5086_v21 = vor.u32 %v6604_v14, %v5085_v9  ;;  %v4941_v23 = vld [vmem:[%s7348_s25 + $0x468] sm:$0xf]  ;;  %v3629_v35 = vadd.f32 %v3628_v26, %v3615_v20 }
 0x15e   : > { %3860 = vmatpush.bf16.msra.mxu3 %v4766_v40  ;;  %3822 = vmatmul.bf16.vlgmr.msra.gmra.mxu0 %v7462_v32  ;;  %v6668_v18 = vld [vmem:[%s7348_s25 + $0x794] sm:$0xf0]  ;;  %v5214_v22 = vor.u32 %v6636_v16, %v5213_v15  ;;  %v5069_v25 = vld [vmem:[%s7348_s25 + $0x568] sm:$0xf] }
 0x15f   : > { %3866 = vmatpush.bf16.msrb.mxu0 %v5006_v41  ;;  %3835 = vmatmul.bf16.vlgmr.msra.gmra.mxu1 %v7469_v37  ;;  %v6568_v24 = vld [vmem:[%s7348_s25 + $0x474] sm:$0xf0]  ;;  %v5342_v27 = vor.u32 %v6668_v18, %v5341_v17  ;;  %v5197_v29 = vld [vmem:[%s7348_s25 + $0x668] sm:$0xf] }
 0x160   : > { %3879 = vmatpush.bf16.msrb.mxu1 %v5134_v30  ;;  %3848 = vmatmul.bf16.vlgmr.msra.gmra.mxu2 %v7460_v31  ;;  %v6600_v28 = vld [vmem:[%s7348_s25 + $0x574] sm:$0xf0]  ;;  %v5325_v36 = vld [vmem:[%s7348_s25 + $0x768] sm:$0xf]  ;;  %v4942_v56 = vor.u32 %v6568_v24, %v4941_v23 }
 0x161   : > { %3892 = vmatpush.bf16.msrb.mxu2 %v5262_v42  ;;  %3861 = vmatmul.bf16.vlgmr.msra.gmra.mxu3 %v7464_v33  ;;  %v6632_v34 = vld [vmem:[%s7348_s25 + $0x674] sm:$0xf0]  ;;  %v5070_v59 = vor.u32 %v6600_v28, %v5069_v25  ;;  %v4925_v40 = vld [vmem:[%s7348_s25 + $0x448] sm:$0xf] }
 0x162   : > { %3905 = vmatpush.bf16.msrb.mxu3 %v5390_v46  ;;  %v6664_v38 = vld [vmem:[%s7348_s25 + $0x774] sm:$0xf0]  ;;  %v5198_v39 = vor.u32 %v6632_v34, %v5197_v29  ;;  %v5053_v30 = vld [vmem:[%s7348_s25 + $0x548] sm:$0xf] }
 0x163   : > { %3867 = vmatpush.bf16.msrb.mxu0 %v4990_v52  ;;  %v6564_v41 = vld [vmem:[%s7348_s25 + $0x454] sm:$0xf0]  ;;  %v3641_v42 = vpop.f32.mrf.mxu2  ;;  %v5326_v43 = vor.u32 %v6664_v38, %v5325_v36  ;;  %v5181_v45 = vld [vmem:[%s7348_s25 + $0x648] sm:$0xf] }
 0x164   : > { %3880 = vmatpush.bf16.msrb.mxu1 %v5118_v53  ;;  %v6596_v44 = vld [vmem:[%s7348_s25 + $0x554] sm:$0xf0]  ;;  %v3642_v47 = vadd.f32 %v3641_v42, %v3629_v35  ;;  %v3654_v48 = vpop.f32.mrf.mxu3  ;;  %v5309_v49 = vld [vmem:[%s7348_s25 + $0x748] sm:$0xf]  ;;  %v4926_v51 = vor.u32 %v6564_v41, %v4925_v40  ;;  %v3617_v53 = vpop.f32.mrf.mxu0 }
 0x165   : > { %3893 = vmatpush.bf16.msrb.mxu2 %v5246_v54  ;;  %v6628_v46 = vld [vmem:[%s7348_s25 + $0x654] sm:$0xf0]  ;;  %v5054_v54 = vor.u32 %v6596_v44, %v5053_v30  ;;  %v4909_v57 = vld [vmem:[%s7348_s25 + $0x428] sm:$0xf]  ;;  %v3630_v62 = vpop.f32.mrf.mxu1 }
 0x166   : > { %3906 = vmatpush.bf16.msrb.mxu3 %v5374_v61  ;;  %v6660_v50 = vld [vmem:[%s7348_s25 + $0x754] sm:$0xf0]  ;;  %v8032_v52 = vadd.f32 %v3654_v48, %v3642_v47  ;;  %v5182_v55 = vor.u32 %v6628_v46, %v5181_v45  ;;  %v5037_v61 = vld [vmem:[%s7348_s25 + $0x528] sm:$0xf] }
 0x167   : > { %3868 = vmatpush.bf16.msrb.mxu0 %v4974_v3  ;;  %v6560_v58 = vld [vmem:[%s7348_s25 + $0x434] sm:$0xf0]  ;;  %v5310_v63 = vor.u32 %v6660_v50, %v5309_v49  ;;  %v5165_v1 = vld [vmem:[%s7348_s25 + $0x628] sm:$0xf] }
 0x168   : > { %3881 = vmatpush.bf16.msrb.mxu1 %v5102_v4  ;;  %v6592_v0 = vld [vmem:[%s7348_s25 + $0x534] sm:$0xf0]  ;;  %v5293_v3 = vld [vmem:[%s7348_s25 + $0x728] sm:$0xf] }
 0x169   : > { %3894 = vmatpush.bf16.msrb.mxu2 %v5230_v5  ;;  %v6624_v2 = vld [vmem:[%s7348_s25 + $0x634] sm:$0xf0]  ;;  %v4910_v5 = vor.u32 %v6560_v58, %v4909_v57  ;;  %v4893_v6 = vld [vmem:[%s7348_s25 + $0x408] sm:$0xf]  ;;  %v5038_v9 = vor.u32 %v6592_v0, %v5037_v61 }
 0x16a   : > { %3907 = vmatpush.bf16.msrb.mxu3 %v5358_v10  ;;  %v6656_v4 = vld [vmem:[%s7348_s25 + $0x734] sm:$0xf0]  ;;  %v5166_v10 = vor.u32 %v6624_v2, %v5165_v1  ;;  %v5021_v14 = vld [vmem:[%s7348_s25 + $0x508] sm:$0xf] }
 0x16b   : > { %3869 = vmatpush.bf16.msrb.mxu0 %v4958_v19  ;;  %v6556_v8 = vld [vmem:[%s7348_s25 + $0x414] sm:$0xf0]  ;;  %v5149_v16 = vld [vmem:[%s7348_s25 + $0x608] sm:$0xf]  ;;  %v3643_v17 = vpop.f32.mrf.mxu2  ;;  %v5294_v18 = vor.u32 %v6656_v4, %v5293_v3 }
 0x16c   : > { %3882 = vmatpush.bf16.msrb.mxu1 %v5086_v21  ;;  %v6588_v15 = vld [vmem:[%s7348_s25 + $0x514] sm:$0xf0]  ;;  %v5277_v20 = vld [vmem:[%s7348_s25 + $0x708] sm:$0xf]  ;;  %v4894_v26 = vor.u32 %v6556_v8, %v4893_v6 }
 0x16d   : > { %3895 = vmatpush.bf16.msrb.mxu2 %v5214_v22  ;;  %v6620_v19 = vld [vmem:[%s7348_s25 + $0x614] sm:$0xf0]  ;;  %v3656_v22 = vpop.f32.mrf.mxu3  ;;  %v5517_v23 = vld [vmem:[%s7348_s25 + $0x8e8] sm:$0xf]  ;;  %v5022_v34 = vor.u32 %v6588_v15, %v5021_v14 }
 0x16e   : > { %3908 = vmatpush.bf16.msrb.mxu3 %v5342_v27  ;;  %v6652_v21 = vld [vmem:[%s7348_s25 + $0x714] sm:$0xf0]  ;;  %v5645_v25 = vld [vmem:[%s7348_s25 + $0x9e8] sm:$0xf]  ;;  %v5150_v35 = vor.u32 %v6620_v19, %v5149_v16 }
 0x16f   : > { %3870 = vmatpush.bf16.msrb.mxu0 %v4942_v56  ;;  %v6712_v24 = vld [vmem:[%s7348_s25 + $0x8f4] sm:$0xf0]  ;;  %v5773_v28 = vld [vmem:[%s7348_s25 + $0xae8] sm:$0xf]  ;;  %v5278_v56 = vor.u32 %v6652_v21, %v5277_v20 }
 0x170   : > { %3883 = vmatpush.bf16.msrb.mxu1 %v5070_v59  ;;  %v6744_v27 = vld [vmem:[%s7348_s25 + $0x9f4] sm:$0xf0]  ;;  %v5901_v36 = vld [vmem:[%s7348_s25 + $0xbe8] sm:$0xf]  ;;  %v5518_v59 = vor.u32 %v6712_v24, %v5517_v23 }
 0x171   : > { %3896 = vmatpush.bf16.msrb.mxu2 %v5198_v39  ;;  %v6776_v29 = vld [vmem:[%s7348_s25 + $0xaf4] sm:$0xf0]  ;;  %v5646_v39 = vor.u32 %v6744_v27, %v5645_v25  ;;  %v5501_v41 = vld [vmem:[%s7348_s25 + $0x8c8] sm:$0xf] }
 0x172   : > { %3909 = vmatpush.bf16.msrb.mxu3 %v5326_v43  ;;  %v6808_v38 = vld [vmem:[%s7348_s25 + $0xbf4] sm:$0xf0]  ;;  %v5774_v40 = vor.u32 %v6776_v29, %v5773_v28  ;;  %v5629_v42 = vld [vmem:[%s7348_s25 + $0x9c8] sm:$0xf] }
 0x173   : > { %3871 = vmatpush.bf16.msrb.mxu0 %v4926_v51  ;;  %v6708_v30 = vld [vmem:[%s7348_s25 + $0x8d4] sm:$0xf0]  ;;  %v5902_v43 = vor.u32 %v6808_v38, %v5901_v36  ;;  %v5757_v45 = vld [vmem:[%s7348_s25 + $0xac8] sm:$0xf] }
 0x174   : > { %3884 = vmatpush.bf16.msrb.mxu1 %v5054_v54  ;;  %v6740_v44 = vld [vmem:[%s7348_s25 + $0x9d4] sm:$0xf0]  ;;  %v5885_v47 = vld [vmem:[%s7348_s25 + $0xbc8] sm:$0xf]  ;;  %v5502_v49 = vor.u32 %v6708_v30, %v5501_v41 }
 0x175   : > { %3897 = vmatpush.bf16.msrb.mxu2 %v5182_v55  ;;  %v6772_v46 = vld [vmem:[%s7348_s25 + $0xad4] sm:$0xf0]  ;;  %v5630_v50 = vor.u32 %v6740_v44, %v5629_v42  ;;  %v5485_v53 = vld [vmem:[%s7348_s25 + $0x8a8] sm:$0xf] }
 0x176   : > { %3910 = vmatpush.bf16.msrb.mxu3 %v5310_v63  ;;  %v6804_v48 = vld [vmem:[%s7348_s25 + $0xbd4] sm:$0xf0]  ;;  %v5758_v51 = vor.u32 %v6772_v46, %v5757_v45  ;;  %v5613_v55 = vld [vmem:[%s7348_s25 + $0x9a8] sm:$0xf] }
 0x177   : > { %3872 = vmatpush.bf16.msrb.mxu0 %v4910_v5  ;;  %v6704_v54 = vld [vmem:[%s7348_s25 + $0x8b4] sm:$0xf0]  ;;  %v5886_v57 = vor.u32 %v6804_v48, %v5885_v47  ;;  %v5741_v61 = vld [vmem:[%s7348_s25 + $0xaa8] sm:$0xf] }
 0x178   : > { %3885 = vmatpush.bf16.msrb.mxu1 %v5038_v9  ;;  %v6736_v58 = vld [vmem:[%s7348_s25 + $0x9b4] sm:$0xf0]  ;;  %v5869_v63 = vld [vmem:[%s7348_s25 + $0xba8] sm:$0xf]  ;;  %v5486_v1 = vor.u32 %v6704_v54, %v5485_v53 }
 0x179   : > { %3898 = vmatpush.bf16.msrb.mxu2 %v5166_v10  ;;  %v6768_v62 = vld [vmem:[%s7348_s25 + $0xab4] sm:$0xf0]  ;;  %v5614_v2 = vor.u32 %v6736_v58, %v5613_v55  ;;  %v5469_v4 = vld [vmem:[%s7348_s25 + $0x888] sm:$0xf] }
 0x17a   : > { %3911 = vmatpush.bf16.msrb.mxu3 %v5294_v18  ;;  %v6800_v0 = vld [vmem:[%s7348_s25 + $0xbb4] sm:$0xf0]  ;;  %v5742_v3 = vor.u32 %v6768_v62, %v5741_v61  ;;  %v5597_v6 = vld [vmem:[%s7348_s25 + $0x988] sm:$0xf] }
 0x17b   : > { %3873 = vmatpush.bf16.msrb.mxu0 %v4894_v26  ;;  %v6700_v5 = vld [vmem:[%s7348_s25 + $0x894] sm:$0xf0]  ;;  %v5870_v8 = vor.u32 %v6800_v0, %v5869_v63  ;;  %v5725_v10 = vld [vmem:[%s7348_s25 + $0xa88] sm:$0xf]  ;;  %v3667_v18 = vpop.f32.mrf.mxu0 }
 0x17c   : > { %3886 = vmatpush.bf16.msrb.mxu1 %v5022_v34  ;;  %v6732_v9 = vld [vmem:[%s7348_s25 + $0x994] sm:$0xf0]  ;;  %v5853_v15 = vld [vmem:[%s7348_s25 + $0xb88] sm:$0xf]  ;;  %v5470_v17 = vor.u32 %v6700_v5, %v5469_v4  ;;  %v3668_v24 = vadd.f32 %v3667_v18, %v8032_v52  ;;  %v3680_v25 = vpop.f32.mrf.mxu1 }
 0x17d   : > { %3899 = vmatpush.bf16.msrb.mxu2 %v5150_v35  ;;  %v6764_v14 = vld [vmem:[%s7348_s25 + $0xa94] sm:$0xf0]  ;;  %v5598_v19 = vor.u32 %v6732_v9, %v5597_v6  ;;  %v5453_v21 = vld [vmem:[%s7348_s25 + $0x868] sm:$0xf] }
 0x17e   : > { %3912 = vmatpush.bf16.msrb.mxu3 %v5278_v56  ;;  %3874 = vmatmul.bf16.vlgmr.msrb.gmra.mxu0 %v7501_v11  ;;  %v6796_v16 = vld [vmem:[%s7348_s25 + $0xb94] sm:$0xf0]  ;;  %v5726_v20 = vor.u32 %v6764_v14, %v5725_v10  ;;  %v5581_v23 = vld [vmem:[%s7348_s25 + $0x968] sm:$0xf]  ;;  %v3681_v36 = vadd.f32 %v3680_v25, %v3668_v24 }
 0x17f   : > { %3918 = vmatpush.bf16.msra.mxu0 %v5518_v59  ;;  %3887 = vmatmul.bf16.vlgmr.msrb.gmra.mxu1 %v7505_v13  ;;  %v6696_v22 = vld [vmem:[%s7348_s25 + $0x874] sm:$0xf0]  ;;  %v5854_v26 = vor.u32 %v6796_v16, %v5853_v15  ;;  %v5709_v28 = vld [vmem:[%s7348_s25 + $0xa68] sm:$0xf] }
 0x180   : > { %3931 = vmatpush.bf16.msra.mxu1 %v5646_v39  ;;  %3900 = vmatmul.bf16.vlgmr.msrb.gmra.mxu2 %v7498_v7  ;;  %v6728_v27 = vld [vmem:[%s7348_s25 + $0x974] sm:$0xf0]  ;;  %v5837_v34 = vld [vmem:[%s7348_s25 + $0xb68] sm:$0xf]  ;;  %v5454_v38 = vor.u32 %v6696_v22, %v5453_v21 }
 0x181   : > { %3944 = vmatpush.bf16.msra.mxu2 %v5774_v40  ;;  %3913 = vmatmul.bf16.vlgmr.msrb.gmra.mxu3 %v7503_v12  ;;  %v6760_v29 = vld [vmem:[%s7348_s25 + $0xa74] sm:$0xf0]  ;;  %v5582_v52 = vor.u32 %v6728_v27, %v5581_v23  ;;  %v5437_v59 = vld [vmem:[%s7348_s25 + $0x848] sm:$0xf] }
 0x182   : > { %3957 = vmatpush.bf16.msra.mxu3 %v5902_v43  ;;  %v6792_v35 = vld [vmem:[%s7348_s25 + $0xb74] sm:$0xf0]  ;;  %v5710_v56 = vor.u32 %v6760_v29, %v5709_v28  ;;  %v5565_v40 = vld [vmem:[%s7348_s25 + $0x948] sm:$0xf] }
 0x183   : > { %3919 = vmatpush.bf16.msra.mxu0 %v5502_v49  ;;  %v6692_v39 = vld [vmem:[%s7348_s25 + $0x854] sm:$0xf0]  ;;  %v3693_v41 = vpop.f32.mrf.mxu2  ;;  %v5838_v30 = vor.u32 %v6792_v35, %v5837_v34  ;;  %v5693_v43 = vld [vmem:[%s7348_s25 + $0xa48] sm:$0xf] }
 0x184   : > { %3932 = vmatpush.bf16.msra.mxu1 %v5630_v50  ;;  %v6724_v42 = vld [vmem:[%s7348_s25 + $0x954] sm:$0xf0]  ;;  %v3694_v45 = vadd.f32 %v3693_v41, %v3681_v36  ;;  %v3706_v46 = vpop.f32.mrf.mxu3  ;;  %v5821_v47 = vld [vmem:[%s7348_s25 + $0xb48] sm:$0xf]  ;;  %v5438_v49 = vor.u32 %v6692_v39, %v5437_v59  ;;  %v3682_v61 = vpop.f32.mrf.mxu1 }
 0x185   : > { %3945 = vmatpush.bf16.msra.mxu2 %v5758_v51  ;;  %v6756_v44 = vld [vmem:[%s7348_s25 + $0xa54] sm:$0xf0]  ;;  %v3669_v51 = vpop.f32.mrf.mxu0  ;;  %v5566_v53 = vor.u32 %v6724_v42, %v5565_v40  ;;  %v5421_v55 = vld [vmem:[%s7348_s25 + $0x828] sm:$0xf] }
 0x186   : > { %3958 = vmatpush.bf16.msra.mxu3 %v5886_v57  ;;  %v6788_v48 = vld [vmem:[%s7348_s25 + $0xb54] sm:$0xf0]  ;;  %v8103_v50 = vadd.f32 %v3706_v46, %v3694_v45  ;;  %v5694_v54 = vor.u32 %v6756_v44, %v5693_v43  ;;  %v5549_v58 = vld [vmem:[%s7348_s25 + $0x928] sm:$0xf] }
 0x187   : > { %3920 = vmatpush.bf16.msra.mxu0 %v5486_v1  ;;  %v6688_v57 = vld [vmem:[%s7348_s25 + $0x834] sm:$0xf0]  ;;  %v5822_v62 = vor.u32 %v6788_v48, %v5821_v47  ;;  %v5677_v0 = vld [vmem:[%s7348_s25 + $0xa28] sm:$0xf] }
 0x188   : > { %3933 = vmatpush.bf16.msra.mxu1 %v5614_v2  ;;  %v6720_v63 = vld [vmem:[%s7348_s25 + $0x934] sm:$0xf0]  ;;  %v5805_v2 = vld [vmem:[%s7348_s25 + $0xb28] sm:$0xf]  ;;  %v5422_v4 = vor.u32 %v6688_v57, %v5421_v55 }
 0x189   : > { %3946 = vmatpush.bf16.msra.mxu2 %v5742_v3  ;;  %v6752_v1 = vld [vmem:[%s7348_s25 + $0xa34] sm:$0xf0]  ;;  %v5405_v5 = vld [vmem:[%s7348_s25 + $0x808] sm:$0xf] }
 0x18a   : > { %3959 = vmatpush.bf16.msra.mxu3 %v5870_v8  ;;  %v6784_v3 = vld [vmem:[%s7348_s25 + $0xb34] sm:$0xf0]  ;;  %v5550_v8 = vor.u32 %v6720_v63, %v5549_v58  ;;  %v5678_v9 = vor.u32 %v6752_v1, %v5677_v0  ;;  %v5533_v10 = vld [vmem:[%s7348_s25 + $0x908] sm:$0xf] }
 0x18b   : > { %3921 = vmatpush.bf16.msra.mxu0 %v5470_v17  ;;  %v6684_v6 = vld [vmem:[%s7348_s25 + $0x814] sm:$0xf0]  ;;  %v5661_v15 = vld [vmem:[%s7348_s25 + $0xa08] sm:$0xf]  ;;  %v3695_v16 = vpop.f32.mrf.mxu2  ;;  %v5806_v17 = vor.u32 %v6784_v3, %v5805_v2 }
 0x18c   : > { %3934 = vmatpush.bf16.msra.mxu1 %v5598_v19  ;;  %v6716_v14 = vld [vmem:[%s7348_s25 + $0x914] sm:$0xf0]  ;;  %v5789_v19 = vld [vmem:[%s7348_s25 + $0xb08] sm:$0xf]  ;;  %v3708_v21 = vpop.f32.mrf.mxu3  ;;  %v5406_v25 = vor.u32 %v6684_v6, %v5405_v5 }
 0x18d   : > { %3947 = vmatpush.bf16.msra.mxu2 %v5726_v20  ;;  %v6748_v18 = vld [vmem:[%s7348_s25 + $0xa14] sm:$0xf0]  ;;  %v6029_v22 = vld [vmem:[%s7348_s25 + $0xce8] sm:$0xf]  ;;  %v5534_v29 = vor.u32 %v6716_v14, %v5533_v10 }
 0x18e   : > { %3960 = vmatpush.bf16.msra.mxu3 %v5854_v26  ;;  %v6780_v20 = vld [vmem:[%s7348_s25 + $0xb14] sm:$0xf0]  ;;  %v6157_v24 = vld [vmem:[%s7348_s25 + $0xde8] sm:$0xf]  ;;  %v5662_v34 = vor.u32 %v6748_v18, %v5661_v15 }
 0x18f   : > { %3922 = vmatpush.bf16.msra.mxu0 %v5454_v38  ;;  %v6840_v23 = vld [vmem:[%s7348_s25 + $0xcf4] sm:$0xf0]  ;;  %v6285_v27 = vld [vmem:[%s7348_s25 + $0xee8] sm:$0xf]  ;;  %v5790_v38 = vor.u32 %v6780_v20, %v5789_v19 }
 0x190   : > { %3935 = vmatpush.bf16.msra.mxu1 %v5582_v52  ;;  %v6872_v26 = vld [vmem:[%s7348_s25 + $0xdf4] sm:$0xf0]  ;;  %v6413_v35 = vld [vmem:[%s7348_s25 + $0xfe8] sm:$0xf]  ;;  %v6030_v52 = vor.u32 %v6840_v23, %v6029_v22 }
 0x191   : > { %3948 = vmatpush.bf16.msra.mxu2 %v5710_v56  ;;  %v6904_v28 = vld [vmem:[%s7348_s25 + $0xef4] sm:$0xf0]  ;;  %v6158_v56 = vor.u32 %v6872_v26, %v6157_v24  ;;  %v6013_v39 = vld [vmem:[%s7348_s25 + $0xcc8] sm:$0xf] }
 0x192   : > { %3961 = vmatpush.bf16.msra.mxu3 %v5838_v30  ;;  %v6936_v36 = vld [vmem:[%s7348_s25 + $0xff4] sm:$0xf0]  ;;  %v6286_v59 = vor.u32 %v6904_v28, %v6285_v27  ;;  %v6141_v41 = vld [vmem:[%s7348_s25 + $0xdc8] sm:$0xf] }
 0x193   : > { %3923 = vmatpush.bf16.msra.mxu0 %v5438_v49  ;;  %v6836_v40 = vld [vmem:[%s7348_s25 + $0xcd4] sm:$0xf0]  ;;  %v6414_v30 = vor.u32 %v6936_v36, %v6413_v35  ;;  %v6269_v43 = vld [vmem:[%s7348_s25 + $0xec8] sm:$0xf] }
 0x194   : > { %3936 = vmatpush.bf16.msra.mxu1 %v5566_v53  ;;  %v6868_v42 = vld [vmem:[%s7348_s25 + $0xdd4] sm:$0xf0]  ;;  %v6397_v45 = vld [vmem:[%s7348_s25 + $0xfc8] sm:$0xf]  ;;  %v6014_v47 = vor.u32 %v6836_v40, %v6013_v39 }
 0x195   : > { %3949 = vmatpush.bf16.msra.mxu2 %v5694_v54  ;;  %v6900_v44 = vld [vmem:[%s7348_s25 + $0xed4] sm:$0xf0]  ;;  %v6142_v48 = vor.u32 %v6868_v42, %v6141_v41  ;;  %v5997_v51 = vld [vmem:[%s7348_s25 + $0xca8] sm:$0xf] }
 0x196   : > { %3962 = vmatpush.bf16.msra.mxu3 %v5822_v62  ;;  %v6932_v46 = vld [vmem:[%s7348_s25 + $0xfd4] sm:$0xf0]  ;;  %v6270_v49 = vor.u32 %v6900_v44, %v6269_v43  ;;  %v6125_v54 = vld [vmem:[%s7348_s25 + $0xda8] sm:$0xf] }
 0x197   : > { %3924 = vmatpush.bf16.msra.mxu0 %v5422_v4  ;;  %v6832_v53 = vld [vmem:[%s7348_s25 + $0xcb4] sm:$0xf0]  ;;  %v6398_v57 = vor.u32 %v6932_v46, %v6397_v45  ;;  %v6253_v61 = vld [vmem:[%s7348_s25 + $0xea8] sm:$0xf] }
 0x198   : > { %3937 = vmatpush.bf16.msra.mxu1 %v5550_v8  ;;  %v7025_v55 = vld [vmem:[#allocation1] sm:$0xff]  ;;  %v7026_v63 = vld [vmem:[#allocation1 + $0x12] sm:$0xff]  ;;  %v7027_v0 = vld [vmem:[#allocation1 + $0x9] sm:$0xff]  ;;  %v5998_v4 = vor.u32 %v6832_v53, %v5997_v51 }
 0x199   : > { %3950 = vmatpush.bf16.msra.mxu2 %v5678_v9  ;;  %v6864_v58 = vld [vmem:[%s7348_s25 + $0xdb4] sm:$0xf0]  ;;  %v6381_v1 = vld [vmem:[%s7348_s25 + $0xfa8] sm:$0xf] }
 0x19a   : > { %3963 = vmatpush.bf16.msra.mxu3 %v5806_v17  ;;  %v6896_v62 = vld [vmem:[%s7348_s25 + $0xeb4] sm:$0xf0]  ;;  %v6126_v5 = vor.u32 %v6864_v58, %v6125_v54  ;;  %v5981_v8 = vld [vmem:[%s7348_s25 + $0xc88] sm:$0xf] }
 0x19b   : > { %3925 = vmatpush.bf16.msra.mxu0 %v5406_v25  ;;  %v6928_v2 = vld [vmem:[%s7348_s25 + $0xfb4] sm:$0xf0]  ;;  %v6254_v6 = vor.u32 %v6896_v62, %v6253_v61  ;;  %v6109_v10 = vld [vmem:[%s7348_s25 + $0xd88] sm:$0xf]  ;;  %v3719_v18 = vpop.f32.mrf.mxu0 }
 0x19c   : > { %3938 = vmatpush.bf16.msra.mxu1 %v5534_v29  ;;  %v7028_v3 = vld [vmem:[#allocation1 + $0x1b] sm:$0xff]  ;;  %v6382_v14 = vor.u32 %v6928_v2, %v6381_v1  ;;  %v6237_v16 = vld [vmem:[%s7348_s25 + $0xe88] sm:$0xf]  ;;  %v3720_v21 = vadd.f32 %v3719_v18, %v8103_v50  ;;  %v3732_v23 = vpop.f32.mrf.mxu1 }
 0x19d   : > { %3951 = vmatpush.bf16.msra.mxu2 %v5662_v34  ;;  %v6828_v9 = vld [vmem:[%s7348_s25 + $0xc94] sm:$0xf0]  ;;  %v6365_v19 = vld [vmem:[%s7348_s25 + $0xf88] sm:$0xf] }
 0x19e   : > { %3964 = vmatpush.bf16.msra.mxu3 %v5790_v38  ;;  %3926 = vmatmul.bf16.vlgmr.msra.gmra.mxu0 %v7025_v55  ;;  %v6860_v15 = vld [vmem:[%s7348_s25 + $0xd94] sm:$0xf0]  ;;  %v5982_v22 = vor.u32 %v6828_v9, %v5981_v8  ;;  %v5965_v26 = vld [vmem:[%s7348_s25 + $0xc68] sm:$0xf]  ;;  %v3733_v34 = vadd.f32 %v3732_v23, %v3720_v21 }
 0x19f   : > { %3970 = vmatpush.bf16.msrb.mxu0 %v6030_v52  ;;  %3939 = vmatmul.bf16.vlgmr.msra.gmra.mxu1 %v7027_v0  ;;  %v6892_v17 = vld [vmem:[%s7348_s25 + $0xe94] sm:$0xf0]  ;;  %v6110_v24 = vor.u32 %v6860_v15, %v6109_v10  ;;  %v6093_v28 = vld [vmem:[%s7348_s25 + $0xd68] sm:$0xf] }
 0x1a0   : > { %3983 = vmatpush.bf16.msrb.mxu1 %v6158_v56  ;;  %3952 = vmatmul.bf16.vlgmr.msra.gmra.mxu2 %v7026_v63  ;;  %v6924_v20 = vld [vmem:[%s7348_s25 + $0xf94] sm:$0xf0]  ;;  %v6238_v25 = vor.u32 %v6892_v17, %v6237_v16  ;;  %v6221_v36 = vld [vmem:[%s7348_s25 + $0xe68] sm:$0xf] }
 0x1a1   : > { %3996 = vmatpush.bf16.msrb.mxu2 %v6286_v59  ;;  %3965 = vmatmul.bf16.vlgmr.msra.gmra.mxu3 %v7028_v3  ;;  %v6824_v27 = vld [vmem:[%s7348_s25 + $0xc74] sm:$0xf0]  ;;  %v6366_v29 = vor.u32 %v6924_v20, %v6365_v19  ;;  %v6349_v38 = vld [vmem:[%s7348_s25 + $0xf68] sm:$0xf] }
 0x1a2   : > { %4009 = vmatpush.bf16.msrb.mxu3 %v6414_v30  ;;  %v6856_v35 = vld [vmem:[%s7348_s25 + $0xd74] sm:$0xf0]  ;;  %v5966_v56 = vor.u32 %v6824_v27, %v5965_v26  ;;  %v5949_v40 = vld [vmem:[%s7348_s25 + $0xc48] sm:$0xf]  ;;  %v6486_v26 = vld [vmem:[%s7348_s25 + $0x1ec] sm:$0xf] }
 0x1a3   : > { %3971 = vmatpush.bf16.msrb.mxu0 %v6014_v47  ;;  %v6888_v50 = vld [vmem:[%s7348_s25 + $0xe74] sm:$0xf0]  ;;  %v6094_v59 = vor.u32 %v6856_v35, %v6093_v28  ;;  %v6077_v30 = vld [vmem:[%s7348_s25 + $0xd48] sm:$0xf]  ;;  %v3745_v43 = vpop.f32.mrf.mxu2  ;;  %v3721_v53 = vpop.f32.mrf.mxu0  ;;  %v4751_v35 = vld [vmem:[%s7348_s25 + $0x2f8] sm:$0xf0] }
 0x1a4   : > { %3984 = vmatpush.bf16.msrb.mxu1 %v6142_v48  ;;  %v6920_v52 = vld [vmem:[%s7348_s25 + $0xf74] sm:$0xf0]  ;;  %v6222_v39 = vor.u32 %v6888_v50, %v6221_v36  ;;  %v6205_v45 = vld [vmem:[%s7348_s25 + $0xe48] sm:$0xf]  ;;  %v3746_v47 = vadd.f32 %v3745_v43, %v3733_v34  ;;  %v3734_v55 = vpop.f32.mrf.mxu1  ;;  %v6518_v34 = vld [vmem:[%s7348_s25 + $0x2ec] sm:$0xf] }
 0x1a5   : > { %3997 = vmatpush.bf16.msrb.mxu2 %v6270_v49  ;;  %v6820_v41 = vld [vmem:[%s7348_s25 + $0xc54] sm:$0xf0]  ;;  %v6350_v42 = vor.u32 %v6920_v52, %v6349_v38  ;;  %v6333_v49 = vld [vmem:[%s7348_s25 + $0xf48] sm:$0xf]  ;;  %v6550_v38 = vld [vmem:[%s7348_s25 + $0x3ec] sm:$0xf] }
 0x1a6   : > { %4010 = vmatpush.bf16.msrb.mxu3 %v6398_v57  ;;  %v6852_v44 = vld [vmem:[%s7348_s25 + $0xd54] sm:$0xf0]  ;;  %v3758_v48 = vpop.f32.mrf.mxu3  ;;  %v5950_v54 = vor.u32 %v6820_v41, %v5949_v40  ;;  %v5933_v62 = vld [vmem:[%s7348_s25 + $0xc28] sm:$0xf]  ;;  %v4879_v52 = vld [vmem:[%s7348_s25 + $0x3f8] sm:$0xf0]  ;;  %v4754_v40 = vor.u32 %v6518_v34, %v4751_v35 }
 0x1a7   : > { %3972 = vmatpush.bf16.msrb.mxu0 %v5998_v4  ;;  %v6884_v46 = vld [vmem:[%s7348_s25 + $0xe54] sm:$0xf0]  ;;  %v8170_v57 = vadd.f32 %v3758_v48, %v3746_v47  ;;  %v6078_v58 = vor.u32 %v6852_v44, %v6077_v30  ;;  %v6061_v0 = vld [vmem:[%s7348_s25 + $0xd28] sm:$0xf]  ;;  %v6450_v41 = vld [vmem:[%s7348_s25 + $0xcc] sm:$0xf]  ;;  %v4882_v43 = vor.u32 %v6550_v38, %v4879_v52 }
 0x1a8   : > { %3985 = vmatpush.bf16.msrb.mxu1 %v6126_v5  ;;  %v6916_v51 = vld [vmem:[%s7348_s25 + $0xf54] sm:$0xf0]  ;;  %v6206_v61 = vor.u32 %v6884_v46, %v6205_v45  ;;  %v6189_v3 = vld [vmem:[%s7348_s25 + $0xe28] sm:$0xf]  ;;  %v4479_v30 = vld [vmem:[%s7348_s25 + $0xd8] sm:$0xf0] }
 0x1a9   : > { %3998 = vmatpush.bf16.msrb.mxu2 %v6254_v6  ;;  %v6816_v63 = vld [vmem:[%s7348_s25 + $0xc34] sm:$0xf0]  ;;  %v6334_v1 = vor.u32 %v6916_v51, %v6333_v49  ;;  %v6317_v5 = vld [vmem:[%s7348_s25 + $0xf28] sm:$0xf]  ;;  %v4607_v44 = vld [vmem:[%s7348_s25 + $0x1d8] sm:$0xf0]  ;;  %v4482_v49 = vor.u32 %v6450_v41, %v4479_v30 }
 0x1aa   : > { %4011 = vmatpush.bf16.msrb.mxu3 %v6382_v14  ;;  %v6848_v2 = vld [vmem:[%s7348_s25 + $0xd34] sm:$0xf0]  ;;  %v5934_v8 = vor.u32 %v6816_v63, %v5933_v62  ;;  %v5917_v9 = vld [vmem:[%s7348_s25 + $0xc08] sm:$0xf]  ;;  %v6514_v45 = vld [vmem:[%s7348_s25 + $0x2cc] sm:$0xf] }
 0x1ab   : > { %3973 = vmatpush.bf16.msrb.mxu0 %v5982_v22  ;;  %v6880_v4 = vld [vmem:[%s7348_s25 + $0xe34] sm:$0xf0]  ;;  %v6062_v14 = vor.u32 %v6848_v2, %v6061_v0  ;;  %v6045_v16 = vld [vmem:[%s7348_s25 + $0xd08] sm:$0xf]  ;;  %v3747_v23 = vpop.f32.mrf.mxu2  ;;  %v4735_v46 = vld [vmem:[%s7348_s25 + $0x2d8] sm:$0xf0] }
 0x1ac   : > { %3986 = vmatpush.bf16.msrb.mxu1 %v6110_v24  ;;  %v6912_v6 = vld [vmem:[%s7348_s25 + $0xf34] sm:$0xf0]  ;;  %v6190_v15 = vor.u32 %v6880_v4, %v6189_v3  ;;  %v6173_v18 = vld [vmem:[%s7348_s25 + $0xe08] sm:$0xf]  ;;  %v6454_v24 = vld [vmem:[%s7348_s25 + $0xec] sm:$0xf]  ;;  %v4738_v53 = vor.u32 %v6514_v45, %v4735_v46 }
 0x1ad   : > { %3999 = vmatpush.bf16.msrb.mxu2 %v6238_v25  ;;  %v6812_v10 = vld [vmem:[%s7348_s25 + $0xc14] sm:$0xf0]  ;;  %v6318_v19 = vor.u32 %v6912_v6, %v6317_v5  ;;  %v6301_v21 = vld [vmem:[%s7348_s25 + $0xf08] sm:$0xf]  ;;  %v4495_v25 = vld [vmem:[%s7348_s25 + $0xf8] sm:$0xf0] }
 0x1ae   : > { %4012 = vmatpush.bf16.msrb.mxu3 %v6366_v29  ;;  %v6844_v17 = vld [vmem:[%s7348_s25 + $0xd14] sm:$0xf0]  ;;  %v3760_v27 = vpop.f32.mrf.mxu3  ;;  %v5918_v28 = vor.u32 %v6812_v10, %v5917_v9  ;;  %v4623_v29 = vld [vmem:[%s7348_s25 + $0x1f8] sm:$0xf0]  ;;  %v6546_v47 = vld [vmem:[%s7348_s25 + $0x3cc] sm:$0xf] }
 0x1af   : > { %3974 = vmatpush.bf16.msrb.mxu0 %v5966_v56  ;;  %v6876_v20 = vld [vmem:[%s7348_s25 + $0xe14] sm:$0xf0]  ;;  %v6046_v36 = vor.u32 %v6844_v17, %v6045_v16  ;;  %v4863_v48 = vld [vmem:[%s7348_s25 + $0x3d8] sm:$0xf0]  ;;  %v6510_v0 = vld [vmem:[%s7348_s25 + $0x2ac] sm:$0xf] }
 0x1b0   : > { %3987 = vmatpush.bf16.msrb.mxu1 %v6094_v59  ;;  %v6908_v22 = vld [vmem:[%s7348_s25 + $0xf14] sm:$0xf0]  ;;  %v6174_v50 = vor.u32 %v6876_v20, %v6173_v18  ;;  %v4498_v59 = vor.u32 %v6454_v24, %v4495_v25  ;;  %v4463_v55 = vld [vmem:[%s7348_s25 + $0xb8] sm:$0xf0]  ;;  %v4866_v62 = vor.u32 %v6546_v47, %v4863_v48  ;;  %v7030_v2 = vld [vmem:[#allocation1 + $0x36] sm:$0xff] }
 0x1b1   : > { %4000 = vmatpush.bf16.msrb.mxu2 %v6222_v39  ;;  %v6302_v56 = vor.u32 %v6908_v22, %v6301_v21  ;;  %v4626_v39 = vor.u32 %v6486_v26, %v4623_v29  ;;  %v4591_v63 = vld [vmem:[%s7348_s25 + $0x1b8] sm:$0xf0]  ;;  %v7031_v3 = vld [vmem:[#allocation1 + $0x2d] sm:$0xff] }
 0x1b2   : > { %4013 = vmatpush.bf16.msrb.mxu3 %v6350_v42  ;;  %v6482_v42 = vld [vmem:[%s7348_s25 + $0x1cc] sm:$0xf]  ;;  %v4847_v5 = vld [vmem:[%s7348_s25 + $0x3b8] sm:$0xf0] }
 0x1b3   : > { %3975 = vmatpush.bf16.msrb.mxu0 %v5950_v54  ;;  %v4610_v51 = vor.u32 %v6482_v42, %v4607_v44  ;;  %v6446_v54 = vld [vmem:[%s7348_s25 + $0xac] sm:$0xf]  ;;  %v7032_v6 = vld [vmem:[#allocation1 + $0x3f] sm:$0xff] }
 0x1b4   : > { %3988 = vmatpush.bf16.msrb.mxu1 %v6078_v58  ;;  %v6478_v58 = vld [vmem:[%s7348_s25 + $0x1ac] sm:$0xf]  ;;  %v4575_v18 = vld [vmem:[%s7348_s25 + $0x198] sm:$0xf0] }
 0x1b5   : > { %4001 = vmatpush.bf16.msrb.mxu2 %v6206_v61  ;;  %v7029_v61 = vld [vmem:[#allocation1 + $0x24] sm:$0xff]  ;;  %v6542_v4 = vld [vmem:[%s7348_s25 + $0x3ac] sm:$0xf]  ;;  %v4594_v9 = vor.u32 %v6478_v58, %v4591_v63 }
 0x1b6   : > { %4014 = vmatpush.bf16.msrb.mxu3 %v6334_v1  ;;  %v4719_v1 = vld [vmem:[%s7348_s25 + $0x2b8] sm:$0xf0]  ;;  %v6474_v16 = vld [vmem:[%s7348_s25 + $0x18c] sm:$0xf]  ;;  %v4850_v17 = vor.u32 %v6542_v4, %v4847_v5 }
 0x1b7   : > { %3976 = vmatpush.bf16.msrb.mxu0 %v5934_v8  ;;  %v4466_v8 = vor.u32 %v6446_v54, %v4463_v55  ;;  %v4722_v10 = vor.u32 %v6510_v0, %v4719_v1  ;;  %v4703_v20 = vld [vmem:[%s7348_s25 + $0x298] sm:$0xf0]  ;;  %v6538_v22 = vld [vmem:[%s7348_s25 + $0x38c] sm:$0xf]  ;;  %v4578_v27 = vor.u32 %v6474_v16, %v4575_v18 }
 0x1b8   : > { %3989 = vmatpush.bf16.msrb.mxu1 %v6062_v14  ;;  %v6442_v14 = vld [vmem:[%s7348_s25 + $0x8c] sm:$0xf]  ;;  %v4831_v23 = vld [vmem:[%s7348_s25 + $0x398] sm:$0xf0] }
 0x1b9   : > { %4002 = vmatpush.bf16.msrb.mxu2 %v6190_v15  ;;  %v4447_v15 = vld [vmem:[%s7348_s25 + $0x98] sm:$0xf0]  ;;  %v6438_v29 = vld [vmem:[%s7348_s25 + $0x6c] sm:$0xf] }
 0x1ba   : > { %4015 = vmatpush.bf16.msrb.mxu3 %v6318_v19  ;;  %v6506_v19 = vld [vmem:[%s7348_s25 + $0x28c] sm:$0xf]  ;;  %v4450_v25 = vor.u32 %v6442_v14, %v4447_v15  ;;  %v4431_v34 = vld [vmem:[%s7348_s25 + $0x78] sm:$0xf0] }
 0x1bb   : > { %3977 = vmatpush.bf16.msrb.mxu0 %v5918_v28  ;;  %v3771_v21 = vpop.f32.mrf.mxu0  ;;  %v4706_v28 = vor.u32 %v6506_v19, %v4703_v20  ;;  %v6470_v35 = vld [vmem:[%s7348_s25 + $0x16c] sm:$0xf]  ;;  %v4559_v38 = vld [vmem:[%s7348_s25 + $0x178] sm:$0xf0] }
 0x1bc   : > { %3990 = vmatpush.bf16.msrb.mxu1 %v6046_v36  ;;  %v3772_v24 = vadd.f32 %v3771_v21, %v8170_v57  ;;  %v3784_v26 = vpop.f32.mrf.mxu1  ;;  %v4834_v36 = vor.u32 %v6538_v22, %v4831_v23  ;;  %v6502_v52 = vld [vmem:[%s7348_s25 + $0x26c] sm:$0xf]  ;;  %v4687_v57 = vld [vmem:[%s7348_s25 + $0x278] sm:$0xf0] }
 0x1bd   : > { %4003 = vmatpush.bf16.msrb.mxu2 %v6174_v50  ;;  %v4690_v41 = vor.u32 %v6502_v52, %v4687_v57  ;;  %v6434_v30 = vld [vmem:[%s7348_s25 + $0x4c] sm:$0xf]  ;;  %v4415_v42 = vld [vmem:[%s7348_s25 + $0x58] sm:$0xf0] }
 0x1be   : > { %4016 = vmatpush.bf16.msrb.mxu3 %v6302_v56  ;;  %3978 = vmatmul.bf16.vlgmr.msrb.gmra.mxu0 %v7029_v61  ;;  %v3785_v50 = vadd.f32 %v3784_v26, %v3772_v24  ;;  %v6534_v56 = vld [vmem:[%s7348_s25 + $0x36c] sm:$0xf]  ;;  %v4543_v46 = vld [vmem:[%s7348_s25 + $0x158] sm:$0xf0]  ;;  %v4418_v58 = vor.u32 %v6434_v30, %v4415_v42 }
 0x1bf   : > { %4022 = vmatpush.bf16.msra.mxu0 %v4498_v59  ;;  %3991 = vmatmul.bf16.vlgmr.msrb.gmra.mxu1 %v7031_v3  ;;  %v4815_v59 = vld [vmem:[%s7348_s25 + $0x378] sm:$0xf0]  ;;  %v6498_v47 = vld [vmem:[%s7348_s25 + $0x24c] sm:$0xf] }
 0x1c0   : > { %4035 = vmatpush.bf16.msra.mxu1 %v4626_v39  ;;  %4004 = vmatmul.bf16.vlgmr.msrb.gmra.mxu2 %v7030_v2  ;;  %v4434_v39 = vor.u32 %v6438_v29, %v4431_v34  ;;  %v4818_v44 = vor.u32 %v6534_v56, %v4815_v59  ;;  %v4671_v48 = vld [vmem:[%s7348_s25 + $0x258] sm:$0xf0]  ;;  %v6430_v1 = vld [vmem:[%s7348_s25 + $0x2c] sm:$0xf] }
 0x1c1   : > { %4048 = vmatpush.bf16.msra.mxu2 %v4754_v40  ;;  %4017 = vmatmul.bf16.vlgmr.msrb.gmra.mxu3 %v7032_v6  ;;  %v4562_v40 = vor.u32 %v6470_v35, %v4559_v38  ;;  %v4799_v54 = vld [vmem:[%s7348_s25 + $0x358] sm:$0xf0]  ;;  %v4674_v0 = vor.u32 %v6498_v47, %v4671_v48  ;;  %v6462_v3 = vld [vmem:[%s7348_s25 + $0x12c] sm:$0xf] }
 0x1c2   : > { %4061 = vmatpush.bf16.msra.mxu3 %v4882_v43  ;;  %v6466_v43 = vld [vmem:[%s7348_s25 + $0x14c] sm:$0xf]  ;;  %v4399_v2 = vld [vmem:[%s7348_s25 + $0x38] sm:$0xf0] }
 0x1c3   : > { %4023 = vmatpush.bf16.msra.mxu0 %v4482_v49  ;;  %v3797_v45 = vpop.f32.mrf.mxu2  ;;  %v3773_v55 = vpop.f32.mrf.mxu0  ;;  %v4546_v63 = vor.u32 %v6466_v43, %v4543_v46  ;;  %v4527_v5 = vld [vmem:[%s7348_s25 + $0x138] sm:$0xf0]  ;;  %v6494_v6 = vld [vmem:[%s7348_s25 + $0x22c] sm:$0xf]  ;;  %v4402_v15 = vor.u32 %v6430_v1, %v4399_v2 }
 0x1c4   : > { %4036 = vmatpush.bf16.msra.mxu1 %v4610_v51  ;;  %v3798_v49 = vadd.f32 %v3797_v45, %v3785_v50  ;;  %v3810_v51 = vpop.f32.mrf.mxu3  ;;  %v3786_v61 = vpop.f32.mrf.mxu1  ;;  %v4783_v14 = vld [vmem:[%s7348_s25 + $0x338] sm:$0xf0]  ;;  %v6426_v16 = vld [vmem:[%s7348_s25 + $0xc] sm:$0xf]  ;;  %v4530_v19 = vor.u32 %v6462_v3, %v4527_v5 }
 0x1c5   : > { %4049 = vmatpush.bf16.msra.mxu2 %v4738_v53  ;;  %v6530_v53 = vld [vmem:[%s7348_s25 + $0x34c] sm:$0xf]  ;;  %v4511_v22 = vld [vmem:[%s7348_s25 + $0x118] sm:$0xf0] }
 0x1c6   : > { %4062 = vmatpush.bf16.msra.mxu3 %v4866_v62  ;;  %v3811_v62 = vadd.f32 %v3810_v51, %v3798_v49  ;;  %v4802_v4 = vor.u32 %v6530_v53, %v4799_v54  ;;  %v6458_v21 = vld [vmem:[%s7348_s25 + $0x10c] sm:$0xf]  ;;  %v5007_v29 = vld [vmem:[%s7348_s25 + $0x4f8] sm:$0xf0] }
 0x1c7   : > { %4024 = vmatpush.bf16.msra.mxu0 %v4466_v8  ;;  %v4655_v8 = vld [vmem:[%s7348_s25 + $0x238] sm:$0xf0]  ;;  %v6490_v23 = vld [vmem:[%s7348_s25 + $0x20c] sm:$0xf]  ;;  %v4514_v57 = vor.u32 %v6458_v21, %v4511_v22 }
 0x1c8   : > { %4037 = vmatpush.bf16.msra.mxu1 %v4594_v9  ;;  %v4234_v9 = vrot.slane %v3811_v62, 6  ;;  %v4658_v20 = vor.u32 %v6494_v6, %v4655_v8  ;;  %v6522_v26 = vld [vmem:[%s7348_s25 + $0x30c] sm:$0xf]  ;;  %v5135_v50 = vld [vmem:[%s7348_s25 + $0x5f8] sm:$0xf0] }
 0x1c9   : > { %4050 = vmatpush.bf16.msra.mxu2 %v4722_v10  ;;  %v6526_v10 = vld [vmem:[%s7348_s25 + $0x32c] sm:$0xf]  ;;  %v5263_v52 = vld [vmem:[%s7348_s25 + $0x6f8] sm:$0xf0] }
 0x1ca   : > { %4063 = vmatpush.bf16.msra.mxu3 %v4850_v17  ;;  %v4383_v17 = vld [vmem:[%s7348_s25 + $0x18] sm:$0xf0]  ;;  %v8249_v18 = vsel %vm4237_vm3, %v7962_v60, %v4234_v9  ;;  %v4786_v24 = vor.u32 %v6526_v10, %v4783_v14  ;;  %v6614_v34 = vld [vmem:[%s7348_s25 + $0x5ec] sm:$0xf] }
 0x1cb   : > { %4025 = vmatpush.bf16.msra.mxu0 %v4450_v25  ;;  %v4639_v25 = vld [vmem:[%s7348_s25 + $0x218] sm:$0xf0]  ;;  %v3799_v60 = vpop.f32.mrf.mxu2  ;;  %v6646_v38 = vld [vmem:[%s7348_s25 + $0x6ec] sm:$0xf]  ;;  %v5138_v30 = vor.u32 %v6614_v34, %v5135_v50 }
 0x1cc   : > { %4038 = vmatpush.bf16.msra.mxu1 %v4578_v27  ;;  %v4767_v27 = vld [vmem:[%s7348_s25 + $0x318] sm:$0xf0]  ;;  %v3812_v35 = vpop.f32.mrf.mxu3  ;;  %v4642_v56 = vor.u32 %v6490_v23, %v4639_v25  ;;  %v6678_v59 = vld [vmem:[%s7348_s25 + $0x7ec] sm:$0xf]  ;;  %v5266_v42 = vor.u32 %v6646_v38, %v5263_v52 }
 0x1cd   : > { %4051 = vmatpush.bf16.msra.mxu2 %v4706_v28  ;;  %v6582_v28 = vld [vmem:[%s7348_s25 + $0x4ec] sm:$0xf]  ;;  %v5119_v47 = vld [vmem:[%s7348_s25 + $0x5d8] sm:$0xf0] }
 0x1ce   : > { %4064 = vmatpush.bf16.msra.mxu3 %v4834_v36  ;;  %v4386_v36 = vor.u32 %v6426_v16, %v4383_v17  ;;  %v6578_v43 = vld [vmem:[%s7348_s25 + $0x4cc] sm:$0xf]  ;;  %v5247_v49 = vld [vmem:[%s7348_s25 + $0x6d8] sm:$0xf0] }
 0x1cf   : > { %4026 = vmatpush.bf16.msra.mxu0 %v4434_v39  ;;  %v5391_v39 = vld [vmem:[%s7348_s25 + $0x7f8] sm:$0xf0]  ;;  %v6610_v45 = vld [vmem:[%s7348_s25 + $0x5cc] sm:$0xf] }
 0x1d0   : > { %4039 = vmatpush.bf16.msra.mxu1 %v4562_v40  ;;  %v4770_v40 = vor.u32 %v6522_v26, %v4767_v27  ;;  %v5394_v46 = vor.u32 %v6678_v59, %v5391_v39  ;;  %v6642_v48 = vld [vmem:[%s7348_s25 + $0x6cc] sm:$0xf]  ;;  %v5375_v53 = vld [vmem:[%s7348_s25 + $0x7d8] sm:$0xf0]  ;;  %v5122_v55 = vor.u32 %v6610_v45, %v5119_v47 }
 0x1d1   : > { %4052 = vmatpush.bf16.msra.mxu2 %v4690_v41  ;;  %v5010_v41 = vor.u32 %v6582_v28, %v5007_v29  ;;  %v6674_v51 = vld [vmem:[%s7348_s25 + $0x7cc] sm:$0xf]  ;;  %v4975_v62 = vld [vmem:[%s7348_s25 + $0x4b8] sm:$0xf0] }
 0x1d2   : > { %4065 = vmatpush.bf16.msra.mxu3 %v4818_v44  ;;  %v4991_v44 = vld [vmem:[%s7348_s25 + $0x4d8] sm:$0xf0]  ;;  %v6574_v61 = vld [vmem:[%s7348_s25 + $0x4ac] sm:$0xf] }
 0x1d3   : > { %4027 = vmatpush.bf16.msra.mxu0 %v4418_v58  ;;  %v4994_v54 = vor.u32 %v6578_v43, %v4991_v44  ;;  %v5250_v58 = vor.u32 %v6642_v48, %v5247_v49  ;;  %v5103_v1 = vld [vmem:[%s7348_s25 + $0x5b8] sm:$0xf0]  ;;  %v6638_v2 = vld [vmem:[%s7348_s25 + $0x6ac] sm:$0xf]  ;;  %v4978_v6 = vor.u32 %v6574_v61, %v4975_v62 }
 0x1d4   : > { %4040 = vmatpush.bf16.msra.mxu1 %v4546_v63  ;;  %v6606_v63 = vld [vmem:[%s7348_s25 + $0x5ac] sm:$0xf]  ;;  %v5231_v3 = vld [vmem:[%s7348_s25 + $0x6b8] sm:$0xf0] }
 0x1d5   : > { %4053 = vmatpush.bf16.msra.mxu2 %v4674_v0  ;;  %v5378_v0 = vor.u32 %v6674_v51, %v5375_v53  ;;  %v5359_v5 = vld [vmem:[%s7348_s25 + $0x7b8] sm:$0xf0]  ;;  %v5106_v8 = vor.u32 %v6606_v63, %v5103_v1  ;;  %v5234_v9 = vor.u32 %v6638_v2, %v5231_v3  ;;  %v6602_v14 = vld [vmem:[%s7348_s25 + $0x58c] sm:$0xf] }
 0x1d6   : > { %4066 = vmatpush.bf16.msra.mxu3 %v4802_v4  ;;  %v6670_v4 = vld [vmem:[%s7348_s25 + $0x7ac] sm:$0xf]  ;;  %v4959_v10 = vld [vmem:[%s7348_s25 + $0x498] sm:$0xf0] }
 0x1d7   : > { %4028 = vmatpush.bf16.msra.mxu0 %v4402_v15  ;;  %v5087_v15 = vld [vmem:[%s7348_s25 + $0x598] sm:$0xf0]  ;;  %v6666_v17 = vld [vmem:[%s7348_s25 + $0x78c] sm:$0xf] }
 0x1d8   : > { %4041 = vmatpush.bf16.msra.mxu1 %v4530_v19  ;;  %v5215_v16 = vld [vmem:[%s7348_s25 + $0x698] sm:$0xf0]  ;;  %v5090_v21 = vor.u32 %v6602_v14, %v5087_v15  ;;  %v6566_v23 = vld [vmem:[%s7348_s25 + $0x46c] sm:$0xf] }
 0x1d9   : > { %4054 = vmatpush.bf16.msra.mxu2 %v4658_v20  ;;  %v5343_v19 = vld [vmem:[%s7348_s25 + $0x798] sm:$0xf0]  ;;  %v6598_v25 = vld [vmem:[%s7348_s25 + $0x56c] sm:$0xf] }
 0x1da   : > { %4067 = vmatpush.bf16.msra.mxu3 %v4786_v24  ;;  %v4943_v24 = vld [vmem:[%s7348_s25 + $0x478] sm:$0xf0]  ;;  %v5346_v27 = vor.u32 %v6666_v17, %v5343_v19  ;;  %v6630_v28 = vld [vmem:[%s7348_s25 + $0x66c] sm:$0xf] }
 0x1db   : > { %4029 = vmatpush.bf16.msra.mxu0 %v4386_v36  ;;  %v3823_v20 = vpop.f32.mrf.mxu0  ;;  %v5071_v60 = vld [vmem:[%s7348_s25 + $0x578] sm:$0xf0]  ;;  %v6662_v35 = vld [vmem:[%s7348_s25 + $0x76c] sm:$0xf]  ;;  %v4946_v50 = vor.u32 %v6566_v23, %v4943_v24 }
 0x1dc   : > { %4042 = vmatpush.bf16.msra.mxu1 %v4514_v57  ;;  %v3836_v26 = vpop.f32.mrf.mxu1  ;;  %v5199_v29 = vld [vmem:[%s7348_s25 + $0x678] sm:$0xf0]  ;;  %v5074_v38 = vor.u32 %v6598_v25, %v5071_v60  ;;  %v6562_v57 = vld [vmem:[%s7348_s25 + $0x44c] sm:$0xf] }
 0x1dd   : > { %4055 = vmatpush.bf16.msra.mxu2 %v4642_v56  ;;  %v3837_v34 = vadd.f32 %v3836_v26, %v3823_v20  ;;  %v5327_v36 = vld [vmem:[%s7348_s25 + $0x778] sm:$0xf0]  ;;  %v5202_v52 = vor.u32 %v6630_v28, %v5199_v29  ;;  %v6594_v59 = vld [vmem:[%s7348_s25 + $0x54c] sm:$0xf] }
 0x1de   : > { %4068 = vmatpush.bf16.msra.mxu3 %v4770_v40  ;;  %4030 = vmatmul.bf16.vlgmr.msra.gmra.mxu0 %v7462_v32  ;;  %v5362_v32 = vor.u32 %v6670_v4, %v5359_v5  ;;  %v4927_v56 = vld [vmem:[%s7348_s25 + $0x458] sm:$0xf0]  ;;  %v5330_v40 = vor.u32 %v6662_v35, %v5327_v36  ;;  %v6658_v45 = vld [vmem:[%s7348_s25 + $0x74c] sm:$0xf] }
 0x1df   : > { %4074 = vmatpush.bf16.msrb.mxu0 %v5010_v41  ;;  %4043 = vmatmul.bf16.vlgmr.msra.gmra.mxu1 %v7469_v37  ;;  %v5055_v41 = vld [vmem:[%s7348_s25 + $0x558] sm:$0xf0]  ;;  %v4930_v47 = vor.u32 %v6562_v57, %v4927_v56  ;;  %v6654_v2 = vld [vmem:[%s7348_s25 + $0x72c] sm:$0xf] }
 0x1e0   : > { %4087 = vmatpush.bf16.msrb.mxu1 %v5138_v30  ;;  %4056 = vmatmul.bf16.vlgmr.msra.gmra.mxu2 %v7460_v31  ;;  %v6570_v31 = vld [vmem:[%s7348_s25 + $0x48c] sm:$0xf]  ;;  %v5058_v51 = vor.u32 %v6594_v59, %v5055_v41  ;;  %v5039_v63 = vld [vmem:[%s7348_s25 + $0x538] sm:$0xf0] }
 0x1e1   : > { %4100 = vmatpush.bf16.msrb.mxu2 %v5266_v42  ;;  %4069 = vmatmul.bf16.vlgmr.msra.gmra.mxu3 %v7464_v33  ;;  %v6634_v33 = vld [vmem:[%s7348_s25 + $0x68c] sm:$0xf]  ;;  %v4962_v37 = vor.u32 %v6570_v31, %v4959_v10  ;;  %v5183_v42 = vld [vmem:[%s7348_s25 + $0x658] sm:$0xf0] }
 0x1e2   : > { %4113 = vmatpush.bf16.msrb.mxu3 %v5394_v46  ;;  %v5218_v22 = vor.u32 %v6634_v33, %v5215_v16  ;;  %v6626_v30 = vld [vmem:[%s7348_s25 + $0x64c] sm:$0xf]  ;;  %v5311_v46 = vld [vmem:[%s7348_s25 + $0x758] sm:$0xf0] }
 0x1e3   : > { %4075 = vmatpush.bf16.msrb.mxu0 %v4994_v54  ;;  %v3849_v39 = vpop.f32.mrf.mxu2  ;;  %v3825_v49 = vpop.f32.mrf.mxu0  ;;  %v5186_v53 = vor.u32 %v6626_v30, %v5183_v42  ;;  %v6558_v54 = vld [vmem:[%s7348_s25 + $0x42c] sm:$0xf]  ;;  %v5314_v62 = vor.u32 %v6658_v45, %v5311_v46  ;;  %v5167_v1 = vld [vmem:[%s7348_s25 + $0x638] sm:$0xf0] }
 0x1e4   : > { %4088 = vmatpush.bf16.msrb.mxu1 %v5122_v55  ;;  %v3850_v43 = vadd.f32 %v3849_v39, %v3837_v34  ;;  %v3862_v44 = vpop.f32.mrf.mxu3  ;;  %v4911_v55 = vld [vmem:[%s7348_s25 + $0x438] sm:$0xf0]  ;;  %v3838_v61 = vpop.f32.mrf.mxu1  ;;  %v6554_v5 = vld [vmem:[%s7348_s25 + $0x40c] sm:$0xf] }
 0x1e5   : > { %4101 = vmatpush.bf16.msrb.mxu2 %v5250_v58  ;;  %v6590_v58 = vld [vmem:[%s7348_s25 + $0x52c] sm:$0xf]  ;;  %v5295_v3 = vld [vmem:[%s7348_s25 + $0x738] sm:$0xf0]  ;;  %v4914_v4 = vor.u32 %v6558_v54, %v4911_v55 }
 0x1e6   : > { %4114 = vmatpush.bf16.msrb.mxu3 %v5378_v0  ;;  %v8309_v48 = vadd.f32 %v3862_v44, %v3850_v43  ;;  %v6622_v0 = vld [vmem:[%s7348_s25 + $0x62c] sm:$0xf]  ;;  %v5023_v10 = vld [vmem:[%s7348_s25 + $0x518] sm:$0xf0]  ;;  %v5298_v15 = vor.u32 %v6654_v2, %v5295_v3 }
 0x1e7   : > { %4076 = vmatpush.bf16.msrb.mxu0 %v4978_v6  ;;  %v4895_v6 = vld [vmem:[%s7348_s25 + $0x418] sm:$0xf0]  ;;  %v6586_v31 = vld [vmem:[%s7348_s25 + $0x50c] sm:$0xf] }
 0x1e8   : > { %4089 = vmatpush.bf16.msrb.mxu1 %v5106_v8  ;;  %v5042_v8 = vor.u32 %v6590_v58, %v5039_v63  ;;  %v6618_v14 = vld [vmem:[%s7348_s25 + $0x60c] sm:$0xf]  ;;  %v5151_v33 = vld [vmem:[%s7348_s25 + $0x618] sm:$0xf0]  ;;  %v5026_v26 = vor.u32 %v6586_v31, %v5023_v10 }
 0x1e9   : > { %4102 = vmatpush.bf16.msrb.mxu2 %v5234_v9  ;;  %v5170_v9 = vor.u32 %v6622_v0, %v5167_v1  ;;  %v6650_v16 = vld [vmem:[%s7348_s25 + $0x70c] sm:$0xf]  ;;  %v5279_v17 = vld [vmem:[%s7348_s25 + $0x718] sm:$0xf0] }
 0x1ea   : > { %4115 = vmatpush.bf16.msrb.mxu3 %v5362_v32  ;;  %v5519_v20 = vld [vmem:[%s7348_s25 + $0x8f8] sm:$0xf0]  ;;  %v6774_v24 = vld [vmem:[%s7348_s25 + $0xaec] sm:$0xf]  ;;  %v5282_v29 = vor.u32 %v6650_v16, %v5279_v17 }
 0x1eb   : > { %4077 = vmatpush.bf16.msrb.mxu0 %v4962_v37  ;;  %v3851_v32 = vpop.f32.mrf.mxu2  ;;  %v6710_v37 = vld [vmem:[%s7348_s25 + $0x8ec] sm:$0xf]  ;;  %v5647_v23 = vld [vmem:[%s7348_s25 + $0x9f8] sm:$0xf0] }
 0x1ec   : > { %4090 = vmatpush.bf16.msrb.mxu1 %v5090_v21  ;;  %v3864_v19 = vpop.f32.mrf.mxu3  ;;  %v6742_v21 = vld [vmem:[%s7348_s25 + $0x9ec] sm:$0xf]  ;;  %v5775_v25 = vld [vmem:[%s7348_s25 + $0xaf8] sm:$0xf0]  ;;  %v5522_v34 = vor.u32 %v6710_v37, %v5519_v20 }
 0x1ed   : > { %4103 = vmatpush.bf16.msrb.mxu2 %v5218_v22  ;;  %v4898_v22 = vor.u32 %v6554_v5, %v4895_v6  ;;  %v6806_v60 = vld [vmem:[%s7348_s25 + $0xbec] sm:$0xf]  ;;  %v5903_v28 = vld [vmem:[%s7348_s25 + $0xbf8] sm:$0xf0]  ;;  %v5650_v35 = vor.u32 %v6742_v21, %v5647_v23  ;;  %v5778_v36 = vor.u32 %v6774_v24, %v5775_v25 }
 0x1ee   : > { %4116 = vmatpush.bf16.msrb.mxu3 %v5346_v27  ;;  %v5154_v27 = vor.u32 %v6618_v14, %v5151_v33  ;;  %v5906_v57 = vor.u32 %v6806_v60, %v5903_v28  ;;  %v5631_v56 = vld [vmem:[%s7348_s25 + $0x9d8] sm:$0xf0]  ;;  %v6770_v59 = vld [vmem:[%s7348_s25 + $0xacc] sm:$0xf] }
 0x1ef   : > { %4078 = vmatpush.bf16.msrb.mxu0 %v4946_v50  ;;  %v6706_v50 = vld [vmem:[%s7348_s25 + $0x8cc] sm:$0xf]  ;;  %v5759_v39 = vld [vmem:[%s7348_s25 + $0xad8] sm:$0xf0] }
 0x1f0   : > { %4091 = vmatpush.bf16.msrb.mxu1 %v5074_v38  ;;  %v5503_v38 = vld [vmem:[%s7348_s25 + $0x8d8] sm:$0xf0]  ;;  %v5762_v43 = vor.u32 %v6770_v59, %v5759_v39  ;;  %v6702_v44 = vld [vmem:[%s7348_s25 + $0x8ac] sm:$0xf] }
 0x1f1   : > { %4104 = vmatpush.bf16.msrb.mxu2 %v5202_v52  ;;  %v6738_v52 = vld [vmem:[%s7348_s25 + $0x9cc] sm:$0xf]  ;;  %v5887_v41 = vld [vmem:[%s7348_s25 + $0xbd8] sm:$0xf0]  ;;  %v5506_v30 = vor.u32 %v6706_v50, %v5503_v38 }
 0x1f2   : > { %4117 = vmatpush.bf16.msrb.mxu3 %v5330_v40  ;;  %v6802_v40 = vld [vmem:[%s7348_s25 + $0xbcc] sm:$0xf]  ;;  %v5634_v42 = vor.u32 %v6738_v52, %v5631_v56  ;;  %v5487_v45 = vld [vmem:[%s7348_s25 + $0x8b8] sm:$0xf0] }
 0x1f3   : > { %4079 = vmatpush.bf16.msrb.mxu0 %v4930_v47  ;;  %v6734_v46 = vld [vmem:[%s7348_s25 + $0x9ac] sm:$0xf]  ;;  %v5890_v47 = vor.u32 %v6802_v40, %v5887_v41  ;;  %v5615_v49 = vld [vmem:[%s7348_s25 + $0x9b8] sm:$0xf0]  ;;  %v5490_v58 = vor.u32 %v6702_v44, %v5487_v45 }
 0x1f4   : > { %4092 = vmatpush.bf16.msrb.mxu1 %v5058_v51  ;;  %v6766_v51 = vld [vmem:[%s7348_s25 + $0xaac] sm:$0xf]  ;;  %v5871_v55 = vld [vmem:[%s7348_s25 + $0xbb8] sm:$0xf0] }
 0x1f5   : > { %4105 = vmatpush.bf16.msrb.mxu2 %v5186_v53  ;;  %v5743_v53 = vld [vmem:[%s7348_s25 + $0xab8] sm:$0xf0]  ;;  %v6798_v54 = vld [vmem:[%s7348_s25 + $0xbac] sm:$0xf] }
 0x1f6   : > { %4118 = vmatpush.bf16.msrb.mxu3 %v5314_v62  ;;  %v5746_v61 = vor.u32 %v6766_v51, %v5743_v53  ;;  %v6698_v62 = vld [vmem:[%s7348_s25 + $0x88c] sm:$0xf]  ;;  %v5471_v63 = vld [vmem:[%s7348_s25 + $0x898] sm:$0xf0] }
 0x1f7   : > { %4080 = vmatpush.bf16.msrb.mxu0 %v4914_v4  ;;  %v5599_v0 = vld [vmem:[%s7348_s25 + $0x998] sm:$0xf0]  ;;  %v6762_v1 = vld [vmem:[%s7348_s25 + $0xa8c] sm:$0xf] }
 0x1f8   : > { %4093 = vmatpush.bf16.msrb.mxu1 %v5042_v8  ;;  %v5727_v2 = vld [vmem:[%s7348_s25 + $0xa98] sm:$0xf0]  ;;  %v6794_v3 = vld [vmem:[%s7348_s25 + $0xb8c] sm:$0xf] }
 0x1f9   : > { %4106 = vmatpush.bf16.msrb.mxu2 %v5170_v9  ;;  %v5855_v4 = vld [vmem:[%s7348_s25 + $0xb98] sm:$0xf0]  ;;  %v5730_v8 = vor.u32 %v6762_v1, %v5727_v2  ;;  %v6694_v9 = vld [vmem:[%s7348_s25 + $0x86c] sm:$0xf] }
 0x1fa   : > { %4119 = vmatpush.bf16.msrb.mxu3 %v5298_v15  ;;  %v5455_v31 = vld [vmem:[%s7348_s25 + $0x878] sm:$0xf0]  ;;  %v6726_v10 = vld [vmem:[%s7348_s25 + $0x96c] sm:$0xf]  ;;  %v5858_v15 = vor.u32 %v6794_v3, %v5855_v4 }
 0x1fb   : > { %4081 = vmatpush.bf16.msrb.mxu0 %v4898_v22  ;;  %v3875_v5 = vpop.f32.mrf.mxu0  ;;  %v5583_v33 = vld [vmem:[%s7348_s25 + $0x978] sm:$0xf0]  ;;  %v6758_v16 = vld [vmem:[%s7348_s25 + $0xa6c] sm:$0xf]  ;;  %v5458_v21 = vor.u32 %v6694_v9, %v5455_v31 }
 0x1fc   : > { %4094 = vmatpush.bf16.msrb.mxu1 %v5026_v26  ;;  %v3876_v14 = vadd.f32 %v3875_v5, %v8309_v48  ;;  %v3888_v32 = vpop.f32.mrf.mxu1  ;;  %v5711_v17 = vld [vmem:[%s7348_s25 + $0xa78] sm:$0xf0]  ;;  %v6790_v19 = vld [vmem:[%s7348_s25 + $0xb6c] sm:$0xf]  ;;  %v5586_v48 = vor.u32 %v6726_v10, %v5583_v33 }
 0x1fd   : > { %4107 = vmatpush.bf16.msrb.mxu2 %v5154_v27  ;;  %v5839_v37 = vld [vmem:[%s7348_s25 + $0xb78] sm:$0xf0]  ;;  %v5714_v22 = vor.u32 %v6758_v16, %v5711_v17  ;;  %v6690_v23 = vld [vmem:[%s7348_s25 + $0x84c] sm:$0xf] }
 0x1fe   : > { %4120 = vmatpush.bf16.msrb.mxu3 %v5282_v29  ;;  %4082 = vmatmul.bf16.vlgmr.msrb.gmra.mxu0 %v7501_v11  ;;  %v6730_v11 = vld [vmem:[%s7348_s25 + $0x98c] sm:$0xf]  ;;  %v3889_v20 = vadd.f32 %v3888_v32, %v3876_v14  ;;  %v5439_v24 = vld [vmem:[%s7348_s25 + $0x858] sm:$0xf0]  ;;  %v5842_v27 = vor.u32 %v6790_v19, %v5839_v37 }
 0x1ff   : > { %4126 = vmatpush.bf16.msra.mxu0 %v5522_v34  ;;  %4095 = vmatmul.bf16.vlgmr.msrb.gmra.mxu1 %v7505_v13  ;;  %v5474_v13 = vor.u32 %v6698_v62, %v5471_v63  ;;  %v5602_v6 = vor.u32 %v6730_v11, %v5599_v0  ;;  %v6722_v25 = vld [vmem:[%s7348_s25 + $0x94c] sm:$0xf]  ;;  %v5567_v60 = vld [vmem:[%s7348_s25 + $0x958] sm:$0xf0]  ;;  %v5442_v38 = vor.u32 %v6690_v23, %v5439_v24 }
 0x200   : > { %4139 = vmatpush.bf16.msra.mxu1 %v5650_v35  ;;  %4108 = vmatmul.bf16.vlgmr.msrb.gmra.mxu2 %v7498_v7  ;;  %v5618_v7 = vor.u32 %v6734_v46, %v5615_v49  ;;  %v6754_v28 = vld [vmem:[%s7348_s25 + $0xa4c] sm:$0xf]  ;;  %v5695_v29 = vld [vmem:[%s7348_s25 + $0xa58] sm:$0xf0]  ;;  %v5570_v56 = vor.u32 %v6722_v25, %v5567_v60 }
 0x201   : > { %4152 = vmatpush.bf16.msra.mxu2 %v5778_v36  ;;  %4121 = vmatmul.bf16.vlgmr.msrb.gmra.mxu3 %v7503_v12  ;;  %v5874_v12 = vor.u32 %v6798_v54, %v5871_v55  ;;  %v6786_v36 = vld [vmem:[%s7348_s25 + $0xb4c] sm:$0xf]  ;;  %v5823_v50 = vld [vmem:[%s7348_s25 + $0xb58] sm:$0xf0]  ;;  %v5698_v59 = vor.u32 %v6754_v28, %v5695_v29 }
 0x202   : > { %4165 = vmatpush.bf16.msra.mxu3 %v5906_v57  ;;  %v6686_v39 = vld [vmem:[%s7348_s25 + $0x82c] sm:$0xf]  ;;  %v5423_v40 = vld [vmem:[%s7348_s25 + $0x838] sm:$0xf0] }
 0x203   : > { %4127 = vmatpush.bf16.msra.mxu0 %v5506_v30  ;;  %v3901_v26 = vpop.f32.mrf.mxu2  ;;  %v3877_v57 = vpop.f32.mrf.mxu0  ;;  %v6718_v41 = vld [vmem:[%s7348_s25 + $0x92c] sm:$0xf]  ;;  %v5679_v45 = vld [vmem:[%s7348_s25 + $0xa38] sm:$0xf0]  ;;  %v5426_v49 = vor.u32 %v6686_v39, %v5423_v40  ;;  %v7036_v40 = vld [vmem:[#allocation1 + $0x1b] sm:$0xff] }
 0x204   : > { %4140 = vmatpush.bf16.msra.mxu1 %v5634_v42  ;;  %v3902_v34 = vadd.f32 %v3901_v26, %v3889_v20  ;;  %v3914_v35 = vpop.f32.mrf.mxu3  ;;  %v3890_v30 = vpop.f32.mrf.mxu1  ;;  %v5826_v42 = vor.u32 %v6786_v36, %v5823_v50  ;;  %v6750_v44 = vld [vmem:[%s7348_s25 + $0xa2c] sm:$0xf]  ;;  %v5407_v53 = vld [vmem:[%s7348_s25 + $0x818] sm:$0xf0] }
 0x205   : > { %4153 = vmatpush.bf16.msra.mxu2 %v5762_v43  ;;  %v5551_v43 = vld [vmem:[%s7348_s25 + $0x938] sm:$0xf0]  ;;  %v6782_v46 = vld [vmem:[%s7348_s25 + $0xb2c] sm:$0xf]  ;;  %v5682_v55 = vor.u32 %v6750_v44, %v5679_v45 }
 0x206   : > { %4166 = vmatpush.bf16.msra.mxu3 %v5890_v47  ;;  %v8380_v52 = vadd.f32 %v3914_v35, %v3902_v34  ;;  %v5807_v47 = vld [vmem:[%s7348_s25 + $0xb38] sm:$0xf0]  ;;  %v6682_v51 = vld [vmem:[%s7348_s25 + $0x80c] sm:$0xf]  ;;  %v5554_v54 = vor.u32 %v6718_v41, %v5551_v43 }
 0x207   : > { %4128 = vmatpush.bf16.msra.mxu0 %v5490_v58  ;;  %v6714_v58 = vld [vmem:[%s7348_s25 + $0x90c] sm:$0xf]  ;;  %v5810_v63 = vor.u32 %v6782_v46, %v5807_v47  ;;  %v5663_v11 = vld [vmem:[%s7348_s25 + $0xa18] sm:$0xf0] }
 0x208   : > { %4141 = vmatpush.bf16.msra.mxu1 %v5618_v7  ;;  %v5535_v7 = vld [vmem:[%s7348_s25 + $0x918] sm:$0xf0]  ;;  %v6838_v2 = vld [vmem:[%s7348_s25 + $0xcec] sm:$0xf] }
 0x209   : > { %4154 = vmatpush.bf16.msra.mxu2 %v5746_v61  ;;  %v6746_v61 = vld [vmem:[%s7348_s25 + $0xa0c] sm:$0xf]  ;;  %v5791_v0 = vld [vmem:[%s7348_s25 + $0xb18] sm:$0xf0]  ;;  %v5538_v9 = vor.u32 %v6714_v58, %v5535_v7 }
 0x20a   : > { %4167 = vmatpush.bf16.msra.mxu3 %v5874_v12  ;;  %v6778_v12 = vld [vmem:[%s7348_s25 + $0xb0c] sm:$0xf]  ;;  %v6031_v3 = vld [vmem:[%s7348_s25 + $0xcf8] sm:$0xf0]  ;;  %v5666_v31 = vor.u32 %v6746_v61, %v5663_v11 }
 0x20b   : > { %4129 = vmatpush.bf16.msra.mxu0 %v5474_v13  ;;  %v3903_v62 = vpop.f32.mrf.mxu2  ;;  %v6870_v4 = vld [vmem:[%s7348_s25 + $0xdec] sm:$0xf]  ;;  %v5410_v13 = vor.u32 %v6682_v51, %v5407_v53  ;;  %v6159_v5 = vld [vmem:[%s7348_s25 + $0xdf8] sm:$0xf0]  ;;  %v5794_v32 = vor.u32 %v6778_v12, %v5791_v0 }
 0x20c   : > { %4142 = vmatpush.bf16.msra.mxu1 %v5602_v6  ;;  %v3916_v1 = vpop.f32.mrf.mxu3  ;;  %v6902_v6 = vld [vmem:[%s7348_s25 + $0xeec] sm:$0xf]  ;;  %v6415_v14 = vld [vmem:[%s7348_s25 + $0xff8] sm:$0xf0]  ;;  %v6162_v33 = vor.u32 %v6870_v4, %v6159_v5 }
 0x20d   : > { %4155 = vmatpush.bf16.msra.mxu2 %v5730_v8  ;;  %v6287_v8 = vld [vmem:[%s7348_s25 + $0xef8] sm:$0xf0]  ;;  %v6934_v10 = vld [vmem:[%s7348_s25 + $0xfec] sm:$0xf] }
 0x20e   : > { %4168 = vmatpush.bf16.msra.mxu3 %v5858_v15  ;;  %v6034_v15 = vor.u32 %v6838_v2, %v6031_v3  ;;  %v6290_v16 = vor.u32 %v6902_v6, %v6287_v8  ;;  %v6834_v17 = vld [vmem:[%s7348_s25 + $0xccc] sm:$0xf]  ;;  %v6015_v19 = vld [vmem:[%s7348_s25 + $0xcd8] sm:$0xf0]  ;;  %v6418_v20 = vor.u32 %v6934_v10, %v6415_v14 }
 0x20f   : > { %4130 = vmatpush.bf16.msra.mxu0 %v5458_v21  ;;  %v6866_v37 = vld [vmem:[%s7348_s25 + $0xdcc] sm:$0xf]  ;;  %v6143_v21 = vld [vmem:[%s7348_s25 + $0xdd8] sm:$0xf0]  ;;  %v6018_v25 = vor.u32 %v6834_v17, %v6015_v19 }
 0x210   : > { %4143 = vmatpush.bf16.msra.mxu1 %v5586_v48  ;;  %v6898_v48 = vld [vmem:[%s7348_s25 + $0xecc] sm:$0xf]  ;;  %v6399_v24 = vld [vmem:[%s7348_s25 + $0xfd8] sm:$0xf0]  ;;  %v6146_v26 = vor.u32 %v6866_v37, %v6143_v21 }
 0x211   : > { %4156 = vmatpush.bf16.msra.mxu2 %v5714_v22  ;;  %v6271_v22 = vld [vmem:[%s7348_s25 + $0xed8] sm:$0xf0]  ;;  %v6930_v23 = vld [vmem:[%s7348_s25 + $0xfcc] sm:$0xf] }
 0x212   : > { %4169 = vmatpush.bf16.msra.mxu3 %v5842_v27  ;;  %v6274_v27 = vor.u32 %v6898_v48, %v6271_v22  ;;  %v6830_v60 = vld [vmem:[%s7348_s25 + $0xcac] sm:$0xf]  ;;  %v5999_v28 = vld [vmem:[%s7348_s25 + $0xcb8] sm:$0xf0]  ;;  %v6402_v35 = vor.u32 %v6930_v23, %v6399_v24 }
 0x213   : > { %4131 = vmatpush.bf16.msra.mxu0 %v5442_v38  ;;  %v6862_v29 = vld [vmem:[%s7348_s25 + $0xdac] sm:$0xf]  ;;  %v7033_v34 = vld [vmem:[#allocation1] sm:$0xff]  ;;  %v6002_v41 = vor.u32 %v6830_v60, %v5999_v28 }
 0x214   : > { %4144 = vmatpush.bf16.msra.mxu1 %v5570_v56  ;;  %v6127_v36 = vld [vmem:[%s7348_s25 + $0xdb8] sm:$0xf0]  ;;  %v6894_v50 = vld [vmem:[%s7348_s25 + $0xeac] sm:$0xf]  ;;  %v7035_v56 = vld [vmem:[#allocation1 + $0x9] sm:$0xff] }
 0x215   : > { %4157 = vmatpush.bf16.msra.mxu2 %v5698_v59  ;;  %v6255_v38 = vld [vmem:[%s7348_s25 + $0xeb8] sm:$0xf0]  ;;  %v7034_v57 = vld [vmem:[#allocation1 + $0x12] sm:$0xff]  ;;  %v6130_v30 = vor.u32 %v6862_v29, %v6127_v36 }
 0x216   : > { %4170 = vmatpush.bf16.msra.mxu3 %v5826_v42  ;;  %v6926_v59 = vld [vmem:[%s7348_s25 + $0xfac] sm:$0xf]  ;;  %v6383_v39 = vld [vmem:[%s7348_s25 + $0xfb8] sm:$0xf0]  ;;  %v6258_v42 = vor.u32 %v6894_v50, %v6255_v38 }
 0x217   : > { %4132 = vmatpush.bf16.msra.mxu0 %v5426_v49  ;;  %v6826_v43 = vld [vmem:[%s7348_s25 + $0xc8c] sm:$0xf]  ;;  %v5983_v44 = vld [vmem:[%s7348_s25 + $0xc98] sm:$0xf0]  ;;  %v6386_v46 = vor.u32 %v6926_v59, %v6383_v39 }
 0x218   : > { %4145 = vmatpush.bf16.msra.mxu1 %v5554_v54  ;;  %v6858_v45 = vld [vmem:[%s7348_s25 + $0xd8c] sm:$0xf]  ;;  %v6111_v47 = vld [vmem:[%s7348_s25 + $0xd98] sm:$0xf0]  ;;  %v5986_v7 = vor.u32 %v6826_v43, %v5983_v44 }
 0x219   : > { %4158 = vmatpush.bf16.msra.mxu2 %v5682_v55  ;;  %v6890_v49 = vld [vmem:[%s7348_s25 + $0xe8c] sm:$0xf]  ;;  %v6239_v51 = vld [vmem:[%s7348_s25 + $0xe98] sm:$0xf0]  ;;  %v6114_v62 = vor.u32 %v6858_v45, %v6111_v47 }
 0x21a   : > { %4171 = vmatpush.bf16.msra.mxu3 %v5810_v63  ;;  %v6922_v54 = vld [vmem:[%s7348_s25 + $0xf8c] sm:$0xf]  ;;  %v6367_v55 = vld [vmem:[%s7348_s25 + $0xf98] sm:$0xf0]  ;;  %v6242_v63 = vor.u32 %v6890_v49, %v6239_v51 }
 0x21b   : > { %4133 = vmatpush.bf16.msra.mxu0 %v5410_v13  ;;  %v3927_v53 = vpop.f32.mrf.mxu0  ;;  %v6822_v11 = vld [vmem:[%s7348_s25 + $0xc6c] sm:$0xf]  ;;  %v5967_v12 = vld [vmem:[%s7348_s25 + $0xc78] sm:$0xf0]  ;;  %v6370_v1 = vor.u32 %v6922_v54, %v6367_v55 }
 0x21c   : > { %4146 = vmatpush.bf16.msra.mxu1 %v5538_v9  ;;  %v3928_v58 = vadd.f32 %v3927_v53, %v8380_v52  ;;  %v3940_v61 = vpop.f32.mrf.mxu1  ;;  %v6854_v0 = vld [vmem:[%s7348_s25 + $0xd6c] sm:$0xf]  ;;  %v6095_v3 = vld [vmem:[%s7348_s25 + $0xd78] sm:$0xf0]  ;;  %v5970_v6 = vor.u32 %v6822_v11, %v5967_v12 }
 0x21d   : > { %4159 = vmatpush.bf16.msra.mxu2 %v5666_v31  ;;  %v6886_v4 = vld [vmem:[%s7348_s25 + $0xe6c] sm:$0xf]  ;;  %v6223_v52 = vld [vmem:[%s7348_s25 + $0xe78] sm:$0xf0]  ;;  %v6098_v8 = vor.u32 %v6854_v0, %v6095_v3 }
 0x21e   : > { %4172 = vmatpush.bf16.msra.mxu3 %v5794_v32  ;;  %4134 = vmatmul.bf16.vlgmr.msra.gmra.mxu0 %v7033_v34  ;;  %v3941_v2 = vadd.f32 %v3940_v61, %v3928_v58  ;;  %v6918_v13 = vld [vmem:[%s7348_s25 + $0xf6c] sm:$0xf]  ;;  %v6351_v5 = vld [vmem:[%s7348_s25 + $0xf78] sm:$0xf0]  ;;  %v6226_v9 = vor.u32 %v6886_v4, %v6223_v52 }
 0x21f   : > { %4178 = vmatpush.bf16.msrb.mxu0 %v6034_v15  ;;  %4147 = vmatmul.bf16.vlgmr.msra.gmra.mxu1 %v7035_v56  ;;  %v6818_v31 = vld [vmem:[%s7348_s25 + $0xc4c] sm:$0xf]  ;;  %v5951_v10 = vld [vmem:[%s7348_s25 + $0xc58] sm:$0xf0]  ;;  %v6354_v32 = vor.u32 %v6918_v13, %v6351_v5 }
 0x220   : > { %4191 = vmatpush.bf16.msrb.mxu1 %v6162_v33  ;;  %4160 = vmatmul.bf16.vlgmr.msra.gmra.mxu2 %v7034_v57  ;;  %v6850_v14 = vld [vmem:[%s7348_s25 + $0xd4c] sm:$0xf]  ;;  %v6079_v33 = vld [vmem:[%s7348_s25 + $0xd58] sm:$0xf0]  ;;  %v5954_v22 = vor.u32 %v6818_v31, %v5951_v10 }
 0x221   : > { %4204 = vmatpush.bf16.msrb.mxu2 %v6290_v16  ;;  %4173 = vmatmul.bf16.vlgmr.msra.gmra.mxu3 %v7036_v40  ;;  %v6882_v16 = vld [vmem:[%s7348_s25 + $0xe4c] sm:$0xf]  ;;  %v6207_v17 = vld [vmem:[%s7348_s25 + $0xe58] sm:$0xf0] }
 0x222   : > { %4217 = vmatpush.bf16.msrb.mxu3 %v6418_v20  ;;  %v6914_v20 = vld [vmem:[%s7348_s25 + $0xf4c] sm:$0xf]  ;;  %v6335_v21 = vld [vmem:[%s7348_s25 + $0xf58] sm:$0xf0] }
 0x223   : > { %4179 = vmatpush.bf16.msrb.mxu0 %v6018_v25  ;;  %v3953_v15 = vpop.f32.mrf.mxu2  ;;  %v3929_v48 = vpop.f32.mrf.mxu0  ;;  %v6082_v25 = vor.u32 %v6850_v14, %v6079_v33  ;;  %v5935_v60 = vld [vmem:[%s7348_s25 + $0xc38] sm:$0xf0]  ;;  %v6846_v28 = vld [vmem:[%s7348_s25 + $0xd2c] sm:$0xf]  ;;  %v6338_v29 = vor.u32 %v6914_v20, %v6335_v21 }
 0x224   : > { %4192 = vmatpush.bf16.msrb.mxu1 %v6146_v26  ;;  %v3954_v19 = vadd.f32 %v3953_v15, %v3941_v2  ;;  %v3966_v37 = vpop.f32.mrf.mxu3  ;;  %v3942_v23 = vpop.f32.mrf.mxu1  ;;  %v6210_v26 = vor.u32 %v6882_v16, %v6207_v17  ;;  %v6063_v34 = vld [vmem:[%s7348_s25 + $0xd38] sm:$0xf0]  ;;  %v6910_v50 = vld [vmem:[%s7348_s25 + $0xf2c] sm:$0xf] }
 0x225   : > { %4205 = vmatpush.bf16.msrb.mxu2 %v6274_v27  ;;  %v6814_v27 = vld [vmem:[%s7348_s25 + $0xc2c] sm:$0xf]  ;;  %v6191_v36 = vld [vmem:[%s7348_s25 + $0xe38] sm:$0xf0]  ;;  %v6066_v56 = vor.u32 %v6846_v28, %v6063_v34 }
 0x226   : > { %4218 = vmatpush.bf16.msrb.mxu3 %v6402_v35  ;;  %v3967_v24 = vadd.f32 %v3966_v37, %v3954_v19  ;;  %v6878_v35 = vld [vmem:[%s7348_s25 + $0xe2c] sm:$0xf]  ;;  %v6319_v38 = vld [vmem:[%s7348_s25 + $0xf38] sm:$0xf0]  ;;  %v5938_v57 = vor.u32 %v6814_v27, %v5935_v60 }
 0x227   : > { %4180 = vmatpush.bf16.msrb.mxu0 %v6002_v41  ;;  %v6194_v59 = vor.u32 %v6878_v35, %v6191_v36  ;;  %v6810_v39 = vld [vmem:[%s7348_s25 + $0xc0c] sm:$0xf]  ;;  %v5919_v40 = vld [vmem:[%s7348_s25 + $0xc18] sm:$0xf0] }
 0x228   : > { %4193 = vmatpush.bf16.msrb.mxu1 %v6130_v30  ;;  %v6842_v41 = vld [vmem:[%s7348_s25 + $0xd0c] sm:$0xf]  ;;  %v6322_v30 = vor.u32 %v6910_v50, %v6319_v38  ;;  %v6175_v44 = vld [vmem:[%s7348_s25 + $0xe18] sm:$0xf0]  ;;  %v5922_v51 = vor.u32 %v6810_v39, %v5919_v40 }
 0x229   : > { %4206 = vmatpush.bf16.msrb.mxu2 %v6258_v42  ;;  %v6047_v42 = vld [vmem:[%s7348_s25 + $0xd18] sm:$0xf0]  ;;  %v6874_v43 = vld [vmem:[%s7348_s25 + $0xe0c] sm:$0xf] }
 0x22a   : > { %4219 = vmatpush.bf16.msrb.mxu3 %v6386_v46  ;;  %v6906_v46 = vld [vmem:[%s7348_s25 + $0xf0c] sm:$0xf]  ;;  %v6303_v47 = vld [vmem:[%s7348_s25 + $0xf18] sm:$0xf0]  ;;  %v6050_v53 = vor.u32 %v6842_v41, %v6047_v42  ;;  %v6178_v54 = vor.u32 %v6874_v43, %v6175_v44 }
 0x22b   : > { %4181 = vmatpush.bf16.msrb.mxu0 %v5986_v7  ;;  %v3955_v45 = vpop.f32.mrf.mxu2  ;;  %v6306_v55 = vor.u32 %v6906_v46, %v6303_v47  ;;  %v7037_v58 = vld [vmem:[#allocation1 + $0x24] sm:$0xff]  ;;  %v7038_v7 = vld [vmem:[#allocation1 + $0x2d] sm:$0xff]  ;;  %v7039_v61 = vld [vmem:[#allocation1 + $0x36] sm:$0xff] }
 0x22c   : > { %4194 = vmatpush.bf16.msrb.mxu1 %v6114_v62  ;;  %v3968_v49 = vpop.f32.mrf.mxu3  ;;  %v7040_v62 = vld [vmem:[#allocation1 + $0x3f] sm:$0xff] }
 0x22d   : > { %4207 = vmatpush.bf16.msrb.mxu2 %v6242_v63 }
 0x22e   : > { %4220 = vmatpush.bf16.msrb.mxu3 %v6370_v1 }
 0x22f   : > { %4182 = vmatpush.bf16.msrb.mxu0 %v5970_v6 }
 0x230   : > { %4195 = vmatpush.bf16.msrb.mxu1 %v6098_v8 }
 0x231   : > { %4208 = vmatpush.bf16.msrb.mxu2 %v6226_v9 }
 0x232   : > { %4221 = vmatpush.bf16.msrb.mxu3 %v6354_v32 }
 0x233   : > { %4183 = vmatpush.bf16.msrb.mxu0 %v5954_v22 }
 0x234   : > { %4196 = vmatpush.bf16.msrb.mxu1 %v6082_v25 }
 0x235   : > { %4209 = vmatpush.bf16.msrb.mxu2 %v6210_v26 }
 0x236   : > { %4222 = vmatpush.bf16.msrb.mxu3 %v6338_v29 }
 0x237   : > { %4184 = vmatpush.bf16.msrb.mxu0 %v5938_v57 }
 0x238   : > { %4197 = vmatpush.bf16.msrb.mxu1 %v6066_v56 }
 0x239   : > { %4210 = vmatpush.bf16.msrb.mxu2 %v6194_v59 }
 0x23a   : > { %4223 = vmatpush.bf16.msrb.mxu3 %v6322_v30 }
 0x23b   : > { %4185 = vmatpush.bf16.msrb.mxu0 %v5922_v51  ;;  %v3979_v63 = vpop.f32.mrf.mxu0 }
 0x23c   : > { %4198 = vmatpush.bf16.msrb.mxu1 %v6050_v53  ;;  %v3980_v11 = vadd.f32 %v3979_v63, %v3967_v24  ;;  %v3992_v12 = vpop.f32.mrf.mxu1 }
 0x23d   : > { %4211 = vmatpush.bf16.msrb.mxu2 %v6178_v54 }
 0x23e   : > { %4224 = vmatpush.bf16.msrb.mxu3 %v6306_v55  ;;  %4186 = vmatmul.bf16.vlgmr.msrb.gmra.mxu0 %v7037_v58  ;;  %v3993_v0 = vadd.f32 %v3992_v12, %v3980_v11  ;;  %v287_v58 = vld [vmem:[#allocation8] sm:$0xff] }
 0x23f   : > { %4199 = vmatmul.bf16.vlgmr.msrb.gmra.mxu1 %v7038_v7 }
 0x240   : > { %4212 = vmatmul.bf16.vlgmr.msrb.gmra.mxu2 %v7039_v61 }
 0x241   : > { %4225 = vmatmul.bf16.vlgmr.msrb.gmra.mxu3 %v7040_v62 }
 0x243   : > { %v4005_v1 = vpop.f32.mrf.mxu2  ;;  %v3981_v4 = vpop.f32.mrf.mxu0 }
 0x244   : > { %v4006_v2 = vadd.f32 %v4005_v1, %v3993_v0  ;;  %v4018_v3 = vpop.f32.mrf.mxu3  ;;  %v3994_v52 = vpop.f32.mrf.mxu1 }
 0x246   : > { %v4019_v13 = vadd.f32 %v4018_v3, %v4006_v2 }
 0x248   : > { %v4235_v54 = vrot.slane %v4019_v13, 4 }
 0x24b   : > { %v4007_v5 = vpop.f32.mrf.mxu2 }
 0x24c   : > { %v4020_v6 = vpop.f32.mrf.mxu3 }
 0x25b   : > { %v4031_v8 = vpop.f32.mrf.mxu0 }
 0x25c   : > { %v4044_v9 = vpop.f32.mrf.mxu1 }
 0x25d   : > { %v4045_v31 = vadd.f32 %v4044_v9, %v4031_v8 }
 0x263   : > { %v4057_v10 = vpop.f32.mrf.mxu2  ;;  %v4033_v33 = vpop.f32.mrf.mxu0 }
 0x264   : > { %v4058_v14 = vadd.f32 %v4057_v10, %v4045_v31  ;;  %v4070_v32 = vpop.f32.mrf.mxu3  ;;  %v4046_v16 = vpop.f32.mrf.mxu1 }
 0x266   : > { %v4071_v15 = vadd.f32 %v4070_v32, %v4058_v14 }
 0x26b   : > { %v4059_v17 = vpop.f32.mrf.mxu2 }
 0x26c   : > { %v4072_v19 = vpop.f32.mrf.mxu3 }
 0x27b   : > { %v4083_v37 = vpop.f32.mrf.mxu0 }
 0x27c   : > { %v4096_v20 = vpop.f32.mrf.mxu1  ;;  %v4084_v60 = vadd.f32 %v4083_v37, %v4071_v15 }
 0x27e   : > { %v4097_v35 = vadd.f32 %v4096_v20, %v4084_v60 }
 0x283   : > { %v4109_v21 = vpop.f32.mrf.mxu2  ;;  %v4085_v22 = vpop.f32.mrf.mxu0 }
 0x284   : > { %v4122_v48 = vpop.f32.mrf.mxu3  ;;  %v4098_v23 = vpop.f32.mrf.mxu1  ;;  %v4110_v50 = vadd.f32 %v4109_v21, %v4097_v35 }
 0x286   : > { %v4123_v56 = vadd.f32 %v4122_v48, %v4110_v50 }
 0x28b   : > { %v4111_v24 = vpop.f32.mrf.mxu2 }
 0x28c   : > { %v4124_v25 = vpop.f32.mrf.mxu3 }
 0x29b   : > { %v4135_v26 = vpop.f32.mrf.mxu0 }
 0x29c   : > { %v4148_v27 = vpop.f32.mrf.mxu1  ;;  %v4136_v59 = vadd.f32 %v4135_v26, %v4123_v56 }
 0x29e   : > { %v4149_v39 = vadd.f32 %v4148_v27, %v4136_v59 }
 0x2a3   : > { %v4161_v28 = vpop.f32.mrf.mxu2  ;;  %v4137_v34 = vpop.f32.mrf.mxu0 }
 0x2a4   : > { %v4174_v29 = vpop.f32.mrf.mxu3  ;;  %v4150_v36 = vpop.f32.mrf.mxu1  ;;  %v4162_v40 = vadd.f32 %v4161_v28, %v4149_v39 }
 0x2a6   : > { %v4175_v41 = vadd.f32 %v4174_v29, %v4162_v40 }
 0x2ab   : > { %v4163_v38 = vpop.f32.mrf.mxu2 }
 0x2ac   : > { %v4176_v57 = vpop.f32.mrf.mxu3 }
 0x2bb   : > { %v4187_v30 = vpop.f32.mrf.mxu0 }
 0x2bc   : > { %v4200_v42 = vpop.f32.mrf.mxu1  ;;  %v4188_v43 = vadd.f32 %v4187_v30, %v4175_v41 }
 0x2be   : > { %v4201_v44 = vadd.f32 %v4200_v42, %v4188_v43 }
 0x2c3   : > { %v4213_v45 = vpop.f32.mrf.mxu2  ;;  %v4189_v49 = vpop.f32.mrf.mxu0 }
 0x2c4   : > { %v4214_v46 = vadd.f32 %v4213_v45, %v4201_v44  ;;  %v4226_v47 = vpop.f32.mrf.mxu3  ;;  %v4202_v51 = vpop.f32.mrf.mxu1 }
 0x2c6   : > { %v4227_v53 = vadd.f32 %v4226_v47, %v4214_v46 }
 0x2c8   : > { %v4236_v55 = vrot.slane %v4227_v53, 2 }
 0x2ca   : > { %v4240_v7 = vsel %vm4239_vm4, %v4235_v54, %v4236_v55 }
 0x2cb   : > { %v4215_v61 = vpop.f32.mrf.mxu2  ;;  %v4242_v62 = vsel %vm4241_vm5, %v8249_v18, %v4240_v7 }
 0x2cc   : > { %v4228_v63 = vpop.f32.mrf.mxu3  ;;  %v4244_v11 = vadd.f32 %v4242_v62, %v287_v58 }
 0x2ce   : > { %4245 = vst [vmem:[#allocation8] sm:$0xff] %v4244_v11 }
 0x2cf   : > { %6946 = dma.vmem_to_hbm [thread:$0]  (%p6963_p1), %s4256_s19, 128, %s4258_s29, [#allocation4]  }
 0x2d0   : > { %7196 = dma.done.wait (%p6963_p1), [#allocation4], 128  }
 0x2d1   : > { %7198 = vsyncadd (%p6963_p1), [#allocation4], 4294967168 }
 0x2d2 PF: > { %s20_s17 = sadd.s32 1, %s7221_s17   ;;  %s8494_s12 = smov %s7205_s13 }
 0x2d3   : > { %p17_p3 = scmp.ge.s32.totalorder %s20_s17, 4   ;;  %s8495_s13 = smov %s7209_s14 }
 0x2d4   : > { %s8496_s14 = smov %s7316_s6  ;;  %s8497_s15 = smov %s7217_s16 }
 0x2d5   : > { %s8498_s16 = smov %s8500_s26  ;;  %19 = sbr.rel (!%p17_p3) target bundleno = 7 (0x7), region = 92 }
 0x2da   :  { %4271 = vsyncpa [#allocation3], 1 }
 0x2db   :  { %4273 = vsyncpa [#allocation3 + $0x1], 1 }
 0x2dc   :  { %4274 = vsyncpa [#allocation6], 1 }
 0x2dd   :  { %4276 = vsyncpa [#allocation6 + $0x1], 1 }
 0x2de   :  { %4277 = vsyncpa [#allocation4], 1 }
 0x2df   :  { %4279 = vsyncpa [#allocation4 + $0x1], 1 }

</bundles_post_ra>
